<compile_context>
chip_gen: v7x
topology: tpu7x:2x2x1
jax: 0.10.0
libtpu: 0.0.40
codegen_flags: <defaults>
</compile_context>

<pallas_src>
import math

import jax
import jax.numpy as jnp
from jax import lax
from jax.experimental import pallas as pl
from jax.experimental.pallas import tpu as pltpu

_EPS = 1e-5            # BatchNorm3d default eps
_BF16 = jnp.bfloat16


# ----------------------------------------------------------------------------
# tiling helpers
# ----------------------------------------------------------------------------
_ROW_PREFS = (1024, 512, 256, 128, 64, 32, 16, 8)   # all multiples of 8
_BATCH_PREFS = (32, 16, 8, 4, 2, 1)


def _pick_block(m, prefs):
    """Largest tile from `prefs` dividing m; prefer leaving >= 2 grid steps."""
    for t in prefs:
        if t <= m and m % t == 0 and m // t >= 2:
            return t
    for t in prefs:
        if t <= m and m % t == 0:
            return t
    return m                       # full dim (legal: block == array dim)


# ----------------------------------------------------------------------------
# Kernel 1: fused bf16 matmul + per-channel sum / sum-of-squares
# ----------------------------------------------------------------------------
def _matmul_stats_kernel(a_ref, b_ref, y_ref, sum_ref, sq_ref):
    @pl.when(pl.program_id(0) == 0)
    def _():
        sum_ref[...] = jnp.zeros_like(sum_ref)
        sq_ref[...] = jnp.zeros_like(sq_ref)

    y = jnp.dot(a_ref[...], b_ref[...], preferred_element_type=jnp.float32)
    y_ref[...] = y
    sum_ref[...] += jnp.sum(y, axis=0, keepdims=True)
    sq_ref[...] += jnp.sum(y * y, axis=0, keepdims=True)


def pallas_matmul_stats(a, b):
    """a: (M, K) bf16, b: (K, N) bf16 -> (y f32 (M,N), sum (1,N), sumsq (1,N))."""
    m, k = a.shape
    n = b.shape[1]
    tm = _pick_block(m, _ROW_PREFS)
    # TODO(synk): for production channel counts add K/N tiling (f32 VMEM acc
    # scratch, tn multiples of 256 on v6e/v7x, 128 on v5e) and a vmem budget.
    return pl.pallas_call(
        _matmul_stats_kernel,
        out_shape=(jax.ShapeDtypeStruct((m, n), jnp.float32),
                   jax.ShapeDtypeStruct((1, n), jnp.float32),
                   jax.ShapeDtypeStruct((1, n), jnp.float32)),
        grid=(m // tm,),
        in_specs=[pl.BlockSpec((tm, k), lambda i: (i, 0)),
                  pl.BlockSpec((k, n), lambda i: (0, 0))],
        out_specs=(pl.BlockSpec((tm, n), lambda i: (i, 0)),
                   pl.BlockSpec((1, n), lambda i: (0, 0)),
                   pl.BlockSpec((1, n), lambda i: (0, 0))),
        compiler_params=pltpu.CompilerParams(
            dimension_semantics=("arbitrary",)),      # stats accumulate over M
    )(a, b)


# ----------------------------------------------------------------------------
# Kernel 2: separable-conv tap accumulation + stats (no HBM im2col)
# ----------------------------------------------------------------------------
def _make_conv_stats_kernel(kp, kq, op, oq):
    def kernel(x_ref, w_ref, y_ref, sum_ref, sq_ref):
        @pl.when(pl.program_id(0) == 0)
        def _():
            sum_ref[...] = jnp.zeros_like(sum_ref)
            sq_ref[...] = jnp.zeros_like(sq_ref)

        bb = y_ref.shape[0]
        co = y_ref.shape[-1]
        c = x_ref.shape[-1]
        # Load once; slice the taps in f32 (layout-robust), but feed the MXU
        # bf16 operands for each tap dot (f32 accumulation).
        xp = x_ref[...].astype(jnp.float32)        # (bb, op+kp-1, oq+kq-1, c)
        acc = jnp.zeros((bb * op * oq, co), jnp.float32)
        t = 0
        for ip in range(kp):
            for iq in range(kq):
                tap = xp[:, ip:ip + op, iq:iq + oq, :].reshape(bb * op * oq, c)
                acc += jnp.dot(tap.astype(_BF16), w_ref[t],
                               preferred_element_type=jnp.float32)
                t += 1
        y_ref[...] = acc.reshape(bb, op, oq, co)
        sum_ref[...] += jnp.sum(acc, axis=0, keepdims=True)
        sq_ref[...] += jnp.sum(acc * acc, axis=0, keepdims=True)
    return kernel


def pallas_conv_stats(xp, w, *, kp, kq, op, oq):
    """xp: (B, op+kp-1, oq+kq-1, C) bf16 (already zero-padded on tap axes)
       w : (kp*kq, C, Co) bf16
       -> (y f32 (B, op, oq, Co), sum (1,Co), sumsq (1,Co))."""
    b, p, q, c = xp.shape
    co = w.shape[-1]
    bb = _pick_block(b, _BATCH_PREFS)
    return pl.pallas_call(
        _make_conv_stats_kernel(kp, kq, op, oq),
        out_shape=(jax.ShapeDtypeStruct((b, op, oq, co), jnp.float32),
                   jax.ShapeDtypeStruct((1, co), jnp.float32),
                   jax.ShapeDtypeStruct((1, co), jnp.float32)),
        grid=(b // bb,),
        in_specs=[pl.BlockSpec((bb, p, q, c), lambda i: (i, 0, 0, 0)),
                  pl.BlockSpec((kp * kq, c, co), lambda i: (0, 0, 0))],
        out_specs=(pl.BlockSpec((bb, op, oq, co), lambda i: (i, 0, 0, 0)),
                   pl.BlockSpec((1, co), lambda i: (0, 0)),
                   pl.BlockSpec((1, co), lambda i: (0, 0))),
        compiler_params=pltpu.CompilerParams(
            dimension_semantics=("arbitrary",)),
    )(xp, w)


# ----------------------------------------------------------------------------
# Kernel 3: lane-dense normalize + ReLU
# ----------------------------------------------------------------------------
def _bn_relu_kernel(y_ref, mean_ref, inv_ref, o_ref):
    o_ref[...] = jnp.maximum(
        (y_ref[...] - mean_ref[...]) * inv_ref[...], 0.0).astype(o_ref.dtype)


def pallas_bn_relu(y, mean, inv, out_dtype):
    m, c = y.shape
    tm = _pick_block(m, _ROW_PREFS)
    return pl.pallas_call(
        _bn_relu_kernel,
        out_shape=jax.ShapeDtypeStruct((m, c), out_dtype),
        grid=(m // tm,),
        in_specs=[pl.BlockSpec((tm, c), lambda i: (i, 0)),
                  pl.BlockSpec((1, c), lambda i: (0, 0)),
                  pl.BlockSpec((1, c), lambda i: (0, 0))],
        out_specs=pl.BlockSpec((tm, c), lambda i: (i, 0)),
        compiler_params=pltpu.CompilerParams(
            dimension_semantics=("parallel",)),
    )(y, mean, inv)


def batchnorm_relu_2d(y2d, s, sq, out_dtype):
    """Training-mode BatchNorm (batch stats, biased var, weight=1, bias=0)+ReLU."""
    m, c = y2d.shape
    mean = s / m
    var = sq / m - mean * mean
    inv = lax.rsqrt(var + _EPS)
    # lane-dense repack: (m, c) -> (m//r, r*c) so the output last dim is a
    # multiple of 128 (unmasked vst instead of masked partial stores).
    r = 128 // math.gcd(c, 128)
    if r > 1 and m % r == 0:
        out = pallas_bn_relu(y2d.reshape(m // r, r * c),
                             jnp.tile(mean, (1, r)), jnp.tile(inv, (1, r)),
                             out_dtype)
        return out.reshape(m, c)
    return pallas_bn_relu(y2d, mean, inv, out_dtype)


# ----------------------------------------------------------------------------
# Kernel 4: MaxPool3d(3, stride=1, pad=1), tiled (N, D) grid, separable max
# ----------------------------------------------------------------------------
def _maxpool_kernel(x0_ref, x1_ref, x2_ref, o_ref):
    h = o_ref.shape[2]
    w = o_ref.shape[3]
    # D-max across the 3 halo slices, then separable W-max and H-max:
    # 8 maximum ops instead of 26 full-volume maximums.
    xp = jnp.maximum(jnp.maximum(x0_ref[...], x1_ref[...]), x2_ref[...])
    m = jnp.maximum(jnp.maximum(xp[:, :, :, 0:w, :], xp[:, :, :, 1:w + 1, :]),
                    xp[:, :, :, 2:w + 2, :])
    m = jnp.maximum(jnp.maximum(m[:, :, 0:h, :, :], m[:, :, 1:h + 1, :, :]),
                    m[:, :, 2:h + 2, :, :])
    o_ref[...] = m


def pallas_maxpool3d(x):
    """MaxPool3d(kernel=3, stride=1, padding=1) on (N, D, H, W, C)."""
    n, d, h, w, c = x.shape
    xp = jnp.pad(x, ((0, 0), (1, 1), (1, 1), (1, 1), (0, 0)),
                 constant_values=-jnp.inf)

    def dspec(kd):
        return pl.BlockSpec((1, 1, h + 2, w + 2, c),
                            lambda i, j, kd=kd: (i, j + kd, 0, 0, 0))

    return pl.pallas_call(
        _maxpool_kernel,
        out_shape=jax.ShapeDtypeStruct(x.shape, x.dtype),
        grid=(n, d),
        in_specs=[dspec(0), dspec(1), dspec(2)],
        out_specs=pl.BlockSpec((1, 1, h, w, c), lambda i, j: (i, j, 0, 0, 0)),
        compiler_params=pltpu.CompilerParams(
            dimension_semantics=("parallel", "parallel")),
    )(xp, xp, xp)


# ----------------------------------------------------------------------------
# SepInception forward (Pallas)
# ----------------------------------------------------------------------------
def sep_inception_forward(x_ncdhw, p):
    n, cin, d, h, w = x_ncdhw.shape
    x = jnp.transpose(x_ncdhw, (0, 2, 3, 4, 1))           # (N, D, H, W, C) f32
    m = n * d * h * w
    x_bf = x.reshape(m, cin).astype(_BF16)

    c0 = p['b0_w'].shape[-1]
    c1a = p['b1_w0'].shape[-1]
    c2a = p['b2_w0'].shape[-1]
    c3 = p['b3_w'].shape[-1]

    # ---- branch 0/1/2 stems: one fused 1x1x1 conv over the shared input ----
    w012 = jnp.concatenate(
        [p['b0_w'].reshape(cin, c0),
         p['b1_w0'].reshape(cin, c1a),
         p['b2_w0'].reshape(cin, c2a)], axis=1).astype(_BF16)
    y, s, sq = pallas_matmul_stats(x_bf, w012)
    yn = batchnorm_relu_2d(y, s, sq, _BF16)               # (M, c0+c1a+c2a) bf16
    x0 = yn[:, :c0].astype(jnp.float32).reshape(n, d, h, w, c0)
    a1 = yn[:, c0:c0 + c1a].reshape(n, d, h, w, c1a)
    a2 = yn[:, c0 + c1a:].reshape(n, d, h, w, c2a)

    def stconv(a, ws, wt):
        # STConv3d: (1,3,3) conv + BN + ReLU, then (3,1,1) conv + BN + ReLU
        nb, dd, hh, ww, ci = a.shape
        co = ws.shape[-1]
        # spatial conv, pad (0,1,1): pad H/W once, tap-accumulate in-kernel
        ap = jnp.pad(a, ((0, 0), (0, 0), (1, 1), (1, 1), (0, 0)))
        ap = ap.reshape(nb * dd, hh + 2, ww + 2, ci)
        ys, ss, sqs = pallas_conv_stats(
            ap, ws.reshape(9, ci, co).astype(_BF16), kp=3, kq=3, op=hh, oq=ww)
        yn_s = batchnorm_relu_2d(ys.reshape(-1, co), ss, sqs, _BF16)
        yn_s = yn_s.reshape(nb, dd, hh, ww, co)
        # temporal conv, pad (1,0,0): pad D once, taps over D only
        tp = jnp.pad(yn_s, ((0, 0), (1, 1), (0, 0), (0, 0), (0, 0)))
        tp = tp.reshape(nb, dd + 2, hh * ww, co)
        yt, st, sqt = pallas_conv_stats(
            tp, wt.reshape(3, co, co).astype(_BF16), kp=3, kq=1, op=dd, oq=hh * ww)
        yn_t = batchnorm_relu_2d(yt.reshape(-1, co), st, sqt, jnp.float32)
        return yn_t.reshape(nb, dd, hh, ww, co)

    x1 = stconv(a1, p['b1_ws'], p['b1_wt'])
    x2 = stconv(a2, p['b2_ws'], p['b2_wt'])

    # ---- branch 3: MaxPool3d + 1x1x1 conv + BN + ReLU ----
    mp = pallas_maxpool3d(x)                              # f32 (N,D,H,W,Cin)
    y3, s3, sq3 = pallas_matmul_stats(mp.reshape(m, cin).astype(_BF16),
                                      p['b3_w'].reshape(cin, c3).astype(_BF16))
    x3 = batchnorm_relu_2d(y3, s3, sq3, jnp.float32).reshape(n, d, h, w, c3)

    out = jnp.concatenate([x0, x1, x2, x3], axis=-1)
    return jnp.transpose(out, (0, 4, 1, 2, 3))            # back to NCDHW


# ----------------------------------------------------------------------------
# Parameters (deterministic, matching __init__ semantics; DHWIO layout)
# ----------------------------------------------------------------------------
def init_params(key, in_planes, out_planes):
    c0a, c1a, c1b, c2a, c2b, c3b = out_planes
    k1, k2 = jax.random.split(key)

    def st_weights(k, ci, co):
        ka, kb = jax.random.split(k)
        ws = 0.01 * jax.random.normal(ka, (1, 3, 3, ci, co), jnp.float32)
        wt = 0.01 * jax.random.normal(kb, (3, 1, 1, co, co), jnp.float32)
        return ws, wt

    b1_ws, b1_wt = st_weights(k1, c1a, c1b)
    b2_ws, b2_wt = st_weights(k2, c2a, c2b)
    return dict(
        b0_w=jnp.ones((1, 1, 1, in_planes, c0a), jnp.float32),  # conv.weight.fill_(1)
        b1_w0=jnp.ones((1, 1, 1, in_planes, c1a), jnp.float32),
        b1_ws=b1_ws, b1_wt=b1_wt,
        b2_w0=jnp.ones((1, 1, 1, in_planes, c2a), jnp.float32),
        b2_ws=b2_ws, b2_wt=b2_wt,
        b3_w=jnp.ones((1, 1, 1, in_planes, c3b), jnp.float32),
    )


# ----------------------------------------------------------------------------
# Pure-JAX f32 reference (for correctness check)
# ----------------------------------------------------------------------------
def ref_sep_inception(x_ncdhw, p):
    x = jnp.transpose(x_ncdhw, (0, 2, 3, 4, 1))

    def conv(inp, w, pad):
        return lax.conv_general_dilated(
            inp, w, window_strides=(1, 1, 1), padding=pad,
            dimension_numbers=('NDHWC', 'DHWIO', 'NDHWC'))

    def bn_relu(y):
        mean = jnp.mean(y, axis=(0, 1, 2, 3), keepdims=True)
        var = jnp.mean((y - mean) ** 2, axis=(0, 1, 2, 3), keepdims=True)
        return jnp.maximum((y - mean) * lax.rsqrt(var + _EPS), 0.0)

    def basic(inp, w):
        return bn_relu(conv(inp, w, [(0, 0)] * 3))

    def stconv(inp, ws, wt):
        y = bn_relu(conv(inp, ws, [(0, 0), (1, 1), (1, 1)]))
        return bn_relu(conv(y, wt, [(1, 1), (0, 0), (0, 0)]))

    mp = lax.reduce_window(x, -jnp.inf, lax.max, (1, 3, 3, 3, 1),
                           (1, 1, 1, 1, 1),
                           [(0, 0), (1, 1), (1, 1), (1, 1), (0, 0)])
    x0 = basic(x, p['b0_w'])
    x1 = stconv(basic(x, p['b1_w0']), p['b1_ws'], p['b1_wt'])
    x2 = stconv(basic(x, p['b2_w0']), p['b2_ws'], p['b2_wt'])
    x3 = basic(mp, p['b3_w'])
    out = jnp.concatenate([x0, x1, x2, x3], axis=-1)
    return jnp.transpose(out, (0, 4, 1, 2, 3))


# ----------------------------------------------------------------------------
if __name__ == "__main__":
    key = jax.random.PRNGKey(0)
    kx, kp = jax.random.split(key)

    in_planes = 4
    out_planes = [4, 4, 8, 4, 8, 4]     # [0_0a, 1_0a, 1_0b, 2_0a, 2_0b, 3_0b]
    N, D, H, W = 2, 4, 8, 8

    x = jax.random.normal(kx, (N, in_planes, D, H, W), jnp.float32)  # NCDHW
    params = init_params(kp, in_planes, out_planes)

    out = jax.jit(sep_inception_forward)(x, params)
    out = jax.block_until_ready(out)

    out_channels = out_planes[0] + out_planes[2] + out_planes[4] + out_planes[5]
    assert out.shape == (N, out_channels, D, H, W), out.shape

    ref = ref_sep_inception(x, params)
    max_err = float(jnp.max(jnp.abs(out - ref)))
    # matmul operands run in bf16 on the MXU (f32 accumulation) while the
    # reference is pure f32; through two cascaded BatchNorms this gives a few
    # bf16 ulps of drift on O(1) normalized values.
    assert max_err < 2e-1, f"max abs error {max_err}"

    print("KERNEL_OK")
</pallas_src>

<mosaic_0001>
module attributes {stable_mosaic.version = 11 : i64} {
  func.func @_maxpool_kernel(%arg0: i32, %arg1: i32, %arg2: memref<1x1x10x10x4xf32, #tpu.memory_space<vmem>>, %arg3: memref<1x1x10x10x4xf32, #tpu.memory_space<vmem>>, %arg4: memref<1x1x10x10x4xf32, #tpu.memory_space<vmem>>, %arg5: memref<1x1x8x8x4xf32, #tpu.memory_space<vmem>>) attributes {dimension_semantics = [#tpu.dimension_semantics<parallel>, #tpu.dimension_semantics<parallel>], iteration_bounds = array<i64: 2, 4>, scalar_prefetch = 0 : i64, scratch_operands = 0 : i64, tpu.core_type = #tpu.core_type<tc>, window_params = [{transform_indices = @transform_0, window_bounds = array<i64: 1, 1, 10, 10, 4>}, {transform_indices = @transform_1, window_bounds = array<i64: 1, 1, 10, 10, 4>}, {transform_indices = @transform_2, window_bounds = array<i64: 1, 1, 10, 10, 4>}, {transform_indices = @transform_3, window_bounds = array<i64: 1, 1, 8, 8, 4>}]} {
    %c0 = arith.constant 0 : index
    %c0_0 = arith.constant 0 : index
    %c0_1 = arith.constant 0 : index
    %c0_2 = arith.constant 0 : index
    %c0_3 = arith.constant 0 : index
    %0 = vector.load %arg2[%c0, %c0_0, %c0_1, %c0_2, %c0_3] : memref<1x1x10x10x4xf32, #tpu.memory_space<vmem>>, vector<1x1x10x10x4xf32>
    %c0_4 = arith.constant 0 : index
    %c0_5 = arith.constant 0 : index
    %c0_6 = arith.constant 0 : index
    %c0_7 = arith.constant 0 : index
    %c0_8 = arith.constant 0 : index
    %1 = vector.load %arg3[%c0_4, %c0_5, %c0_6, %c0_7, %c0_8] : memref<1x1x10x10x4xf32, #tpu.memory_space<vmem>>, vector<1x1x10x10x4xf32>
    %2 = arith.maximumf %0, %1 : vector<1x1x10x10x4xf32>
    %c0_9 = arith.constant 0 : index
    %c0_10 = arith.constant 0 : index
    %c0_11 = arith.constant 0 : index
    %c0_12 = arith.constant 0 : index
    %c0_13 = arith.constant 0 : index
    %3 = vector.load %arg4[%c0_9, %c0_10, %c0_11, %c0_12, %c0_13] : memref<1x1x10x10x4xf32, #tpu.memory_space<vmem>>, vector<1x1x10x10x4xf32>
    %4 = arith.maximumf %2, %3 : vector<1x1x10x10x4xf32>
    %5 = vector.extract_strided_slice %4 {offsets = [0, 0, 0, 0, 0], sizes = [1, 1, 10, 8, 4], strides = [1, 1, 1, 1, 1]} : vector<1x1x10x10x4xf32> to vector<1x1x10x8x4xf32>
    %6 = vector.extract_strided_slice %4 {offsets = [0, 0, 0, 1, 0], sizes = [1, 1, 10, 8, 4], strides = [1, 1, 1, 1, 1]} : vector<1x1x10x10x4xf32> to vector<1x1x10x8x4xf32>
    %7 = arith.maximumf %5, %6 : vector<1x1x10x8x4xf32>
    %8 = vector.extract_strided_slice %4 {offsets = [0, 0, 0, 2, 0], sizes = [1, 1, 10, 8, 4], strides = [1, 1, 1, 1, 1]} : vector<1x1x10x10x4xf32> to vector<1x1x10x8x4xf32>
    %9 = arith.maximumf %7, %8 : vector<1x1x10x8x4xf32>
    %10 = vector.extract_strided_slice %9 {offsets = [0, 0, 0, 0, 0], sizes = [1, 1, 8, 8, 4], strides = [1, 1, 1, 1, 1]} : vector<1x1x10x8x4xf32> to vector<1x1x8x8x4xf32>
    %11 = vector.extract_strided_slice %9 {offsets = [0, 0, 1, 0, 0], sizes = [1, 1, 8, 8, 4], strides = [1, 1, 1, 1, 1]} : vector<1x1x10x8x4xf32> to vector<1x1x8x8x4xf32>
    %12 = arith.maximumf %10, %11 : vector<1x1x8x8x4xf32>
    %13 = vector.extract_strided_slice %9 {offsets = [0, 0, 2, 0, 0], sizes = [1, 1, 8, 8, 4], strides = [1, 1, 1, 1, 1]} : vector<1x1x10x8x4xf32> to vector<1x1x8x8x4xf32>
    %14 = arith.maximumf %12, %13 : vector<1x1x8x8x4xf32>
    %c0_14 = arith.constant 0 : index
    %c0_15 = arith.constant 0 : index
    %c0_16 = arith.constant 0 : index
    %c0_17 = arith.constant 0 : index
    %c0_18 = arith.constant 0 : index
    %15 = vector.load %arg5[%c0_14, %c0_15, %c0_16, %c0_17, %c0_18] : memref<1x1x8x8x4xf32, #tpu.memory_space<vmem>>, vector<1x1x8x8x4xf32>
    tpu.vector_store %arg5[%c0_14, %c0_15, %c0_16, %c0_17, %c0_18], %14 {strides = array<i32>} : memref<1x1x8x8x4xf32, #tpu.memory_space<vmem>>, vector<1x1x8x8x4xf32>,
    return
  }
  func.func @transform_0(%arg0: i32, %arg1: i32) -> (i32, i32, i32, i32, i32) {
    %c0_i32 = arith.constant 0 : i32
    %0 = arith.addi %arg1, %c0_i32 : i32
    %c0_i32_0 = arith.constant 0 : i32
    %c0_i32_1 = arith.constant 0 : i32
    %c0_i32_2 = arith.constant 0 : i32
    %c0_i32_3 = arith.constant 0 : i32
    return %arg0, %0, %c0_i32_0, %c0_i32_1, %c0_i32_2 : i32, i32, i32, i32, i32
  }
  func.func @transform_1(%arg0: i32, %arg1: i32) -> (i32, i32, i32, i32, i32) {
    %c1_i32 = arith.constant 1 : i32
    %0 = arith.addi %arg1, %c1_i32 : i32
    %c0_i32 = arith.constant 0 : i32
    %c0_i32_0 = arith.constant 0 : i32
    %c0_i32_1 = arith.constant 0 : i32
    %c0_i32_2 = arith.constant 0 : i32
    return %arg0, %0, %c0_i32, %c0_i32_0, %c0_i32_1 : i32, i32, i32, i32, i32
  }
  func.func @transform_2(%arg0: i32, %arg1: i32) -> (i32, i32, i32, i32, i32) {
    %c2_i32 = arith.constant 2 : i32
    %0 = arith.addi %arg1, %c2_i32 : i32
    %c0_i32 = arith.constant 0 : i32
    %c0_i32_0 = arith.constant 0 : i32
    %c0_i32_1 = arith.constant 0 : i32
    %c0_i32_2 = arith.constant 0 : i32
    return %arg0, %0, %c0_i32, %c0_i32_0, %c0_i32_1 : i32, i32, i32, i32, i32
  }
  func.func @transform_3(%arg0: i32, %arg1: i32) -> (i32, i32, i32, i32, i32) {
    %c0_i32 = arith.constant 0 : i32
    %c0_i32_0 = arith.constant 0 : i32
    %c0_i32_1 = arith.constant 0 : i32
    %c0_i32_2 = arith.constant 0 : i32
    return %arg0, %arg1, %c0_i32, %c0_i32_0, %c0_i32_1 : i32, i32, i32, i32, i32
  }
}

module attributes {stable_mosaic.version = 11 : i64} {
  func.func @_matmul_stats_kernel(%arg0: i32, %arg1: memref<256x4xbf16, #tpu.memory_space<vmem>>, %arg2: memref<4x4xbf16, #tpu.memory_space<vmem>>, %arg3: memref<256x4xf32, #tpu.memory_space<vmem>>, %arg4: memref<1x4xf32, #tpu.memory_space<vmem>>, %arg5: memref<1x4xf32, #tpu.memory_space<vmem>>) attributes {dimension_semantics = [#tpu.dimension_semantics<arbitrary>], iteration_bounds = array<i64: 2>, scalar_prefetch = 0 : i64, scratch_operands = 0 : i64, tpu.core_type = #tpu.core_type<tc>, window_params = [{transform_indices = @transform_0, window_bounds = array<i64: 256, 4>}, {pipeline_mode = #tpu.pipeline_mode<synchronous>, transform_indices = @transform_1, window_bounds = array<i64: 4, 4>}, {transform_indices = @transform_2, window_bounds = array<i64: 256, 4>}, {pipeline_mode = #tpu.pipeline_mode<synchronous>, transform_indices = @transform_3, window_bounds = array<i64: 1, 4>}, {pipeline_mode = #tpu.pipeline_mode<synchronous>, transform_indices = @transform_4, window_bounds = array<i64: 1, 4>}]} {
    %c0_i32 = arith.constant 0 : i32
    %0 = arith.cmpi eq, %arg0, %c0_i32 : i32
    %1 = arith.extui %0 : i1 to i32
    %c0_i32_0 = arith.constant 0 : i32
    %2 = arith.cmpi ne, %1, %c0_i32_0 : i32
    scf.if %2 {
      %cst_16 = arith.constant 0.000000e+00 : f32
      %18 = vector.broadcast %cst_16 : f32 to vector<1x4xf32>
      %c0_17 = arith.constant 0 : index
      %c0_18 = arith.constant 0 : index
      %19 = vector.load %arg4[%c0_17, %c0_18] : memref<1x4xf32, #tpu.memory_space<vmem>>, vector<1x4xf32>
      tpu.vector_store %arg4[%c0_17, %c0_18], %18 {strides = array<i32>} : memref<1x4xf32, #tpu.memory_space<vmem>>, vector<1x4xf32>,
      %cst_19 = arith.constant 0.000000e+00 : f32
      %20 = vector.broadcast %cst_19 : f32 to vector<1x4xf32>
      %c0_20 = arith.constant 0 : index
      %c0_21 = arith.constant 0 : index
      %21 = vector.load %arg5[%c0_20, %c0_21] : memref<1x4xf32, #tpu.memory_space<vmem>>, vector<1x4xf32>
      tpu.vector_store %arg5[%c0_20, %c0_21], %20 {strides = array<i32>} : memref<1x4xf32, #tpu.memory_space<vmem>>, vector<1x4xf32>,
    } else {
    }
    %c0 = arith.constant 0 : index
    %c0_1 = arith.constant 0 : index
    %3 = vector.load %arg1[%c0, %c0_1] : memref<256x4xbf16, #tpu.memory_space<vmem>>, vector<256x4xbf16>
    %c0_2 = arith.constant 0 : index
    %c0_3 = arith.constant 0 : index
    %4 = vector.load %arg2[%c0_2, %c0_3] : memref<4x4xbf16, #tpu.memory_space<vmem>>, vector<4x4xbf16>
    %cst = arith.constant dense<0.000000e+00> : vector<256x4xf32>
    %5 = tpu.matmul %3, %4, %cst {dimension_numbers = #tpu.dot_dimension_numbers<[1], [0], [0], [1], [0, 0, 1, 1], [], []>} : vector<256x4xbf16>, vector<4x4xbf16>, vector<256x4xf32> -> vector<256x4xf32>
    %c0_4 = arith.constant 0 : index
    %c0_5 = arith.constant 0 : index
    %6 = vector.load %arg3[%c0_4, %c0_5] : memref<256x4xf32, #tpu.memory_space<vmem>>, vector<256x4xf32>
    tpu.vector_store %arg3[%c0_4, %c0_5], %5 {strides = array<i32>} : memref<256x4xf32, #tpu.memory_space<vmem>>, vector<256x4xf32>,
    %c0_6 = arith.constant 0 : index
    %c0_7 = arith.constant 0 : index
    %7 = vector.load %arg4[%c0_6, %c0_7] : memref<1x4xf32, #tpu.memory_space<vmem>>, vector<1x4xf32>
    %cst_8 = arith.constant dense<0.000000e+00> : vector<4xf32>
    %8 = vector.multi_reduction <add>, %5, %cst_8 [0] : vector<256x4xf32> to vector<4xf32>
    %9 = vector.shape_cast %8 : vector<4xf32> to vector<1x4xf32>
    %10 = arith.addf %7, %9 : vector<1x4xf32>
    %c0_9 = arith.constant 0 : index
    %c0_10 = arith.constant 0 : index
    %11 = vector.load %arg4[%c0_9, %c0_10] : memref<1x4xf32, #tpu.memory_space<vmem>>, vector<1x4xf32>
    tpu.vector_store %arg4[%c0_9, %c0_10], %10 {strides = array<i32>} : memref<1x4xf32, #tpu.memory_space<vmem>>, vector<1x4xf32>,
    %c0_11 = arith.constant 0 : index
    %c0_12 = arith.constant 0 : index
    %12 = vector.load %arg5[%c0_11, %c0_12] : memref<1x4xf32, #tpu.memory_space<vmem>>, vector<1x4xf32>
    %13 = arith.mulf %5, %5 : vector<256x4xf32>
    %cst_13 = arith.constant dense<0.000000e+00> : vector<4xf32>
    %14 = vector.multi_reduction <add>, %13, %cst_13 [0] : vector<256x4xf32> to vector<4xf32>
    %15 = vector.shape_cast %14 : vector<4xf32> to vector<1x4xf32>
    %16 = arith.addf %12, %15 : vector<1x4xf32>
    %c0_14 = arith.constant 0 : index
    %c0_15 = arith.constant 0 : index
    %17 = vector.load %arg5[%c0_14, %c0_15] : memref<1x4xf32, #tpu.memory_space<vmem>>, vector<1x4xf32>
    tpu.vector_store %arg5[%c0_14, %c0_15], %16 {strides = array<i32>} : memref<1x4xf32, #tpu.memory_space<vmem>>, vector<1x4xf32>,
    return
  }
  func.func @transform_0(%arg0: i32) -> (i32, i32) {
    %c0_i32 = arith.constant 0 : i32
    %c0_i32_0 = arith.constant 0 : i32
    return %arg0, %c0_i32 : i32, i32
  }
  func.func @transform_1(%arg0: i32) -> (i32, i32) {
    %c0_i32 = arith.constant 0 : i32
    %c0_i32_0 = arith.constant 0 : i32
    %c0_i32_1 = arith.constant 0 : i32
    return %c0_i32, %c0_i32_0 : i32, i32
  }
  func.func @transform_2(%arg0: i32) -> (i32, i32) {
    %c0_i32 = arith.constant 0 : i32
    %c0_i32_0 = arith.constant 0 : i32
    return %arg0, %c0_i32 : i32, i32
  }
  func.func @transform_3(%arg0: i32) -> (i32, i32) {
    %c0_i32 = arith.constant 0 : i32
    %c0_i32_0 = arith.constant 0 : i32
    %c0_i32_1 = arith.constant 0 : i32
    return %c0_i32, %c0_i32_0 : i32, i32
  }
  func.func @transform_4(%arg0: i32) -> (i32, i32) {
    %c0_i32 = arith.constant 0 : i32
    %c0_i32_0 = arith.constant 0 : i32
    %c0_i32_1 = arith.constant 0 : i32
    return %c0_i32, %c0_i32_0 : i32, i32
  }
}

module attributes {stable_mosaic.version = 11 : i64} {
  func.func @_bn_relu_kernel(%arg0: i32, %arg1: memref<8x128xf32, #tpu.memory_space<vmem>>, %arg2: memref<1x128xf32, #tpu.memory_space<vmem>>, %arg3: memref<1x128xf32, #tpu.memory_space<vmem>>, %arg4: memref<8x128xf32, #tpu.memory_space<vmem>>) attributes {dimension_semantics = [#tpu.dimension_semantics<parallel>], iteration_bounds = array<i64: 2>, scalar_prefetch = 0 : i64, scratch_operands = 0 : i64, tpu.core_type = #tpu.core_type<tc>, window_params = [{transform_indices = @transform_0, window_bounds = array<i64: 8, 128>}, {pipeline_mode = #tpu.pipeline_mode<synchronous>, transform_indices = @transform_1, window_bounds = array<i64: 1, 128>}, {pipeline_mode = #tpu.pipeline_mode<synchronous>, transform_indices = @transform_2, window_bounds = array<i64: 1, 128>}, {transform_indices = @transform_3, window_bounds = array<i64: 8, 128>}]} {
    %c0 = arith.constant 0 : index
    %c0_0 = arith.constant 0 : index
    %0 = vector.load %arg1[%c0, %c0_0] : memref<8x128xf32, #tpu.memory_space<vmem>>, vector<8x128xf32>
    %c0_1 = arith.constant 0 : index
    %c0_2 = arith.constant 0 : index
    %1 = vector.load %arg2[%c0_1, %c0_2] : memref<1x128xf32, #tpu.memory_space<vmem>>, vector<1x128xf32>
    %2 = vector.broadcast %1 : vector<1x128xf32> to vector<8x128xf32>
    %3 = arith.subf %0, %2 : vector<8x128xf32>
    %c0_3 = arith.constant 0 : index
    %c0_4 = arith.constant 0 : index
    %4 = vector.load %arg3[%c0_3, %c0_4] : memref<1x128xf32, #tpu.memory_space<vmem>>, vector<1x128xf32>
    %5 = vector.broadcast %4 : vector<1x128xf32> to vector<8x128xf32>
    %6 = arith.mulf %3, %5 : vector<8x128xf32>
    %cst = arith.constant 0.000000e+00 : f32
    %7 = vector.broadcast %cst : f32 to vector<8x128xf32>
    %8 = arith.maximumf %6, %7 : vector<8x128xf32>
    %c0_5 = arith.constant 0 : index
    %c0_6 = arith.constant 0 : index
    %9 = vector.load %arg4[%c0_5, %c0_6] : memref<8x128xf32, #tpu.memory_space<vmem>>, vector<8x128xf32>
    tpu.vector_store %arg4[%c0_5, %c0_6], %8 {strides = array<i32>} : memref<8x128xf32, #tpu.memory_space<vmem>>, vector<8x128xf32>,
    return
  }
  func.func @transform_0(%arg0: i32) -> (i32, i32) {
    %c0_i32 = arith.constant 0 : i32
    %c0_i32_0 = arith.constant 0 : i32
    return %arg0, %c0_i32 : i32, i32
  }
  func.func @transform_1(%arg0: i32) -> (i32, i32) {
    %c0_i32 = arith.constant 0 : i32
    %c0_i32_0 = arith.constant 0 : i32
    %c0_i32_1 = arith.constant 0 : i32
    return %c0_i32, %c0_i32_0 : i32, i32
  }
  func.func @transform_2(%arg0: i32) -> (i32, i32) {
    %c0_i32 = arith.constant 0 : i32
    %c0_i32_0 = arith.constant 0 : i32
    %c0_i32_1 = arith.constant 0 : i32
    return %c0_i32, %c0_i32_0 : i32, i32
  }
  func.func @transform_3(%arg0: i32) -> (i32, i32) {
    %c0_i32 = arith.constant 0 : i32
    %c0_i32_0 = arith.constant 0 : i32
    return %arg0, %c0_i32 : i32, i32
  }
}

module attributes {stable_mosaic.version = 11 : i64} {
  func.func @_matmul_stats_kernel(%arg0: i32, %arg1: memref<256x4xbf16, #tpu.memory_space<vmem>>, %arg2: memref<4x12xbf16, #tpu.memory_space<vmem>>, %arg3: memref<256x12xf32, #tpu.memory_space<vmem>>, %arg4: memref<1x12xf32, #tpu.memory_space<vmem>>, %arg5: memref<1x12xf32, #tpu.memory_space<vmem>>) attributes {dimension_semantics = [#tpu.dimension_semantics<arbitrary>], iteration_bounds = array<i64: 2>, scalar_prefetch = 0 : i64, scratch_operands = 0 : i64, tpu.core_type = #tpu.core_type<tc>, window_params = [{transform_indices = @transform_0, window_bounds = array<i64: 256, 4>}, {pipeline_mode = #tpu.pipeline_mode<synchronous>, transform_indices = @transform_1, window_bounds = array<i64: 4, 12>}, {transform_indices = @transform_2, window_bounds = array<i64: 256, 12>}, {pipeline_mode = #tpu.pipeline_mode<synchronous>, transform_indices = @transform_3, window_bounds = array<i64: 1, 12>}, {pipeline_mode = #tpu.pipeline_mode<synchronous>, transform_indices = @transform_4, window_bounds = array<i64: 1, 12>}]} {
    %c0_i32 = arith.constant 0 : i32
    %0 = arith.cmpi eq, %arg0, %c0_i32 : i32
    %1 = arith.extui %0 : i1 to i32
    %c0_i32_0 = arith.constant 0 : i32
    %2 = arith.cmpi ne, %1, %c0_i32_0 : i32
    scf.if %2 {
      %cst_16 = arith.constant 0.000000e+00 : f32
      %18 = vector.broadcast %cst_16 : f32 to vector<1x12xf32>
      %c0_17 = arith.constant 0 : index
      %c0_18 = arith.constant 0 : index
      %19 = vector.load %arg4[%c0_17, %c0_18] : memref<1x12xf32, #tpu.memory_space<vmem>>, vector<1x12xf32>
      tpu.vector_store %arg4[%c0_17, %c0_18], %18 {strides = array<i32>} : memref<1x12xf32, #tpu.memory_space<vmem>>, vector<1x12xf32>,
      %cst_19 = arith.constant 0.000000e+00 : f32
      %20 = vector.broadcast %cst_19 : f32 to vector<1x12xf32>
      %c0_20 = arith.constant 0 : index
      %c0_21 = arith.constant 0 : index
      %21 = vector.load %arg5[%c0_20, %c0_21] : memref<1x12xf32, #tpu.memory_space<vmem>>, vector<1x12xf32>
      tpu.vector_store %arg5[%c0_20, %c0_21], %20 {strides = array<i32>} : memref<1x12xf32, #tpu.memory_space<vmem>>, vector<1x12xf32>,
    } else {
    }
    %c0 = arith.constant 0 : index
    %c0_1 = arith.constant 0 : index
    %3 = vector.load %arg1[%c0, %c0_1] : memref<256x4xbf16, #tpu.memory_space<vmem>>, vector<256x4xbf16>
    %c0_2 = arith.constant 0 : index
    %c0_3 = arith.constant 0 : index
    %4 = vector.load %arg2[%c0_2, %c0_3] : memref<4x12xbf16, #tpu.memory_space<vmem>>, vector<4x12xbf16>
    %cst = arith.constant dense<0.000000e+00> : vector<256x12xf32>
    %5 = tpu.matmul %3, %4, %cst {dimension_numbers = #tpu.dot_dimension_numbers<[1], [0], [0], [1], [0, 0, 1, 1], [], []>} : vector<256x4xbf16>, vector<4x12xbf16>, vector<256x12xf32> -> vector<256x12xf32>
    %c0_4 = arith.constant 0 : index
    %c0_5 = arith.constant 0 : index
    %6 = vector.load %arg3[%c0_4, %c0_5] : memref<256x12xf32, #tpu.memory_space<vmem>>, vector<256x12xf32>
    tpu.vector_store %arg3[%c0_4, %c0_5], %5 {strides = array<i32>} : memref<256x12xf32, #tpu.memory_space<vmem>>, vector<256x12xf32>,
    %c0_6 = arith.constant 0 : index
    %c0_7 = arith.constant 0 : index
    %7 = vector.load %arg4[%c0_6, %c0_7] : memref<1x12xf32, #tpu.memory_space<vmem>>, vector<1x12xf32>
    %cst_8 = arith.constant dense<0.000000e+00> : vector<12xf32>
    %8 = vector.multi_reduction <add>, %5, %cst_8 [0] : vector<256x12xf32> to vector<12xf32>
    %9 = vector.shape_cast %8 : vector<12xf32> to vector<1x12xf32>
    %10 = arith.addf %7, %9 : vector<1x12xf32>
    %c0_9 = arith.constant 0 : index
    %c0_10 = arith.constant 0 : index
    %11 = vector.load %arg4[%c0_9, %c0_10] : memref<1x12xf32, #tpu.memory_space<vmem>>, vector<1x12xf32>
    tpu.vector_store %arg4[%c0_9, %c0_10], %10 {strides = array<i32>} : memref<1x12xf32, #tpu.memory_space<vmem>>, vector<1x12xf32>,
    %c0_11 = arith.constant 0 : index
    %c0_12 = arith.constant 0 : index
    %12 = vector.load %arg5[%c0_11, %c0_12] : memref<1x12xf32, #tpu.memory_space<vmem>>, vector<1x12xf32>
    %13 = arith.mulf %5, %5 : vector<256x12xf32>
    %cst_13 = arith.constant dense<0.000000e+00> : vector<12xf32>
    %14 = vector.multi_reduction <add>, %13, %cst_13 [0] : vector<256x12xf32> to vector<12xf32>
    %15 = vector.shape_cast %14 : vector<12xf32> to vector<1x12xf32>
    %16 = arith.addf %12, %15 : vector<1x12xf32>
    %c0_14 = arith.constant 0 : index
    %c0_15 = arith.constant 0 : index
    %17 = vector.load %arg5[%c0_14, %c0_15] : memref<1x12xf32, #tpu.memory_space<vmem>>, vector<1x12xf32>
    tpu.vector_store %arg5[%c0_14, %c0_15], %16 {strides = array<i32>} : memref<1x12xf32, #tpu.memory_space<vmem>>, vector<1x12xf32>,
    return
  }
  func.func @transform_0(%arg0: i32) -> (i32, i32) {
    %c0_i32 = arith.constant 0 : i32
    %c0_i32_0 = arith.constant 0 : i32
    return %arg0, %c0_i32 : i32, i32
  }
  func.func @transform_1(%arg0: i32) -> (i32, i32) {
    %c0_i32 = arith.constant 0 : i32
    %c0_i32_0 = arith.constant 0 : i32
    %c0_i32_1 = arith.constant 0 : i32
    return %c0_i32, %c0_i32_0 : i32, i32
  }
  func.func @transform_2(%arg0: i32) -> (i32, i32) {
    %c0_i32 = arith.constant 0 : i32
    %c0_i32_0 = arith.constant 0 : i32
    return %arg0, %c0_i32 : i32, i32
  }
  func.func @transform_3(%arg0: i32) -> (i32, i32) {
    %c0_i32 = arith.constant 0 : i32
    %c0_i32_0 = arith.constant 0 : i32
    %c0_i32_1 = arith.constant 0 : i32
    return %c0_i32, %c0_i32_0 : i32, i32
  }
  func.func @transform_4(%arg0: i32) -> (i32, i32) {
    %c0_i32 = arith.constant 0 : i32
    %c0_i32_0 = arith.constant 0 : i32
    %c0_i32_1 = arith.constant 0 : i32
    return %c0_i32, %c0_i32_0 : i32, i32
  }
}

module attributes {stable_mosaic.version = 11 : i64} {
  func.func @_bn_relu_kernel(%arg0: i32, %arg1: memref<8x384xf32, #tpu.memory_space<vmem>>, %arg2: memref<1x384xf32, #tpu.memory_space<vmem>>, %arg3: memref<1x384xf32, #tpu.memory_space<vmem>>, %arg4: memref<8x384xbf16, #tpu.memory_space<vmem>>) attributes {dimension_semantics = [#tpu.dimension_semantics<parallel>], iteration_bounds = array<i64: 2>, scalar_prefetch = 0 : i64, scratch_operands = 0 : i64, tpu.core_type = #tpu.core_type<tc>, window_params = [{transform_indices = @transform_0, window_bounds = array<i64: 8, 384>}, {pipeline_mode = #tpu.pipeline_mode<synchronous>, transform_indices = @transform_1, window_bounds = array<i64: 1, 384>}, {pipeline_mode = #tpu.pipeline_mode<synchronous>, transform_indices = @transform_2, window_bounds = array<i64: 1, 384>}, {transform_indices = @transform_3, window_bounds = array<i64: 8, 384>}]} {
    %c0 = arith.constant 0 : index
    %c0_0 = arith.constant 0 : index
    %0 = vector.load %arg1[%c0, %c0_0] : memref<8x384xf32, #tpu.memory_space<vmem>>, vector<8x384xf32>
    %c0_1 = arith.constant 0 : index
    %c0_2 = arith.constant 0 : index
    %1 = vector.load %arg2[%c0_1, %c0_2] : memref<1x384xf32, #tpu.memory_space<vmem>>, vector<1x384xf32>
    %2 = vector.broadcast %1 : vector<1x384xf32> to vector<8x384xf32>
    %3 = arith.subf %0, %2 : vector<8x384xf32>
    %c0_3 = arith.constant 0 : index
    %c0_4 = arith.constant 0 : index
    %4 = vector.load %arg3[%c0_3, %c0_4] : memref<1x384xf32, #tpu.memory_space<vmem>>, vector<1x384xf32>
    %5 = vector.broadcast %4 : vector<1x384xf32> to vector<8x384xf32>
    %6 = arith.mulf %3, %5 : vector<8x384xf32>
    %cst = arith.constant 0.000000e+00 : f32
    %7 = vector.broadcast %cst : f32 to vector<8x384xf32>
    %8 = arith.maximumf %6, %7 : vector<8x384xf32>
    %9 = arith.truncf %8 : vector<8x384xf32> to vector<8x384xbf16>
    %c0_5 = arith.constant 0 : index
    %c0_6 = arith.constant 0 : index
    %10 = vector.load %arg4[%c0_5, %c0_6] : memref<8x384xbf16, #tpu.memory_space<vmem>>, vector<8x384xbf16>
    tpu.vector_store %arg4[%c0_5, %c0_6], %9 {strides = array<i32>} : memref<8x384xbf16, #tpu.memory_space<vmem>>, vector<8x384xbf16>,
    return
  }
  func.func @transform_0(%arg0: i32) -> (i32, i32) {
    %c0_i32 = arith.constant 0 : i32
    %c0_i32_0 = arith.constant 0 : i32
    return %arg0, %c0_i32 : i32, i32
  }
  func.func @transform_1(%arg0: i32) -> (i32, i32) {
    %c0_i32 = arith.constant 0 : i32
    %c0_i32_0 = arith.constant 0 : i32
    %c0_i32_1 = arith.constant 0 : i32
    return %c0_i32, %c0_i32_0 : i32, i32
  }
  func.func @transform_2(%arg0: i32) -> (i32, i32) {
    %c0_i32 = arith.constant 0 : i32
    %c0_i32_0 = arith.constant 0 : i32
    %c0_i32_1 = arith.constant 0 : i32
    return %c0_i32, %c0_i32_0 : i32, i32
  }
  func.func @transform_3(%arg0: i32) -> (i32, i32) {
    %c0_i32 = arith.constant 0 : i32
    %c0_i32_0 = arith.constant 0 : i32
    return %arg0, %c0_i32 : i32, i32
  }
}

module attributes {stable_mosaic.version = 11 : i64} {
  func.func @kernel(%arg0: i32, %arg1: memref<4x10x10x4xbf16, #tpu.memory_space<vmem>>, %arg2: memref<9x4x8xbf16, #tpu.memory_space<vmem>>, %arg3: memref<4x8x8x8xf32, #tpu.memory_space<vmem>>, %arg4: memref<1x8xf32, #tpu.memory_space<vmem>>, %arg5: memref<1x8xf32, #tpu.memory_space<vmem>>) attributes {dimension_semantics = [#tpu.dimension_semantics<arbitrary>], iteration_bounds = array<i64: 2>, scalar_prefetch = 0 : i64, scratch_operands = 0 : i64, tpu.core_type = #tpu.core_type<tc>, window_params = [{transform_indices = @transform_0, window_bounds = array<i64: 4, 10, 10, 4>}, {pipeline_mode = #tpu.pipeline_mode<synchronous>, transform_indices = @transform_1, window_bounds = array<i64: 9, 4, 8>}, {transform_indices = @transform_2, window_bounds = array<i64: 4, 8, 8, 8>}, {pipeline_mode = #tpu.pipeline_mode<synchronous>, transform_indices = @transform_3, window_bounds = array<i64: 1, 8>}, {pipeline_mode = #tpu.pipeline_mode<synchronous>, transform_indices = @transform_4, window_bounds = array<i64: 1, 8>}]} {
    %c0_i32 = arith.constant 0 : i32
    %0 = arith.cmpi eq, %arg0, %c0_i32 : i32
    %1 = arith.extui %0 : i1 to i32
    %c0_i32_0 = arith.constant 0 : i32
    %2 = arith.cmpi ne, %1, %c0_i32_0 : i32
    scf.if %2 {
      %cst_46 = arith.constant 0.000000e+00 : f32
      %82 = vector.broadcast %cst_46 : f32 to vector<1x8xf32>
      %c0_47 = arith.constant 0 : index
      %c0_48 = arith.constant 0 : index
      %83 = vector.load %arg4[%c0_47, %c0_48] : memref<1x8xf32, #tpu.memory_space<vmem>>, vector<1x8xf32>
      tpu.vector_store %arg4[%c0_47, %c0_48], %82 {strides = array<i32>} : memref<1x8xf32, #tpu.memory_space<vmem>>, vector<1x8xf32>,
      %cst_49 = arith.constant 0.000000e+00 : f32
      %84 = vector.broadcast %cst_49 : f32 to vector<1x8xf32>
      %c0_50 = arith.constant 0 : index
      %c0_51 = arith.constant 0 : index
      %85 = vector.load %arg5[%c0_50, %c0_51] : memref<1x8xf32, #tpu.memory_space<vmem>>, vector<1x8xf32>
      tpu.vector_store %arg5[%c0_50, %c0_51], %84 {strides = array<i32>} : memref<1x8xf32, #tpu.memory_space<vmem>>, vector<1x8xf32>,
    } else {
    }
    %c0 = arith.constant 0 : index
    %c0_1 = arith.constant 0 : index
    %c0_2 = arith.constant 0 : index
    %c0_3 = arith.constant 0 : index
    %3 = vector.load %arg1[%c0, %c0_1, %c0_2, %c0_3] : memref<4x10x10x4xbf16, #tpu.memory_space<vmem>>, vector<4x10x10x4xbf16>
    %4 = arith.extf %3 : vector<4x10x10x4xbf16> to vector<4x10x10x4xf32>
    %cst = arith.constant 0.000000e+00 : f32
    %5 = vector.broadcast %cst : f32 to vector<256x8xf32>
    %6 = vector.extract_strided_slice %4 {offsets = [0, 0, 0, 0], sizes = [4, 8, 8, 4], strides = [1, 1, 1, 1]} : vector<4x10x10x4xf32> to vector<4x8x8x4xf32>
    %7 = vector.shape_cast %6 : vector<4x8x8x4xf32> to vector<256x4xf32>
    %8 = arith.truncf %7 : vector<256x4xf32> to vector<256x4xbf16>
    %c0_4 = arith.constant 0 : index
    %c0_5 = arith.constant 0 : index
    %c0_6 = arith.constant 0 : index
    %9 = vector.load %arg2[%c0_4, %c0_5, %c0_6] : memref<9x4x8xbf16, #tpu.memory_space<vmem>>, vector<1x4x8xbf16>
    %10 = vector.shape_cast %9 : vector<1x4x8xbf16> to vector<4x8xbf16>
    %cst_7 = arith.constant dense<0.000000e+00> : vector<256x8xf32>
    %11 = tpu.matmul %8, %10, %cst_7 {dimension_numbers = #tpu.dot_dimension_numbers<[1], [0], [0], [1], [0, 0, 1, 1], [], []>} : vector<256x4xbf16>, vector<4x8xbf16>, vector<256x8xf32> -> vector<256x8xf32>
    %12 = arith.addf %5, %11 : vector<256x8xf32>
    %13 = vector.extract_strided_slice %4 {offsets = [0, 0, 1, 0], sizes = [4, 8, 8, 4], strides = [1, 1, 1, 1]} : vector<4x10x10x4xf32> to vector<4x8x8x4xf32>
    %14 = vector.shape_cast %13 : vector<4x8x8x4xf32> to vector<256x4xf32>
    %15 = arith.truncf %14 : vector<256x4xf32> to vector<256x4xbf16>
    %c1 = arith.constant 1 : index
    %c0_8 = arith.constant 0 : index
    %c0_9 = arith.constant 0 : index
    %16 = vector.load %arg2[%c1, %c0_8, %c0_9] : memref<9x4x8xbf16, #tpu.memory_space<vmem>>, vector<1x4x8xbf16>
    %17 = vector.shape_cast %16 : vector<1x4x8xbf16> to vector<4x8xbf16>
    %cst_10 = arith.constant dense<0.000000e+00> : vector<256x8xf32>
    %18 = tpu.matmul %15, %17, %cst_10 {dimension_numbers = #tpu.dot_dimension_numbers<[1], [0], [0], [1], [0, 0, 1, 1], [], []>} : vector<256x4xbf16>, vector<4x8xbf16>, vector<256x8xf32> -> vector<256x8xf32>
    %19 = arith.addf %12, %18 : vector<256x8xf32>
    %20 = vector.extract_strided_slice %4 {offsets = [0, 0, 2, 0], sizes = [4, 8, 8, 4], strides = [1, 1, 1, 1]} : vector<4x10x10x4xf32> to vector<4x8x8x4xf32>
    %21 = vector.shape_cast %20 : vector<4x8x8x4xf32> to vector<256x4xf32>
    %22 = arith.truncf %21 : vector<256x4xf32> to vector<256x4xbf16>
    %c2 = arith.constant 2 : index
    %c0_11 = arith.constant 0 : index
    %c0_12 = arith.constant 0 : index
    %23 = vector.load %arg2[%c2, %c0_11, %c0_12] : memref<9x4x8xbf16, #tpu.memory_space<vmem>>, vector<1x4x8xbf16>
    %24 = vector.shape_cast %23 : vector<1x4x8xbf16> to vector<4x8xbf16>
    %cst_13 = arith.constant dense<0.000000e+00> : vector<256x8xf32>
    %25 = tpu.matmul %22, %24, %cst_13 {dimension_numbers = #tpu.dot_dimension_numbers<[1], [0], [0], [1], [0, 0, 1, 1], [], []>} : vector<256x4xbf16>, vector<4x8xbf16>, vector<256x8xf32> -> vector<256x8xf32>
    %26 = arith.addf %19, %25 : vector<256x8xf32>
    %27 = vector.extract_strided_slice %4 {offsets = [0, 1, 0, 0], sizes = [4, 8, 8, 4], strides = [1, 1, 1, 1]} : vector<4x10x10x4xf32> to vector<4x8x8x4xf32>
    %28 = vector.shape_cast %27 : vector<4x8x8x4xf32> to vector<256x4xf32>
    %29 = arith.truncf %28 : vector<256x4xf32> to vector<256x4xbf16>
    %c3 = arith.constant 3 : index
    %c0_14 = arith.constant 0 : index
    %c0_15 = arith.constant 0 : index
    %30 = vector.load %arg2[%c3, %c0_14, %c0_15] : memref<9x4x8xbf16, #tpu.memory_space<vmem>>, vector<1x4x8xbf16>
    %31 = vector.shape_cast %30 : vector<1x4x8xbf16> to vector<4x8xbf16>
    %cst_16 = arith.constant dense<0.000000e+00> : vector<256x8xf32>
    %32 = tpu.matmul %29, %31, %cst_16 {dimension_numbers = #tpu.dot_dimension_numbers<[1], [0], [0], [1], [0, 0, 1, 1], [], []>} : vector<256x4xbf16>, vector<4x8xbf16>, vector<256x8xf32> -> vector<256x8xf32>
    %33 = arith.addf %26, %32 : vector<256x8xf32>
    %34 = vector.extract_strided_slice %4 {offsets = [0, 1, 1, 0], sizes = [4, 8, 8, 4], strides = [1, 1, 1, 1]} : vector<4x10x10x4xf32> to vector<4x8x8x4xf32>
    %35 = vector.shape_cast %34 : vector<4x8x8x4xf32> to vector<256x4xf32>
    %36 = arith.truncf %35 : vector<256x4xf32> to vector<256x4xbf16>
    %c4 = arith.constant 4 : index
    %c0_17 = arith.constant 0 : index
    %c0_18 = arith.constant 0 : index
    %37 = vector.load %arg2[%c4, %c0_17, %c0_18] : memref<9x4x8xbf16, #tpu.memory_space<vmem>>, vector<1x4x8xbf16>
    %38 = vector.shape_cast %37 : vector<1x4x8xbf16> to vector<4x8xbf16>
    %cst_19 = arith.constant dense<0.000000e+00> : vector<256x8xf32>
    %39 = tpu.matmul %36, %38, %cst_19 {dimension_numbers = #tpu.dot_dimension_numbers<[1], [0], [0], [1], [0, 0, 1, 1], [], []>} : vector<256x4xbf16>, vector<4x8xbf16>, vector<256x8xf32> -> vector<256x8xf32>
    %40 = arith.addf %33, %39 : vector<256x8xf32>
    %41 = vector.extract_strided_slice %4 {offsets = [0, 1, 2, 0], sizes = [4, 8, 8, 4], strides = [1, 1, 1, 1]} : vector<4x10x10x4xf32> to vector<4x8x8x4xf32>
    %42 = vector.shape_cast %41 : vector<4x8x8x4xf32> to vector<256x4xf32>
    %43 = arith.truncf %42 : vector<256x4xf32> to vector<256x4xbf16>
    %c5 = arith.constant 5 : index
    %c0_20 = arith.constant 0 : index
    %c0_21 = arith.constant 0 : index
    %44 = vector.load %arg2[%c5, %c0_20, %c0_21] : memref<9x4x8xbf16, #tpu.memory_space<vmem>>, vector<1x4x8xbf16>
    %45 = vector.shape_cast %44 : vector<1x4x8xbf16> to vector<4x8xbf16>
    %cst_22 = arith.constant dense<0.000000e+00> : vector<256x8xf32>
    %46 = tpu.matmul %43, %45, %cst_22 {dimension_numbers = #tpu.dot_dimension_numbers<[1], [0], [0], [1], [0, 0, 1, 1], [], []>} : vector<256x4xbf16>, vector<4x8xbf16>, vector<256x8xf32> -> vector<256x8xf32>
    %47 = arith.addf %40, %46 : vector<256x8xf32>
    %48 = vector.extract_strided_slice %4 {offsets = [0, 2, 0, 0], sizes = [4, 8, 8, 4], strides = [1, 1, 1, 1]} : vector<4x10x10x4xf32> to vector<4x8x8x4xf32>
    %49 = vector.shape_cast %48 : vector<4x8x8x4xf32> to vector<256x4xf32>
    %50 = arith.truncf %49 : vector<256x4xf32> to vector<256x4xbf16>
    %c6 = arith.constant 6 : index
    %c0_23 = arith.constant 0 : index
    %c0_24 = arith.constant 0 : index
    %51 = vector.load %arg2[%c6, %c0_23, %c0_24] : memref<9x4x8xbf16, #tpu.memory_space<vmem>>, vector<1x4x8xbf16>
    %52 = vector.shape_cast %51 : vector<1x4x8xbf16> to vector<4x8xbf16>
    %cst_25 = arith.constant dense<0.000000e+00> : vector<256x8xf32>
    %53 = tpu.matmul %50, %52, %cst_25 {dimension_numbers = #tpu.dot_dimension_numbers<[1], [0], [0], [1], [0, 0, 1, 1], [], []>} : vector<256x4xbf16>, vector<4x8xbf16>, vector<256x8xf32> -> vector<256x8xf32>
    %54 = arith.addf %47, %53 : vector<256x8xf32>
    %55 = vector.extract_strided_slice %4 {offsets = [0, 2, 1, 0], sizes = [4, 8, 8, 4], strides = [1, 1, 1, 1]} : vector<4x10x10x4xf32> to vector<4x8x8x4xf32>
    %56 = vector.shape_cast %55 : vector<4x8x8x4xf32> to vector<256x4xf32>
    %57 = arith.truncf %56 : vector<256x4xf32> to vector<256x4xbf16>
    %c7 = arith.constant 7 : index
    %c0_26 = arith.constant 0 : index
    %c0_27 = arith.constant 0 : index
    %58 = vector.load %arg2[%c7, %c0_26, %c0_27] : memref<9x4x8xbf16, #tpu.memory_space<vmem>>, vector<1x4x8xbf16>
    %59 = vector.shape_cast %58 : vector<1x4x8xbf16> to vector<4x8xbf16>
    %cst_28 = arith.constant dense<0.000000e+00> : vector<256x8xf32>
    %60 = tpu.matmul %57, %59, %cst_28 {dimension_numbers = #tpu.dot_dimension_numbers<[1], [0], [0], [1], [0, 0, 1, 1], [], []>} : vector<256x4xbf16>, vector<4x8xbf16>, vector<256x8xf32> -> vector<256x8xf32>
    %61 = arith.addf %54, %60 : vector<256x8xf32>
    %62 = vector.extract_strided_slice %4 {offsets = [0, 2, 2, 0], sizes = [4, 8, 8, 4], strides = [1, 1, 1, 1]} : vector<4x10x10x4xf32> to vector<4x8x8x4xf32>
    %63 = vector.shape_cast %62 : vector<4x8x8x4xf32> to vector<256x4xf32>
    %64 = arith.truncf %63 : vector<256x4xf32> to vector<256x4xbf16>
    %c8 = arith.constant 8 : index
    %c0_29 = arith.constant 0 : index
    %c0_30 = arith.constant 0 : index
    %65 = vector.load %arg2[%c8, %c0_29, %c0_30] : memref<9x4x8xbf16, #tpu.memory_space<vmem>>, vector<1x4x8xbf16>
    %66 = vector.shape_cast %65 : vector<1x4x8xbf16> to vector<4x8xbf16>
    %cst_31 = arith.constant dense<0.000000e+00> : vector<256x8xf32>
    %67 = tpu.matmul %64, %66, %cst_31 {dimension_numbers = #tpu.dot_dimension_numbers<[1], [0], [0], [1], [0, 0, 1, 1], [], []>} : vector<256x4xbf16>, vector<4x8xbf16>, vector<256x8xf32> -> vector<256x8xf32>
    %68 = arith.addf %61, %67 : vector<256x8xf32>
    %69 = vector.shape_cast %68 : vector<256x8xf32> to vector<4x8x8x8xf32>
    %c0_32 = arith.constant 0 : index
    %c0_33 = arith.constant 0 : index
    %c0_34 = arith.constant 0 : index
    %c0_35 = arith.constant 0 : index
    %70 = vector.load %arg3[%c0_32, %c0_33, %c0_34, %c0_35] : memref<4x8x8x8xf32, #tpu.memory_space<vmem>>, vector<4x8x8x8xf32>
    tpu.vector_store %arg3[%c0_32, %c0_33, %c0_34, %c0_35], %69 {strides = array<i32>} : memref<4x8x8x8xf32, #tpu.memory_space<vmem>>, vector<4x8x8x8xf32>,
    %c0_36 = arith.constant 0 : index
    %c0_37 = arith.constant 0 : index
    %71 = vector.load %arg4[%c0_36, %c0_37] : memref<1x8xf32, #tpu.memory_space<vmem>>, vector<1x8xf32>
    %cst_38 = arith.constant dense<0.000000e+00> : vector<8xf32>
    %72 = vector.multi_reduction <add>, %68, %cst_38 [0] : vector<256x8xf32> to vector<8xf32>
    %73 = vector.shape_cast %72 : vector<8xf32> to vector<1x8xf32>
    %74 = arith.addf %71, %73 : vector<1x8xf32>
    %c0_39 = arith.constant 0 : index
    %c0_40 = arith.constant 0 : index
    %75 = vector.load %arg4[%c0_39, %c0_40] : memref<1x8xf32, #tpu.memory_space<vmem>>, vector<1x8xf32>
    tpu.vector_store %arg4[%c0_39, %c0_40], %74 {strides = array<i32>} : memref<1x8xf32, #tpu.memory_space<vmem>>, vector<1x8xf32>,
    %c0_41 = arith.constant 0 : index
    %c0_42 = arith.constant 0 : index
    %76 = vector.load %arg5[%c0_41, %c0_42] : memref<1x8xf32, #tpu.memory_space<vmem>>, vector<1x8xf32>
    %77 = arith.mulf %68, %68 : vector<256x8xf32>
    %cst_43 = arith.constant dense<0.000000e+00> : vector<8xf32>
    %78 = vector.multi_reduction <add>, %77, %cst_43 [0] : vector<256x8xf32> to vector<8xf32>
    %79 = vector.shape_cast %78 : vector<8xf32> to vector<1x8xf32>
    %80 = arith.addf %76, %79 : vector<1x8xf32>
    %c0_44 = arith.constant 0 : index
    %c0_45 = arith.constant 0 : index
    %81 = vector.load %arg5[%c0_44, %c0_45] : memref<1x8xf32, #tpu.memory_space<vmem>>, vector<1x8xf32>
    tpu.vector_store %arg5[%c0_44, %c0_45], %80 {strides = array<i32>} : memref<1x8xf32, #tpu.memory_space<vmem>>, vector<1x8xf32>,
    return
  }
  func.func @transform_0(%arg0: i32) -> (i32, i32, i32, i32) {
    %c0_i32 = arith.constant 0 : i32
    %c0_i32_0 = arith.constant 0 : i32
    %c0_i32_1 = arith.constant 0 : i32
    %c0_i32_2 = arith.constant 0 : i32
    return %arg0, %c0_i32, %c0_i32_0, %c0_i32_1 : i32, i32, i32, i32
  }
  func.func @transform_1(%arg0: i32) -> (i32, i32, i32) {
    %c0_i32 = arith.constant 0 : i32
    %c0_i32_0 = arith.constant 0 : i32
    %c0_i32_1 = arith.constant 0 : i32
    %c0_i32_2 = arith.constant 0 : i32
    return %c0_i32, %c0_i32_0, %c0_i32_1 : i32, i32, i32
  }
  func.func @transform_2(%arg0: i32) -> (i32, i32, i32, i32) {
    %c0_i32 = arith.constant 0 : i32
    %c0_i32_0 = arith.constant 0 : i32
    %c0_i32_1 = arith.constant 0 : i32
    %c0_i32_2 = arith.constant 0 : i32
    return %arg0, %c0_i32, %c0_i32_0, %c0_i32_1 : i32, i32, i32, i32
  }
  func.func @transform_3(%arg0: i32) -> (i32, i32) {
    %c0_i32 = arith.constant 0 : i32
    %c0_i32_0 = arith.constant 0 : i32
    %c0_i32_1 = arith.constant 0 : i32
    return %c0_i32, %c0_i32_0 : i32, i32
  }
  func.func @transform_4(%arg0: i32) -> (i32, i32) {
    %c0_i32 = arith.constant 0 : i32
    %c0_i32_0 = arith.constant 0 : i32
    %c0_i32_1 = arith.constant 0 : i32
    return %c0_i32, %c0_i32_0 : i32, i32
  }
}

module attributes {stable_mosaic.version = 11 : i64} {
  func.func @_bn_relu_kernel(%arg0: i32, %arg1: memref<16x128xf32, #tpu.memory_space<vmem>>, %arg2: memref<1x128xf32, #tpu.memory_space<vmem>>, %arg3: memref<1x128xf32, #tpu.memory_space<vmem>>, %arg4: memref<16x128xbf16, #tpu.memory_space<vmem>>) attributes {dimension_semantics = [#tpu.dimension_semantics<parallel>], iteration_bounds = array<i64: 2>, scalar_prefetch = 0 : i64, scratch_operands = 0 : i64, tpu.core_type = #tpu.core_type<tc>, window_params = [{transform_indices = @transform_0, window_bounds = array<i64: 16, 128>}, {pipeline_mode = #tpu.pipeline_mode<synchronous>, transform_indices = @transform_1, window_bounds = array<i64: 1, 128>}, {pipeline_mode = #tpu.pipeline_mode<synchronous>, transform_indices = @transform_2, window_bounds = array<i64: 1, 128>}, {transform_indices = @transform_3, window_bounds = array<i64: 16, 128>}]} {
    %c0 = arith.constant 0 : index
    %c0_0 = arith.constant 0 : index
    %0 = vector.load %arg1[%c0, %c0_0] : memref<16x128xf32, #tpu.memory_space<vmem>>, vector<16x128xf32>
    %c0_1 = arith.constant 0 : index
    %c0_2 = arith.constant 0 : index
    %1 = vector.load %arg2[%c0_1, %c0_2] : memref<1x128xf32, #tpu.memory_space<vmem>>, vector<1x128xf32>
    %2 = vector.broadcast %1 : vector<1x128xf32> to vector<16x128xf32>
    %3 = arith.subf %0, %2 : vector<16x128xf32>
    %c0_3 = arith.constant 0 : index
    %c0_4 = arith.constant 0 : index
    %4 = vector.load %arg3[%c0_3, %c0_4] : memref<1x128xf32, #tpu.memory_space<vmem>>, vector<1x128xf32>
    %5 = vector.broadcast %4 : vector<1x128xf32> to vector<16x128xf32>
    %6 = arith.mulf %3, %5 : vector<16x128xf32>
    %cst = arith.constant 0.000000e+00 : f32
    %7 = vector.broadcast %cst : f32 to vector<16x128xf32>
    %8 = arith.maximumf %6, %7 : vector<16x128xf32>
    %9 = arith.truncf %8 : vector<16x128xf32> to vector<16x128xbf16>
    %c0_5 = arith.constant 0 : index
    %c0_6 = arith.constant 0 : index
    %10 = vector.load %arg4[%c0_5, %c0_6] : memref<16x128xbf16, #tpu.memory_space<vmem>>, vector<16x128xbf16>
    tpu.vector_store %arg4[%c0_5, %c0_6], %9 {strides = array<i32>} : memref<16x128xbf16, #tpu.memory_space<vmem>>, vector<16x128xbf16>,
    return
  }
  func.func @transform_0(%arg0: i32) -> (i32, i32) {
    %c0_i32 = arith.constant 0 : i32
    %c0_i32_0 = arith.constant 0 : i32
    return %arg0, %c0_i32 : i32, i32
  }
  func.func @transform_1(%arg0: i32) -> (i32, i32) {
    %c0_i32 = arith.constant 0 : i32
    %c0_i32_0 = arith.constant 0 : i32
    %c0_i32_1 = arith.constant 0 : i32
    return %c0_i32, %c0_i32_0 : i32, i32
  }
  func.func @transform_2(%arg0: i32) -> (i32, i32) {
    %c0_i32 = arith.constant 0 : i32
    %c0_i32_0 = arith.constant 0 : i32
    %c0_i32_1 = arith.constant 0 : i32
    return %c0_i32, %c0_i32_0 : i32, i32
  }
  func.func @transform_3(%arg0: i32) -> (i32, i32) {
    %c0_i32 = arith.constant 0 : i32
    %c0_i32_0 = arith.constant 0 : i32
    return %arg0, %c0_i32 : i32, i32
  }
}

module attributes {stable_mosaic.version = 11 : i64} {
  func.func @_bn_relu_kernel(%arg0: i32, %arg1: memref<16x128xf32, #tpu.memory_space<vmem>>, %arg2: memref<1x128xf32, #tpu.memory_space<vmem>>, %arg3: memref<1x128xf32, #tpu.memory_space<vmem>>, %arg4: memref<16x128xf32, #tpu.memory_space<vmem>>) attributes {dimension_semantics = [#tpu.dimension_semantics<parallel>], iteration_bounds = array<i64: 2>, scalar_prefetch = 0 : i64, scratch_operands = 0 : i64, tpu.core_type = #tpu.core_type<tc>, window_params = [{transform_indices = @transform_0, window_bounds = array<i64: 16, 128>}, {pipeline_mode = #tpu.pipeline_mode<synchronous>, transform_indices = @transform_1, window_bounds = array<i64: 1, 128>}, {pipeline_mode = #tpu.pipeline_mode<synchronous>, transform_indices = @transform_2, window_bounds = array<i64: 1, 128>}, {transform_indices = @transform_3, window_bounds = array<i64: 16, 128>}]} {
    %c0 = arith.constant 0 : index
    %c0_0 = arith.constant 0 : index
    %0 = vector.load %arg1[%c0, %c0_0] : memref<16x128xf32, #tpu.memory_space<vmem>>, vector<16x128xf32>
    %c0_1 = arith.constant 0 : index
    %c0_2 = arith.constant 0 : index
    %1 = vector.load %arg2[%c0_1, %c0_2] : memref<1x128xf32, #tpu.memory_space<vmem>>, vector<1x128xf32>
    %2 = vector.broadcast %1 : vector<1x128xf32> to vector<16x128xf32>
    %3 = arith.subf %0, %2 : vector<16x128xf32>
    %c0_3 = arith.constant 0 : index
    %c0_4 = arith.constant 0 : index
    %4 = vector.load %arg3[%c0_3, %c0_4] : memref<1x128xf32, #tpu.memory_space<vmem>>, vector<1x128xf32>
    %5 = vector.broadcast %4 : vector<1x128xf32> to vector<16x128xf32>
    %6 = arith.mulf %3, %5 : vector<16x128xf32>
    %cst = arith.constant 0.000000e+00 : f32
    %7 = vector.broadcast %cst : f32 to vector<16x128xf32>
    %8 = arith.maximumf %6, %7 : vector<16x128xf32>
    %c0_5 = arith.constant 0 : index
    %c0_6 = arith.constant 0 : index
    %9 = vector.load %arg4[%c0_5, %c0_6] : memref<16x128xf32, #tpu.memory_space<vmem>>, vector<16x128xf32>
    tpu.vector_store %arg4[%c0_5, %c0_6], %8 {strides = array<i32>} : memref<16x128xf32, #tpu.memory_space<vmem>>, vector<16x128xf32>,
    return
  }
  func.func @transform_0(%arg0: i32) -> (i32, i32) {
    %c0_i32 = arith.constant 0 : i32
    %c0_i32_0 = arith.constant 0 : i32
    return %arg0, %c0_i32 : i32, i32
  }
  func.func @transform_1(%arg0: i32) -> (i32, i32) {
    %c0_i32 = arith.constant 0 : i32
    %c0_i32_0 = arith.constant 0 : i32
    %c0_i32_1 = arith.constant 0 : i32
    return %c0_i32, %c0_i32_0 : i32, i32
  }
  func.func @transform_2(%arg0: i32) -> (i32, i32) {
    %c0_i32 = arith.constant 0 : i32
    %c0_i32_0 = arith.constant 0 : i32
    %c0_i32_1 = arith.constant 0 : i32
    return %c0_i32, %c0_i32_0 : i32, i32
  }
  func.func @transform_3(%arg0: i32) -> (i32, i32) {
    %c0_i32 = arith.constant 0 : i32
    %c0_i32_0 = arith.constant 0 : i32
    return %arg0, %c0_i32 : i32, i32
  }
}

module attributes {stable_mosaic.version = 11 : i64} {
  func.func @kernel(%arg0: i32, %arg1: memref<1x6x64x8xbf16, #tpu.memory_space<vmem>>, %arg2: memref<3x8x8xbf16, #tpu.memory_space<vmem>>, %arg3: memref<1x4x64x8xf32, #tpu.memory_space<vmem>>, %arg4: memref<1x8xf32, #tpu.memory_space<vmem>>, %arg5: memref<1x8xf32, #tpu.memory_space<vmem>>) attributes {dimension_semantics = [#tpu.dimension_semantics<arbitrary>], iteration_bounds = array<i64: 2>, scalar_prefetch = 0 : i64, scratch_operands = 0 : i64, tpu.core_type = #tpu.core_type<tc>, window_params = [{transform_indices = @transform_0, window_bounds = array<i64: 1, 6, 64, 8>}, {pipeline_mode = #tpu.pipeline_mode<synchronous>, transform_indices = @transform_1, window_bounds = array<i64: 3, 8, 8>}, {transform_indices = @transform_2, window_bounds = array<i64: 1, 4, 64, 8>}, {pipeline_mode = #tpu.pipeline_mode<synchronous>, transform_indices = @transform_3, window_bounds = array<i64: 1, 8>}, {pipeline_mode = #tpu.pipeline_mode<synchronous>, transform_indices = @transform_4, window_bounds = array<i64: 1, 8>}]} {
    %c0_i32 = arith.constant 0 : i32
    %0 = arith.cmpi eq, %arg0, %c0_i32 : i32
    %1 = arith.extui %0 : i1 to i32
    %c0_i32_0 = arith.constant 0 : i32
    %2 = arith.cmpi ne, %1, %c0_i32_0 : i32
    scf.if %2 {
      %cst_28 = arith.constant 0.000000e+00 : f32
      %40 = vector.broadcast %cst_28 : f32 to vector<1x8xf32>
      %c0_29 = arith.constant 0 : index
      %c0_30 = arith.constant 0 : index
      %41 = vector.load %arg4[%c0_29, %c0_30] : memref<1x8xf32, #tpu.memory_space<vmem>>, vector<1x8xf32>
      tpu.vector_store %arg4[%c0_29, %c0_30], %40 {strides = array<i32>} : memref<1x8xf32, #tpu.memory_space<vmem>>, vector<1x8xf32>,
      %cst_31 = arith.constant 0.000000e+00 : f32
      %42 = vector.broadcast %cst_31 : f32 to vector<1x8xf32>
      %c0_32 = arith.constant 0 : index
      %c0_33 = arith.constant 0 : index
      %43 = vector.load %arg5[%c0_32, %c0_33] : memref<1x8xf32, #tpu.memory_space<vmem>>, vector<1x8xf32>
      tpu.vector_store %arg5[%c0_32, %c0_33], %42 {strides = array<i32>} : memref<1x8xf32, #tpu.memory_space<vmem>>, vector<1x8xf32>,
    } else {
    }
    %c0 = arith.constant 0 : index
    %c0_1 = arith.constant 0 : index
    %c0_2 = arith.constant 0 : index
    %c0_3 = arith.constant 0 : index
    %3 = vector.load %arg1[%c0, %c0_1, %c0_2, %c0_3] : memref<1x6x64x8xbf16, #tpu.memory_space<vmem>>, vector<1x6x64x8xbf16>
    %4 = arith.extf %3 : vector<1x6x64x8xbf16> to vector<1x6x64x8xf32>
    %cst = arith.constant 0.000000e+00 : f32
    %5 = vector.broadcast %cst : f32 to vector<256x8xf32>
    %6 = vector.extract_strided_slice %4 {offsets = [0, 0, 0, 0], sizes = [1, 4, 64, 8], strides = [1, 1, 1, 1]} : vector<1x6x64x8xf32> to vector<1x4x64x8xf32>
    %7 = vector.shape_cast %6 : vector<1x4x64x8xf32> to vector<256x8xf32>
    %8 = arith.truncf %7 : vector<256x8xf32> to vector<256x8xbf16>
    %c0_4 = arith.constant 0 : index
    %c0_5 = arith.constant 0 : index
    %c0_6 = arith.constant 0 : index
    %9 = vector.load %arg2[%c0_4, %c0_5, %c0_6] : memref<3x8x8xbf16, #tpu.memory_space<vmem>>, vector<1x8x8xbf16>
    %10 = vector.shape_cast %9 : vector<1x8x8xbf16> to vector<8x8xbf16>
    %cst_7 = arith.constant dense<0.000000e+00> : vector<256x8xf32>
    %11 = tpu.matmul %8, %10, %cst_7 {dimension_numbers = #tpu.dot_dimension_numbers<[1], [0], [0], [1], [0, 0, 1, 1], [], []>} : vector<256x8xbf16>, vector<8x8xbf16>, vector<256x8xf32> -> vector<256x8xf32>
    %12 = arith.addf %5, %11 : vector<256x8xf32>
    %13 = vector.extract_strided_slice %4 {offsets = [0, 1, 0, 0], sizes = [1, 4, 64, 8], strides = [1, 1, 1, 1]} : vector<1x6x64x8xf32> to vector<1x4x64x8xf32>
    %14 = vector.shape_cast %13 : vector<1x4x64x8xf32> to vector<256x8xf32>
    %15 = arith.truncf %14 : vector<256x8xf32> to vector<256x8xbf16>
    %c1 = arith.constant 1 : index
    %c0_8 = arith.constant 0 : index
    %c0_9 = arith.constant 0 : index
    %16 = vector.load %arg2[%c1, %c0_8, %c0_9] : memref<3x8x8xbf16, #tpu.memory_space<vmem>>, vector<1x8x8xbf16>
    %17 = vector.shape_cast %16 : vector<1x8x8xbf16> to vector<8x8xbf16>
    %cst_10 = arith.constant dense<0.000000e+00> : vector<256x8xf32>
    %18 = tpu.matmul %15, %17, %cst_10 {dimension_numbers = #tpu.dot_dimension_numbers<[1], [0], [0], [1], [0, 0, 1, 1], [], []>} : vector<256x8xbf16>, vector<8x8xbf16>, vector<256x8xf32> -> vector<256x8xf32>
    %19 = arith.addf %12, %18 : vector<256x8xf32>
    %20 = vector.extract_strided_slice %4 {offsets = [0, 2, 0, 0], sizes = [1, 4, 64, 8], strides = [1, 1, 1, 1]} : vector<1x6x64x8xf32> to vector<1x4x64x8xf32>
    %21 = vector.shape_cast %20 : vector<1x4x64x8xf32> to vector<256x8xf32>
    %22 = arith.truncf %21 : vector<256x8xf32> to vector<256x8xbf16>
    %c2 = arith.constant 2 : index
    %c0_11 = arith.constant 0 : index
    %c0_12 = arith.constant 0 : index
    %23 = vector.load %arg2[%c2, %c0_11, %c0_12] : memref<3x8x8xbf16, #tpu.memory_space<vmem>>, vector<1x8x8xbf16>
    %24 = vector.shape_cast %23 : vector<1x8x8xbf16> to vector<8x8xbf16>
    %cst_13 = arith.constant dense<0.000000e+00> : vector<256x8xf32>
    %25 = tpu.matmul %22, %24, %cst_13 {dimension_numbers = #tpu.dot_dimension_numbers<[1], [0], [0], [1], [0, 0, 1, 1], [], []>} : vector<256x8xbf16>, vector<8x8xbf16>, vector<256x8xf32> -> vector<256x8xf32>
    %26 = arith.addf %19, %25 : vector<256x8xf32>
    %27 = vector.shape_cast %26 : vector<256x8xf32> to vector<1x4x64x8xf32>
    %c0_14 = arith.constant 0 : index
    %c0_15 = arith.constant 0 : index
    %c0_16 = arith.constant 0 : index
    %c0_17 = arith.constant 0 : index
    %28 = vector.load %arg3[%c0_14, %c0_15, %c0_16, %c0_17] : memref<1x4x64x8xf32, #tpu.memory_space<vmem>>, vector<1x4x64x8xf32>
    tpu.vector_store %arg3[%c0_14, %c0_15, %c0_16, %c0_17], %27 {strides = array<i32>} : memref<1x4x64x8xf32, #tpu.memory_space<vmem>>, vector<1x4x64x8xf32>,
    %c0_18 = arith.constant 0 : index
    %c0_19 = arith.constant 0 : index
    %29 = vector.load %arg4[%c0_18, %c0_19] : memref<1x8xf32, #tpu.memory_space<vmem>>, vector<1x8xf32>
    %cst_20 = arith.constant dense<0.000000e+00> : vector<8xf32>
    %30 = vector.multi_reduction <add>, %26, %cst_20 [0] : vector<256x8xf32> to vector<8xf32>
    %31 = vector.shape_cast %30 : vector<8xf32> to vector<1x8xf32>
    %32 = arith.addf %29, %31 : vector<1x8xf32>
    %c0_21 = arith.constant 0 : index
    %c0_22 = arith.constant 0 : index
    %33 = vector.load %arg4[%c0_21, %c0_22] : memref<1x8xf32, #tpu.memory_space<vmem>>, vector<1x8xf32>
    tpu.vector_store %arg4[%c0_21, %c0_22], %32 {strides = array<i32>} : memref<1x8xf32, #tpu.memory_space<vmem>>, vector<1x8xf32>,
    %c0_23 = arith.constant 0 : index
    %c0_24 = arith.constant 0 : index
    %34 = vector.load %arg5[%c0_23, %c0_24] : memref<1x8xf32, #tpu.memory_space<vmem>>, vector<1x8xf32>
    %35 = arith.mulf %26, %26 : vector<256x8xf32>
    %cst_25 = arith.constant dense<0.000000e+00> : vector<8xf32>
    %36 = vector.multi_reduction <add>, %35, %cst_25 [0] : vector<256x8xf32> to vector<8xf32>
    %37 = vector.shape_cast %36 : vector<8xf32> to vector<1x8xf32>
    %38 = arith.addf %34, %37 : vector<1x8xf32>
    %c0_26 = arith.constant 0 : index
    %c0_27 = arith.constant 0 : index
    %39 = vector.load %arg5[%c0_26, %c0_27] : memref<1x8xf32, #tpu.memory_space<vmem>>, vector<1x8xf32>
    tpu.vector_store %arg5[%c0_26, %c0_27], %38 {strides = array<i32>} : memref<1x8xf32, #tpu.memory_space<vmem>>, vector<1x8xf32>,
    return
  }
  func.func @transform_0(%arg0: i32) -> (i32, i32, i32, i32) {
    %c0_i32 = arith.constant 0 : i32
    %c0_i32_0 = arith.constant 0 : i32
    %c0_i32_1 = arith.constant 0 : i32
    %c0_i32_2 = arith.constant 0 : i32
    return %arg0, %c0_i32, %c0_i32_0, %c0_i32_1 : i32, i32, i32, i32
  }
  func.func @transform_1(%arg0: i32) -> (i32, i32, i32) {
    %c0_i32 = arith.constant 0 : i32
    %c0_i32_0 = arith.constant 0 : i32
    %c0_i32_1 = arith.constant 0 : i32
    %c0_i32_2 = arith.constant 0 : i32
    return %c0_i32, %c0_i32_0, %c0_i32_1 : i32, i32, i32
  }
  func.func @transform_2(%arg0: i32) -> (i32, i32, i32, i32) {
    %c0_i32 = arith.constant 0 : i32
    %c0_i32_0 = arith.constant 0 : i32
    %c0_i32_1 = arith.constant 0 : i32
    %c0_i32_2 = arith.constant 0 : i32
    return %arg0, %c0_i32, %c0_i32_0, %c0_i32_1 : i32, i32, i32, i32
  }
  func.func @transform_3(%arg0: i32) -> (i32, i32) {
    %c0_i32 = arith.constant 0 : i32
    %c0_i32_0 = arith.constant 0 : i32
    %c0_i32_1 = arith.constant 0 : i32
    return %c0_i32, %c0_i32_0 : i32, i32
  }
  func.func @transform_4(%arg0: i32) -> (i32, i32) {
    %c0_i32 = arith.constant 0 : i32
    %c0_i32_0 = arith.constant 0 : i32
    %c0_i32_1 = arith.constant 0 : i32
    return %c0_i32, %c0_i32_0 : i32, i32
  }
}

</mosaic_0001>

<bundles_post_ra>
// kernel: sep_inception_forward.23
= control target key start
LH: loop header
LB: loop body
LE: loop exit
PB: predicated region body
PF: predicated region fallthrough
CT: control target
= control target key end

     0   :  { %s790_s12 = smov 0   ;;  %s792_s13 = smov 0   ;;  %s1038_s0 = inlined_call_operand.vmem [shape: f32[2,6,10,10,4], index: 0, kind: input, shape index: {}, may-alias: {0,1,2}]   ;;  %s1039_s1 = inlined_call_operand.vmem [shape: f32[2,6,10,10,4], index: 1, kind: input, shape index: {}, may-alias: {0,1,2}]   ;;  %s1040_s2 = inlined_call_operand.vmem [shape: f32[2,6,10,10,4], index: 2, kind: input, shape index: {}, may-alias: {0,1,2}]   ;;  %s1041_s3 = inlined_call_operand.vmem [shape: f32[2,4,8,8,4], index: 3, kind: output, shape index: {}]  }
   0x1   :  { %s794_s14 = smov 0   ;;  %s796_s15 = smov 0  }
   0x2   :  { %s798_s16 = smov 0  }
   0x3 LB: > { %s22_s17 = sadd.s32 1, %s760_s14  ;;  %s25_s18 = sadd.s32 1, %s764_s15  ;;  %s768_s16 = sphi %s798_s16, %s13_s16   ;;  %s764_s15 = sphi %s796_s15, %s1045_s15   ;;  %s760_s14 = sphi %s794_s14, %s1044_s14   ;;  %s756_s13 = sphi %s792_s13, %s1043_s13   ;;  %s752_s12 = sphi %s790_s12, %s1042_s12  }
   0x4   : > { %p23_p0 = scmp.ge.s32.totalorder %s22_s17, 4  ;;  %p677_p1 = scmp.ge.s32.totalorder %s768_s16, 1 }
   0x5   : > { %p197_p2 = scmp.lt.s32.totalorder %s768_s16, 9 }
   0x6   : > { %s1047_s17 = smov (%p23_p0, %s22_s17), 0  ;;  %s1049_s18 = smov (!%p23_p0, %s25_s18), %s764_s15 }
   0x7   : > { %p198_p3 = pnand %p677_p1, %p197_p2  ;;  %p27_p4 = scmp.ge.s32.totalorder %s1049_s18, 2 }
   0x8   : > { %p249_p5 = scmp.lt.s32.totalorder (!%p198_p3), %s756_s13, 1  ;;  %p251_p6 = scmp.lt.s32.totalorder (!%p198_p3), %s752_s12, 5  ;;  %vm409_vm0 = vcmask (!%p198_p3), 1046528   ;;  %vm460_vm1 = vcmask (!%p198_p3), 1045504   ;;  %vm527_vm2 = vcmask (!%p198_p3), 31744  }
   0x9   : > { %s1051_s18 = smov (%p27_p4, %s1049_s18), 0  ;;  %201 = sbr.rel (%p198_p3) target bundleno = 72 (0x48), region = 32 }
   0xa   : > { %s258_s19 = sadd.s32 (!%p198_p3), 1, %s752_s12  ;;  %s269_s23 = sadd.s32 (!%p198_p3), 2, %s752_s12 }
   0xb   : > { %p261_p7 = scmp.lt.s32.totalorder (!%p198_p3), %s258_s19, 5  ;;  %p272_p8 = scmp.lt.s32.totalorder (!%p198_p3), %s269_s23, 5 }
   0xc   : > { %p282_p9 = scmp.lt.s32.totalorder (!%p198_p3), %s752_s12, 3 }
  0x10   : > { %s1053_s13 = smov (!%p249_p5, %s756_s13), 1  ;;  %s1055_s19 = smov (!%p261_p7, %s258_s19), 5 }
  0x11   : > { %s252_s20 = scalar_select %p251_p6, %s752_s12, 5 }
  0x12   : > { %s828_s21 = smul.u32 120, %s1053_s13  ;;  %s1057_s23 = smov (!%p272_p8, %s269_s23), 5 }
  0x13   : > { %s686_s22 = smul.u32 20, %s252_s20  ;;  %s1059_s12 = smov (!%p282_p9, %s752_s12), 3 }
  0x14   : > { %s688_s26 = smul.u32 20, %s1055_s19 }
  0x15   : > { %s255_s24 = sadd.s32 %s828_s21, %s686_s22  ;;  %s689_s8 = smul.u32 20, %s1057_s23 }
  0x16   : > { %s678_s25 = sshll.u32 %s255_s24, 3  ;;  %s265_s30 = sadd.s32 %s688_s26, %s828_s21 }
  0x17   : > { %s835_s29 = scalar_lea.vmem %s1038_s0, %s678_s25  ;;  %s679_s4 = sshll.u32 %s265_s30, 3 }
  0x18   : > { %s841_s7 = scalar_lea.vmem %s1039_s1, %s679_s4  ;;  %v289_v0 = vld [vmem:[%s835_s29] sm:$0xff]  ;;  %v290_v1 = vld [vmem:[%s835_s29 + $0x8] sm:$0x3]  ;;  %v291_v2 = vld [vmem:[%s835_s29 + $0x10] sm:$0xff]  ;;  %s276_s9 = sadd.s32 %s689_s8, %s828_s21 }
  0x19   : > { %v292_v3 = vld [vmem:[%s835_s29 + $0x18] sm:$0x3]  ;;  %v293_v4 = vld [vmem:[%s835_s29 + $0x20] sm:$0xff]  ;;  %v294_v5 = vld [vmem:[%s835_s29 + $0x28] sm:$0x3]  ;;  %s680_s10 = sshll.u32 %s276_s9, 3 }
  0x1a   : > { %v309_v6 = vld [vmem:[%s841_s7] sm:$0xff]  ;;  %v310_v7 = vld [vmem:[%s841_s7 + $0x8] sm:$0x3]  ;;  %v311_v8 = vld [vmem:[%s841_s7 + $0x10] sm:$0xff]  ;;  %s907_s20 = scalar_lea.vmem %s1040_s2, %s680_s10  ;;  %s681_s21 = sshll.u32 %s1059_s12, 3 }
  0x1b   : > { %v312_v9 = vld [vmem:[%s841_s7 + $0x18] sm:$0x3]  ;;  %v313_v10 = vld [vmem:[%s841_s7 + $0x20] sm:$0xff]  ;;  %v314_v11 = vld [vmem:[%s841_s7 + $0x28] sm:$0x3]  ;;  %v329_v21 = vmax.f32 %v289_v0, %v309_v6  ;;  %v330_v22 = vmax.f32 %v290_v1, %v310_v7  ;;  %v331_v23 = vmax.f32 %v291_v2, %v311_v8  ;;  %s682_s22 = sshll.u32 %s1053_s13, 5 }
  0x1c   : > { %v857_v12 = vld [vmem:[%s835_s29 + $0x30] sm:$0xff]  ;;  %v860_v13 = vld [vmem:[%s835_s29 + $0x38] sm:$0x3]  ;;  %v869_v16 = vld [vmem:[%s835_s29 + $0x40] sm:$0xff]  ;;  %v332_v27 = vmax.f32 %v292_v3, %v312_v9  ;;  %v333_v28 = vmax.f32 %v293_v4, %v313_v10  ;;  %v334_v29 = vmax.f32 %v294_v5, %v314_v11  ;;  %s943_s12 = sadd.s32 %s682_s22, %s681_s21 }
  0x1d   : > { %v863_v14 = vld [vmem:[%s841_s7 + $0x30] sm:$0xff]  ;;  %v866_v15 = vld [vmem:[%s841_s7 + $0x38] sm:$0x3]  ;;  %v872_v17 = vld [vmem:[%s835_s29 + $0x48] sm:$0x3]  ;;  %s683_s13 = sshll.u32 %s943_s12, 3 }
  0x1e   : > { %v880_v18 = vld [vmem:[%s841_s7 + $0x40] sm:$0xff]  ;;  %v883_v19 = vld [vmem:[%s841_s7 + $0x48] sm:$0x3]  ;;  %v886_v20 = vld [vmem:[%s835_s29 + $0x50] sm:$0xff]  ;;  %v335_v32 = vmax.f32 %v857_v12, %v863_v14  ;;  %v336_v33 = vmax.f32 %v860_v13, %v866_v15  ;;  %s959_s25 = scalar_lea.vmem %s1041_s3, %s683_s13 }
  0x1f   : > { %v890_v24 = vld [vmem:[%s835_s29 + $0x58] sm:$0x3]  ;;  %v893_v25 = vld [vmem:[%s841_s7 + $0x50] sm:$0xff]  ;;  %v899_v30 = vld [vmem:[%s835_s29 + $0x60] sm:$0xff]  ;;  %v337_v39 = vmax.f32 %v869_v16, %v880_v18  ;;  %v338_v40 = vmax.f32 %v872_v17, %v883_v19 }
  0x20   : > { %v896_v26 = vld [vmem:[%s841_s7 + $0x58] sm:$0x3]  ;;  %v902_v31 = vld [vmem:[%s841_s7 + $0x60] sm:$0xff]  ;;  %v914_v34 = vld [vmem:[%s835_s29 + $0x68] sm:$0x3]  ;;  %v339_v41 = vmax.f32 %v886_v20, %v893_v25 }
  0x21   : > { %v917_v35 = vld [vmem:[%s841_s7 + $0x68] sm:$0x3]  ;;  %v349_v36 = vld [vmem:[%s907_s20] sm:$0xff]  ;;  %v351_v38 = vld [vmem:[%s907_s20 + $0x10] sm:$0xff]  ;;  %v340_v42 = vmax.f32 %v890_v24, %v896_v26  ;;  %v341_v49 = vmax.f32 %v899_v30, %v902_v31 }
  0x22   : > { %v350_v37 = vld [vmem:[%s907_s20 + $0x8] sm:$0x3]  ;;  %v352_v43 = vld [vmem:[%s907_s20 + $0x18] sm:$0x3]  ;;  %v353_v44 = vld [vmem:[%s907_s20 + $0x20] sm:$0xff]  ;;  %v369_v46 = vmax.f32 %v329_v21, %v349_v36  ;;  %v371_v48 = vmax.f32 %v331_v23, %v351_v38  ;;  %v342_v53 = vmax.f32 %v914_v34, %v917_v35 }
  0x23   : > { %v354_v45 = vld [vmem:[%s907_s20 + $0x28] sm:$0x3]  ;;  %v370_v47 = vmax.f32 %v330_v22, %v350_v37  ;;  %v372_v50 = vmax.f32 %v332_v27, %v352_v43  ;;  %v373_v51 = vmax.f32 %v333_v28, %v353_v44  ;;  %v355_v62 = vld [vmem:[%s907_s20 + $0x30] sm:$0xff]  ;;  %v356_v3 = vld [vmem:[%s907_s20 + $0x38] sm:$0x3] }
  0x24   : > { %v374_v52 = vmax.f32 %v334_v29, %v354_v45  ;;  %v410_v54 = vrot.slane %v369_v46, 1  ;;  %v413_v56 = vrot.slane %v371_v48, 1  ;;  %v461_v57 = vrot.slane %v369_v46, 2  ;;  %v357_v4 = vld [vmem:[%s907_s20 + $0x40] sm:$0xff]  ;;  %v358_v9 = vld [vmem:[%s907_s20 + $0x48] sm:$0x3] }
  0x25   : > { %v411_v55 = vrot.slane %v370_v47, 1  ;;  %v414_v58 = vrot.slane %v372_v50, 1  ;;  %v416_v59 = vrot.slane %v373_v51, 1  ;;  %v462_v61 = vrot.slane %v370_v47, 2  ;;  %v359_v10 = vld [vmem:[%s907_s20 + $0x50] sm:$0xff]  ;;  %v361_v43 = vld [vmem:[%s907_s20 + $0x60] sm:$0xff] }
  0x26   : > { %v417_v60 = vrot.slane %v374_v52, 1  ;;  %v464_v0 = vrot.slane %v371_v48, 2  ;;  %v465_v1 = vrot.slane %v372_v50, 2  ;;  %v467_v2 = vrot.slane %v373_v51, 2  ;;  %v360_v37 = vld [vmem:[%s907_s20 + $0x58] sm:$0x3] }
  0x27   : > { %v412_v63 = vsel %vm409_vm0, %v410_v54, %v411_v55  ;;  %v415_v5 = vsel %vm409_vm0, %v413_v56, %v414_v58  ;;  %v463_v8 = vsel %vm460_vm1, %v461_v57, %v462_v61  ;;  %v468_v14 = vrot.slane %v374_v52, 2  ;;  %v362_v44 = vld [vmem:[%s907_s20 + $0x68] sm:$0x3]  ;;  %v303_v50 = vld [vmem:[%s835_s29 + $0x70] sm:$0xff]  ;;  %v304_v24 = vld [vmem:[%s835_s29 + $0x78] sm:$0x3] }
  0x28   : > { %v418_v6 = vsel %vm409_vm0, %v416_v59, %v417_v60  ;;  %v450_v7 = vmax.f32 %v369_v46, %v412_v63  ;;  %v451_v11 = vmax.f32 %v371_v48, %v415_v5  ;;  %v466_v13 = vsel %vm460_vm1, %v464_v0, %v465_v1  ;;  %v363_v0 = vld [vmem:[%s907_s20 + $0x70] sm:$0xff]  ;;  %v325_v34 = vld [vmem:[%s841_s7 + $0x80] sm:$0xff] }
  0x29   : > { %v452_v12 = vmax.f32 %v373_v51, %v418_v6  ;;  %v375_v16 = vmax.f32 %v335_v32, %v355_v62  ;;  %v376_v17 = vmax.f32 %v336_v33, %v356_v3  ;;  %v377_v18 = vmax.f32 %v337_v39, %v357_v4  ;;  %v323_v51 = vld [vmem:[%s841_s7 + $0x70] sm:$0xff]  ;;  %v324_v62 = vld [vmem:[%s841_s7 + $0x78] sm:$0x3]  ;;  %v306_v3 = vld [vmem:[%s835_s29 + $0x88] sm:$0x3] }
  0x2a   : > { %v501_v15 = vmax.f32 %v450_v7, %v463_v8  ;;  %v469_v19 = vsel %vm460_vm1, %v467_v2, %v468_v14  ;;  %v502_v20 = vmax.f32 %v451_v11, %v466_v13  ;;  %v378_v21 = vmax.f32 %v338_v40, %v358_v9  ;;  %v326_v6 = vld [vmem:[%s841_s7 + $0x88] sm:$0x3]  ;;  %v307_v7 = vld [vmem:[%s835_s29 + $0x90] sm:$0xff]  ;;  %v364_v13 = vld [vmem:[%s907_s20 + $0x78] sm:$0x3] }
  0x2b   : > { %v953_v22 = vmax.f32 %v339_v41, %v359_v10  ;;  %v503_v23 = vmax.f32 %v452_v12, %v469_v19  ;;  %v419_v25 = vrot.slane %v375_v16, 1  ;;  %v420_v27 = vrot.slane %v376_v17, 1  ;;  %v327_v8 = vld [vmem:[%s841_s7 + $0x90] sm:$0xff]  ;;  %v366_v19 = vld [vmem:[%s907_s20 + $0x88] sm:$0x3] }
  0x2c   : > { %v470_v28 = vrot.slane %v375_v16, 2  ;;  %v511_v29 = vmax.f32 %v501_v15, %v502_v20  ;;  %v471_v36 = vrot.slane %v376_v17, 2  ;;  %v422_v32 = vrot.slane %v377_v18, 1 }
  0x2d   : > { %v423_v33 = vrot.slane %v378_v21, 1  ;;  %v421_v38 = vsel %vm409_vm0, %v419_v25, %v420_v27  ;;  %v512_v39 = vmax.f32 %v502_v20, %v503_v23  ;;  %v473_v40 = vrot.slane %v377_v18, 2  ;;  %v308_v25 = vld [vmem:[%s835_s29 + $0x98] sm:$0x3] }
  0x2e   : > { %v474_v41 = vrot.slane %v378_v21, 2  ;;  %v519_v45 = vmax.f32 %v511_v29, %v503_v23  ;;  %v453_v46 = vmax.f32 %v375_v16, %v421_v38  ;;  %v472_v47 = vsel %vm460_vm1, %v470_v28, %v471_v36 }
  0x2f   : > { %v424_v48 = vsel %vm409_vm0, %v422_v32, %v423_v33  ;;  %v380_v55 = vmax.f32 %v340_v42, %v360_v37  ;;  %v425_v56 = vrot.slane %v953_v22, 1  ;;  %v476_v58 = vrot.slane %v953_v22, 2 }
  0x30   : > { %v454_v52 = vmax.f32 %v377_v18, %v424_v48  ;;  %v475_v54 = vsel %vm460_vm1, %v473_v40, %v474_v41  ;;  %528 = vst.msk [vmem:[%s959_s25] sm:$0xff] %vm527_vm2, %v519_v45  ;;  %v504_v57 = vmax.f32 %v453_v46, %v472_v47  ;;  %v381_v59 = vmax.f32 %v341_v49, %v361_v43  ;;  %v305_v49 = vld [vmem:[%s835_s29 + $0x80] sm:$0xff]  ;;  %v367_v40 = vld [vmem:[%s907_s20 + $0x90] sm:$0xff]  ;;  %v368_v45 = vld [vmem:[%s907_s20 + $0x98] sm:$0x3] }
  0x31   : > { %v382_v60 = vmax.f32 %v342_v53, %v362_v44  ;;  %v426_v42 = vrot.slane %v380_v55, 1  ;;  %v477_v61 = vrot.slane %v380_v55, 2  ;;  %v343_v63 = vmax.f32 %v303_v50, %v323_v51  ;;  %v365_v18 = vld [vmem:[%s907_s20 + $0x80] sm:$0xff] }
  0x32   : > { %v505_v26 = vmax.f32 %v454_v52, %v475_v54  ;;  %v520_v1 = vmax.f32 %v512_v39, %v504_v57  ;;  %v513_v2 = vmax.f32 %v503_v23, %v504_v57  ;;  %v428_v30 = vrot.slane %v381_v59, 1 }
  0x33   : > { %v429_v31 = vrot.slane %v382_v60, 1  ;;  %v427_v35 = vsel %vm409_vm0, %v425_v56, %v426_v42  ;;  %v478_v53 = vsel %vm460_vm1, %v476_v58, %v477_v61  ;;  %v479_v5 = vrot.slane %v381_v59, 2 }
  0x34   : > { %v514_v4 = vmax.f32 %v504_v57, %v505_v26  ;;  %529 = vst.msk [vmem:[%s959_s25 + $0x8] sm:$0xff] %vm527_vm2, %v520_v1  ;;  %v521_v9 = vmax.f32 %v513_v2, %v505_v26  ;;  %v455_v10 = vmax.f32 %v953_v22, %v427_v35  ;;  %v480_v12 = vrot.slane %v382_v60, 2  ;;  %v328_v22 = vld [vmem:[%s841_s7 + $0x98] sm:$0x3] }
  0x35   : > { %v430_v11 = vsel %vm409_vm0, %v428_v30, %v429_v31  ;;  %v344_v15 = vmax.f32 %v304_v24, %v324_v62  ;;  %v383_v16 = vmax.f32 %v343_v63, %v363_v0  ;;  %v345_v17 = vmax.f32 %v305_v49, %v325_v34 }
  0x36   : > { %v456_v14 = vmax.f32 %v381_v59, %v430_v11  ;;  %530 = vst.msk [vmem:[%s959_s25 + $0x10] sm:$0xff] %vm527_vm2, %v521_v9  ;;  %v506_v20 = vmax.f32 %v455_v10, %v478_v53  ;;  %v481_v21 = vsel %vm460_vm1, %v479_v5, %v480_v12  ;;  %v346_v23 = vmax.f32 %v306_v3, %v326_v6 }
  0x37   : > { %v347_v27 = vmax.f32 %v307_v7, %v327_v8  ;;  %v384_v29 = vmax.f32 %v344_v15, %v364_v13  ;;  %v431_v36 = vrot.slane %v383_v16, 1  ;;  %v482_v32 = vrot.slane %v383_v16, 2 }
  0x38   : > { %v507_v28 = vmax.f32 %v456_v14, %v481_v21  ;;  %v522_v33 = vmax.f32 %v514_v4, %v506_v20  ;;  %v515_v37 = vmax.f32 %v505_v26, %v506_v20  ;;  %v385_v38 = vmax.f32 %v345_v17, %v365_v18 }
  0x39   : > { %v386_v39 = vmax.f32 %v346_v23, %v366_v19  ;;  %v432_v41 = vrot.slane %v384_v29, 1  ;;  %v483_v43 = vrot.slane %v384_v29, 2  ;;  %v348_v44 = vmax.f32 %v308_v25, %v328_v22 }
  0x3a   : > { %531 = vst.msk [vmem:[%s959_s25 + $0x18] sm:$0xff] %vm527_vm2, %v522_v33  ;;  %v523_v46 = vmax.f32 %v515_v37, %v507_v28  ;;  %v434_v47 = vrot.slane %v385_v38, 1  ;;  %v485_v50 = vrot.slane %v385_v38, 2  ;;  %v387_v55 = vmax.f32 %v347_v27, %v367_v40 }
  0x3b   : > { %v435_v48 = vrot.slane %v386_v39, 1  ;;  %v433_v51 = vsel %vm409_vm0, %v431_v36, %v432_v41  ;;  %v484_v52 = vsel %vm460_vm1, %v482_v32, %v483_v43  ;;  %v486_v54 = vrot.slane %v386_v39, 2 }
  0x3c   : > { %532 = vst.msk [vmem:[%s959_s25 + $0x20] sm:$0xff] %vm527_vm2, %v523_v46  ;;  %v457_v56 = vmax.f32 %v383_v16, %v433_v51  ;;  %v516_v57 = vmax.f32 %v506_v20, %v507_v28  ;;  %v388_v59 = vmax.f32 %v348_v44, %v368_v45  ;;  %v437_v26 = vrot.slane %v387_v55, 1 }
  0x3d   : > { %v436_v58 = vsel %vm409_vm0, %v434_v47, %v435_v48  ;;  %v487_v24 = vsel %vm460_vm1, %v485_v50, %v486_v54  ;;  %v488_v42 = vrot.slane %v387_v55, 2 }
  0x3e   : > { %v458_v60 = vmax.f32 %v385_v38, %v436_v58  ;;  %v508_v61 = vmax.f32 %v457_v56, %v484_v52  ;;  %v438_v62 = vrot.slane %v388_v59, 1  ;;  %v489_v63 = vrot.slane %v388_v59, 2 }
  0x40   : > { %v509_v0 = vmax.f32 %v458_v60, %v487_v24  ;;  %v524_v1 = vmax.f32 %v516_v57, %v508_v61  ;;  %v517_v2 = vmax.f32 %v507_v28, %v508_v61  ;;  %v439_v30 = vsel %vm409_vm0, %v437_v26, %v438_v62 }
  0x41   : > { %v490_v31 = vsel %vm460_vm1, %v488_v42, %v489_v63  ;;  %v459_v49 = vmax.f32 %v387_v55, %v439_v30 }
  0x42   : > { %v518_v3 = vmax.f32 %v508_v61, %v509_v0  ;;  %533 = vst.msk [vmem:[%s959_s25 + $0x28] sm:$0xff] %vm527_vm2, %v524_v1  ;;  %v525_v34 = vmax.f32 %v517_v2, %v509_v0 }
  0x43   : > { %v510_v35 = vmax.f32 %v459_v49, %v490_v31 }
  0x44   : > { %534 = vst.msk [vmem:[%s959_s25 + $0x30] sm:$0xff] %vm527_vm2, %v525_v34 }
  0x45   : > { %v526_v53 = vmax.f32 %v518_v3, %v510_v35 }
  0x47   : > { %535 = vst.msk [vmem:[%s959_s25 + $0x38] sm:$0xff] %vm527_vm2, %v526_v53 }
  0x48 PF: > { %s13_s16 = sadd.s32 1, %s768_s16   ;;  %s1042_s12 = smov %s760_s14 }
  0x49   : > { %p10_p10 = scmp.ge.s32.totalorder %s13_s16, 10   ;;  %s1043_s13 = smov %s764_s15 }
  0x4a   : > { %s1044_s14 = smov %s1047_s17  ;;  %s1045_s15 = smov %s1051_s18 }
  0x4b   :  { %12 = sbr.rel (!%p10_p10) target bundleno = 3 (0x3), region = 68 }

// kernel: sep_inception_forward.25
= control target key start
LH: loop header
LB: loop body
LE: loop exit
PB: predicated region body
PF: predicated region fallthrough
CT: control target
= control target key end

     0   :  { %s261_s12 = smov 0   ;;  %s297_s0 = inlined_call_operand.vmem [shape: f32[16,128], index: 0, kind: input, shape index: {}]   ;;  %s298_s1 = inlined_call_operand.vmem [shape: f32[1,128], index: 1, kind: input, shape index: {}]   ;;  %s299_s2 = inlined_call_operand.vmem [shape: f32[1,128], index: 2, kind: input, shape index: {}]   ;;  %s300_s3 = inlined_call_operand.vmem [shape: f32[16,128], index: 3, kind: output, shape index: {}]  }
   0x1 LB: > { %s238_s13 = sadd.s32 4294967295, %s263_s12   ;;  %p242_p0 = scmp.ge.s32.totalorder %s263_s12, 1  ;;  %s263_s12 = sphi %s261_s12, %s13_s12  }
   0x2   : > { %p136_p1 = scmp.lt.s32.totalorder %s263_s12, 3 }
   0x4   : > { %p137_p2 = pnand %p242_p0, %p136_p1 }
   0x5   : > { %p158_p3 = scmp.lt.s32.totalorder (!%p137_p2), %s238_s13, 1  ;;  %v245_v0 = vld [vmem:[%s298_s1] ss:$0 sm:$0xff] (!%p137_p2) }
   0x6   : > { %140 = sbr.rel (%p137_p2) target bundleno = 24 (0x18), region = 32  ;;  %v246_v2 = vld [vmem:[%s299_s2] ss:$0 sm:$0xff] (!%p137_p2) }
   0xd   : > { %s302_s13 = smov (!%p158_p3, %s238_s13), 1 }
   0xe   : > { %s243_s14 = sshll.u32 %s302_s13, 3 }
   0xf   : > { %s161_s19 = scalar_lea.vmem %s297_s0, %s243_s14  ;;  %s165_s24 = scalar_lea.vmem %s300_s3, %s243_s14 }
  0x10   : > { %v166_v1 = vld [vmem:[%s161_s19] sm:$0xff] }
  0x11   : > { %v174_v3 = vsub.f32 %v166_v1, %v245_v0 }
  0x13   : > { %v182_v4 = vmul.f32 %v246_v2, %v174_v3 }
  0x15   : > { %v183_v5 = vmax.f32 %v182_v4, 0.0 }
  0x17   : > { %184 = vst [vmem:[%s165_s24] sm:$0xff] %v183_v5 }
  0x18 PF: > { %s13_s12 = sadd.s32 1, %s263_s12  }
  0x19   : > { %p10_p4 = scmp.ge.s32.totalorder %s13_s12, 4  }
  0x1b   :  { %12 = sbr.rel (!%p10_p4) target bundleno = 1 (0x1), region = 62 }

// kernel: sep_inception_forward.24
= control target key start
LH: loop header
LB: loop body
LE: loop exit
PB: predicated region body
PF: predicated region fallthrough
CT: control target
= control target key end

     0   :  { %s966_s15 = smov 0   ;;  %s1264_s0 = inlined_call_operand.vmem [shape: bf16[512,4], index: 0, kind: input, shape index: {}]   ;;  %s1265_s1 = inlined_call_operand.vmem [shape: bf16[4,4], index: 1, kind: input, shape index: {}]   ;;  %s1266_s2 = inlined_call_operand.vmem [shape: f32[512,4], index: 2, kind: output, shape index: {0}]   ;;  %s1267_s3 = inlined_call_operand.vmem [shape: f32[1,4], index: 3, kind: output, shape index: {1}]   ;;  %s1268_s4 = inlined_call_operand.vmem [shape: f32[1,4], index: 4, kind: output, shape index: {2}]  }
   0x1 LB: > { %s808_s16 = sadd.s32 4294967295, %s938_s15   ;;  %p812_p0 = scmp.ge.s32.totalorder %s938_s15, 1  ;;  %s938_s15 = sphi %s966_s15, %s15_s15  }
   0x2   : > { %p158_p1 = scmp.lt.s32.totalorder %s938_s15, 3 }
   0x4   : > { %p159_p2 = pnand %p812_p0, %p158_p1 }
   0x5   : > { %s813_s17 = sshll.u32 (!%p159_p2), %s808_s16, 5  ;;  %p817_p4 = scmp.ne.s32.totalorder (!%p159_p2), %s808_s16, 0 }
   0x6   : > { %162 = sbr.rel (%p159_p2) target bundleno = 320 (0x140), region = 28  ;;  %p185_p3 = scmp.lt.s32.totalorder (!%p159_p2), %s813_s17, 63 }
   0xd   : > { %s1270_s17 = smov (!%p185_p3, %s813_s17), 63  ;;  %200 = sbr.rel (%p817_p4) target bundleno = 20 (0x14), region = 32 }
   0xe   : > { %s814_s18 = sshll.u32 %s1270_s17, 2  ;;  %s816_s19 = sshll.u32 %s1270_s17, 3  ;;  %vm201_vm0 = vcmask (!%p817_p4), 24576   ;;  %v940_v0 = vmov (!%p817_p4), 0.0  }
   0xf   : > { %s977_s22 = scalar_lea.vmem %s1264_s0, %s814_s18  ;;  %s982_s25 = scalar_lea.vmem %s1266_s2, %s816_s19  ;;  %202 = vst.msk [vmem:[%s1267_s3] sm:$0x1] (!%p817_p4), %vm201_vm0, %v940_v0  ;;  %203 = vst.msk [vmem:[%s1268_s4] sm:$0x1] (!%p817_p4), %vm201_vm0, %v940_v0 }
  0x14 PF: > { %v236_v1 = vld [vmem:[%s1265_s1] sm:$0x3]  ;;  %vm366_vm1 = vcmask 1041408   ;;  %vm317_vm2 = vcmask 31744   ;;  %v917_v4 = vld [vmem:[%s977_s22 + $0x8] sm:$0xff]   ;;  %v918_v5 = vld [vmem:[%s977_s22 + $0x10] sm:$0xff]  }
  0x15   : > { %v916_v2 = vld [vmem:[%s977_s22] sm:$0xff]   ;;  %905 = vmatprep.subr.msk.bf16.mxu0 %vm366_vm1, %v236_v1  ;;  %v368_v3 = vsel %vm366_vm1, %v236_v1, 0  ;;  %906 = vmatprep.subr.msk.bf16.mxu1 %vm366_vm1, %v236_v1  ;;  %v919_v6 = vld [vmem:[%s977_s22 + $0x18] sm:$0xff]   ;;  %v925_v9 = vld [vmem:[%s977_s22 + $0x48] sm:$0xff]   ;;  %vm634_vm3 = vcmask 24576  }
  0x16   : > { %870 = vmatpush3.bf16.msra.mxu0 %v368_v3  ;;  %871 = vmatprep.mubr.msk.bf16.mxu0 %vm317_vm2, %v916_v2  ;;  %v920_v7 = vld [vmem:[%s977_s22 + $0x20] sm:$0xff]   ;;  %v926_v10 = vld [vmem:[%s977_s22 + $0x50] sm:$0xff]   ;;  %v927_v11 = vld [vmem:[%s977_s22 + $0x58] sm:$0xff]  }
  0x17   : > { %904 = vmatpush3.bf16.msra.mxu1 %v368_v3  ;;  %v924_v8 = vld [vmem:[%s977_s22 + $0x40] sm:$0xff]   ;;  %v921_v12 = vld [vmem:[%s977_s22 + $0x28] sm:$0xff]   ;;  %v922_v14 = vld [vmem:[%s977_s22 + $0x30] sm:$0xff]  }
  0x18   : > { %887 = vmatprep.mubr.msk.bf16.mxu1 %vm317_vm2, %v924_v8  ;;  %v928_v13 = vld [vmem:[%s977_s22 + $0x60] sm:$0xff]   ;;  %v929_v15 = vld [vmem:[%s977_s22 + $0x68] sm:$0xff]   ;;  %v923_v16 = vld [vmem:[%s977_s22 + $0x38] sm:$0xff]  }
  0x19   : > { %872 = vmatmul.mubr.msk.bf16.vlgmr.msra.gmra.mrb[0].mxu0 %vm317_vm2, %v917_v4  ;;  %v930_v17 = vld [vmem:[%s977_s22 + $0x70] sm:$0xff]   ;;  %v931_v18 = vld [vmem:[%s977_s22 + $0x78] sm:$0xff]  }
  0x1a   : > { %875 = vmatprep.mubr.msk.bf16.mxu0 %vm317_vm2, %v918_v5  ;;  %888 = vmatmul.mubr.msk.bf16.vlgmr.msra.gmra.mrb[0].mxu1 %vm317_vm2, %v925_v9 }
  0x1b   : > { %891 = vmatprep.mubr.msk.bf16.mxu1 %vm317_vm2, %v926_v10 }
  0x21   : > { %876 = vmatmul.mubr.msk.bf16.gmra.mrb[4].mxu0 %vm317_vm2, %v919_v6 }
  0x22   : > { %879 = vmatprep.mubr.msk.bf16.mxu0 %vm317_vm2, %v920_v7  ;;  %892 = vmatmul.mubr.msk.bf16.gmra.mrb[4].mxu1 %vm317_vm2, %v927_v11 }
  0x23   : > { %895 = vmatprep.mubr.msk.bf16.mxu1 %vm317_vm2, %v928_v13 }
  0x29   : > { %880 = vmatmul.mubr.msk.bf16.gmra.mrb[8].mxu0 %vm317_vm2, %v921_v12 }
  0x2a   : > { %883 = vmatprep.mubr.msk.bf16.mxu0 %vm317_vm2, %v922_v14  ;;  %896 = vmatmul.mubr.msk.bf16.gmra.mrb[8].mxu1 %vm317_vm2, %v929_v15 }
  0x2b   : > { %899 = vmatprep.mubr.msk.bf16.mxu1 %vm317_vm2, %v930_v17 }
  0x31   : > { %884 = vmatmul.mubr.msk.bf16.gmra.mrb[12].mxu0 %vm317_vm2, %v923_v16 }
  0x32   : > { %900 = vmatmul.mubr.msk.bf16.gmra.mrb[12].mxu1 %vm317_vm2, %v931_v18 }
  0xec   : > { %v873_v19 = vpop.f32.mrb[0].mxu0 }
  0xed   : > { %533 = vst.msk [vmem:[%s982_s25 + $0x10] sm:$0xff] %vm317_vm2, %v873_v19  ;;  %v404_v20 = vpop.f32.mrb[1].mxu0  ;;  %v639_v24 = vmul.f32 %v873_v19, %v873_v19  ;;  %v567_v29 = vsel %vm317_vm2, %v873_v19, 0.0  ;;  %v1038_v35 = vpop.f32.mrb[0].mxu1 }
  0xee   : > { %531 = vst.msk [vmem:[%s982_s25] sm:$0xff] %vm317_vm2, %v404_v20  ;;  %v637_v21 = vmul.f32 %v404_v20, %v404_v20  ;;  %v874_v22 = vpop.f32.mrb[2].mxu0  ;;  %v564_v25 = vsel %vm317_vm2, %v404_v20, 0.0  ;;  %549 = vst.msk [vmem:[%s982_s25 + $0x90] sm:$0xff] %vm317_vm2, %v1038_v35  ;;  %v1045_v39 = vpop.f32.mrb[1].mxu1 }
  0xef   : > { %534 = vst.msk [vmem:[%s982_s25 + $0x18] sm:$0xff] %vm317_vm2, %v874_v22  ;;  %v407_v23 = vpop.f32.mrb[3].mxu0  ;;  %v640_v31 = vmul.f32 %v874_v22, %v874_v22  ;;  %v672_v36 = vsel %vm317_vm2, %v639_v24, 0.0  ;;  %v569_v37 = vsel %vm317_vm2, %v874_v22, 0.0  ;;  %547 = vst.msk [vmem:[%s982_s25 + $0x80] sm:$0xff] %vm317_vm2, %v1045_v39  ;;  %v1052_v43 = vpop.f32.mrb[2].mxu1 }
  0xf0   : > { %532 = vst.msk [vmem:[%s982_s25 + $0x8] sm:$0xff] %vm317_vm2, %v407_v23  ;;  %v565_v26 = vsel %vm317_vm2, %v407_v23, 0.0  ;;  %v638_v27 = vmul.f32 %v407_v23, %v407_v23  ;;  %v669_v30 = vsel %vm317_vm2, %v637_v21, 0.0  ;;  %550 = vst.msk [vmem:[%s982_s25 + $0x98] sm:$0xff] %vm317_vm2, %v1052_v43  ;;  %v1061_v48 = vpop.f32.mrb[3].mxu1 }
  0xf1   : > { %v566_v28 = vadd.f32 %v565_v26, %v564_v25  ;;  %v674_v44 = vsel %vm317_vm2, %v640_v31, 0.0  ;;  %548 = vst.msk [vmem:[%s982_s25 + $0x88] sm:$0xff] %vm317_vm2, %v1061_v48 }
  0xf2   : > { %v670_v32 = vsel %vm317_vm2, %v638_v27, 0.0 }
  0xf3   : > { %v568_v33 = vadd.f32 %v567_v29, %v566_v28  ;;  %v671_v34 = vadd.f32 %v670_v32, %v669_v30 }
  0xf4   : > { %v877_v38 = vpop.f32.mrb[4].mxu0 }
  0xf5   : > { %v673_v40 = vadd.f32 %v672_v36, %v671_v34  ;;  %537 = vst.msk [vmem:[%s982_s25 + $0x30] sm:$0xff] %vm317_vm2, %v877_v38  ;;  %v420_v41 = vpop.f32.mrb[5].mxu0  ;;  %v570_v42 = vadd.f32 %v569_v37, %v568_v33  ;;  %v643_v52 = vmul.f32 %v877_v38, %v877_v38  ;;  %v575_v58 = vsel %vm317_vm2, %v877_v38, 0.0  ;;  %v1074_v63 = vpop.f32.mrb[4].mxu1 }
  0xf6   : > { %535 = vst.msk [vmem:[%s982_s25 + $0x20] sm:$0xff] %vm317_vm2, %v420_v41  ;;  %v571_v45 = vsel %vm317_vm2, %v420_v41, 0.0  ;;  %v641_v46 = vmul.f32 %v420_v41, %v420_v41  ;;  %v878_v47 = vpop.f32.mrb[6].mxu0  ;;  %553 = vst.msk [vmem:[%s982_s25 + $0xb0] sm:$0xff] %vm317_vm2, %v1074_v63  ;;  %v1081_v3 = vpop.f32.mrb[5].mxu1 }
  0xf7   : > { %v572_v49 = vadd.f32 %v571_v45, %v570_v42  ;;  %v675_v50 = vadd.f32 %v674_v44, %v673_v40  ;;  %538 = vst.msk [vmem:[%s982_s25 + $0x38] sm:$0xff] %vm317_vm2, %v878_v47  ;;  %v423_v51 = vpop.f32.mrb[7].mxu0  ;;  %v644_v59 = vmul.f32 %v878_v47, %v878_v47  ;;  %v680_v0 = vsel %vm317_vm2, %v643_v52, 0.0  ;;  %551 = vst.msk [vmem:[%s982_s25 + $0xa0] sm:$0xff] %vm317_vm2, %v1081_v3  ;;  %v1088_v7 = vpop.f32.mrb[6].mxu1 }
  0xf8   : > { %v676_v53 = vsel %vm317_vm2, %v641_v46, 0.0  ;;  %536 = vst.msk [vmem:[%s982_s25 + $0x28] sm:$0xff] %vm317_vm2, %v423_v51  ;;  %v573_v54 = vsel %vm317_vm2, %v423_v51, 0.0  ;;  %v642_v55 = vmul.f32 %v423_v51, %v423_v51  ;;  %v577_v1 = vsel %vm317_vm2, %v878_v47, 0.0  ;;  %554 = vst.msk [vmem:[%s982_s25 + $0xb8] sm:$0xff] %vm317_vm2, %v1088_v7  ;;  %v1097_v12 = vpop.f32.mrb[7].mxu1 }
  0xf9   : > { %v677_v56 = vadd.f32 %v676_v53, %v675_v50  ;;  %v574_v57 = vadd.f32 %v573_v54, %v572_v49  ;;  %v682_v8 = vsel %vm317_vm2, %v644_v59, 0.0  ;;  %552 = vst.msk [vmem:[%s982_s25 + $0xa8] sm:$0xff] %vm317_vm2, %v1097_v12 }
  0xfa   : > { %v678_v60 = vsel %vm317_vm2, %v642_v55, 0.0 }
  0xfb   : > { %v576_v61 = vadd.f32 %v575_v58, %v574_v57  ;;  %v679_v62 = vadd.f32 %v678_v60, %v677_v56  ;;  %v653_v57 = vmul.f32 %v1045_v39, %v1045_v39 }
  0xfc   : > { %v881_v2 = vpop.f32.mrb[8].mxu0 }
  0xfd   : > { %v681_v4 = vadd.f32 %v680_v0, %v679_v62  ;;  %541 = vst.msk [vmem:[%s982_s25 + $0x50] sm:$0xff] %vm317_vm2, %v881_v2  ;;  %v436_v5 = vpop.f32.mrb[9].mxu0  ;;  %v578_v6 = vadd.f32 %v577_v1, %v576_v61  ;;  %v647_v16 = vmul.f32 %v881_v2, %v881_v2  ;;  %v583_v22 = vsel %vm317_vm2, %v881_v2, 0.0  ;;  %v1110_v27 = vpop.f32.mrb[8].mxu1 }
  0xfe   : > { %539 = vst.msk [vmem:[%s982_s25 + $0x40] sm:$0xff] %vm317_vm2, %v436_v5  ;;  %v579_v9 = vsel %vm317_vm2, %v436_v5, 0.0  ;;  %v645_v10 = vmul.f32 %v436_v5, %v436_v5  ;;  %v882_v11 = vpop.f32.mrb[10].mxu0  ;;  %557 = vst.msk [vmem:[%s982_s25 + $0xd0] sm:$0xff] %vm317_vm2, %v1110_v27  ;;  %v1117_v31 = vpop.f32.mrb[9].mxu1  ;;  %v595_v0 = vsel %vm317_vm2, %v1045_v39, 0.0 }
  0xff   : > { %v580_v13 = vadd.f32 %v579_v9, %v578_v6  ;;  %v683_v14 = vadd.f32 %v682_v8, %v681_v4  ;;  %542 = vst.msk [vmem:[%s982_s25 + $0x58] sm:$0xff] %vm317_vm2, %v882_v11  ;;  %v439_v15 = vpop.f32.mrb[11].mxu0  ;;  %v648_v23 = vmul.f32 %v882_v11, %v882_v11  ;;  %v688_v28 = vsel %vm317_vm2, %v647_v16, 0.0  ;;  %555 = vst.msk [vmem:[%s982_s25 + $0xc0] sm:$0xff] %vm317_vm2, %v1117_v31  ;;  %v1124_v36 = vpop.f32.mrb[10].mxu1 }
 0x100   : > { %v684_v17 = vsel %vm317_vm2, %v645_v10, 0.0  ;;  %540 = vst.msk [vmem:[%s982_s25 + $0x48] sm:$0xff] %vm317_vm2, %v439_v15  ;;  %v581_v18 = vsel %vm317_vm2, %v439_v15, 0.0  ;;  %v646_v19 = vmul.f32 %v439_v15, %v439_v15  ;;  %v585_v29 = vsel %vm317_vm2, %v882_v11, 0.0  ;;  %558 = vst.msk [vmem:[%s982_s25 + $0xd8] sm:$0xff] %vm317_vm2, %v1124_v36  ;;  %v1133_v42 = vpop.f32.mrb[11].mxu1 }
 0x101   : > { %v685_v20 = vadd.f32 %v684_v17, %v683_v14  ;;  %v582_v21 = vadd.f32 %v581_v18, %v580_v13  ;;  %v690_v37 = vsel %vm317_vm2, %v648_v23, 0.0  ;;  %556 = vst.msk [vmem:[%s982_s25 + $0xc8] sm:$0xff] %vm317_vm2, %v1133_v42  ;;  %v700_v8 = vsel %vm317_vm2, %v653_v57, 0.0 }
 0x102   : > { %v686_v24 = vsel %vm317_vm2, %v646_v19, 0.0  ;;  %v654_v9 = vmul.f32 %v1061_v48, %v1061_v48  ;;  %v655_v13 = vmul.f32 %v1038_v35, %v1038_v35  ;;  %v597_v14 = vsel %vm317_vm2, %v1061_v48, 0.0 }
 0x103   : > { %v584_v25 = vadd.f32 %v583_v22, %v582_v21  ;;  %v687_v26 = vadd.f32 %v686_v24, %v685_v20  ;;  %v599_v17 = vsel %vm317_vm2, %v1038_v35, 0.0  ;;  %v656_v18 = vmul.f32 %v1052_v43, %v1052_v43 }
 0x104   : > { %v885_v30 = vpop.f32.mrb[12].mxu0  ;;  %v702_v19 = vsel %vm317_vm2, %v654_v9, 0.0  ;;  %v657_v20 = vmul.f32 %v1081_v3, %v1081_v3  ;;  %v704_v23 = vsel %vm317_vm2, %v655_v13, 0.0  ;;  %v601_v48 = vsel %vm317_vm2, %v1052_v43, 0.0 }
 0x105   : > { %v689_v32 = vadd.f32 %v688_v28, %v687_v26  ;;  %545 = vst.msk [vmem:[%s982_s25 + $0x70] sm:$0xff] %vm317_vm2, %v885_v30  ;;  %v452_v33 = vpop.f32.mrb[13].mxu0  ;;  %v586_v34 = vadd.f32 %v585_v29, %v584_v25  ;;  %v651_v47 = vmul.f32 %v885_v30, %v885_v30  ;;  %v591_v54 = vsel %vm317_vm2, %v885_v30, 0.0  ;;  %v1148_v60 = vpop.f32.mrb[12].mxu1 }
 0x106   : > { %543 = vst.msk [vmem:[%s982_s25 + $0x60] sm:$0xff] %vm317_vm2, %v452_v33  ;;  %v587_v38 = vsel %vm317_vm2, %v452_v33, 0.0  ;;  %v649_v40 = vmul.f32 %v452_v33, %v452_v33  ;;  %v886_v41 = vpop.f32.mrb[14].mxu0  ;;  %561 = vst.msk [vmem:[%s982_s25 + $0xf0] sm:$0xff] %vm317_vm2, %v1148_v60  ;;  %v1157_v1 = vpop.f32.mrb[13].mxu1  ;;  %v603_v24 = vsel %vm317_vm2, %v1081_v3, 0.0  ;;  %v658_v29 = vmul.f32 %v1097_v12, %v1097_v12 }
 0x107   : > { %v588_v44 = vadd.f32 %v587_v38, %v586_v34  ;;  %v691_v45 = vadd.f32 %v690_v37, %v689_v32  ;;  %546 = vst.msk [vmem:[%s982_s25 + $0x78] sm:$0xff] %vm317_vm2, %v886_v41  ;;  %v455_v46 = vpop.f32.mrb[15].mxu0  ;;  %v652_v55 = vmul.f32 %v886_v41, %v886_v41  ;;  %v696_v61 = vsel %vm317_vm2, %v651_v47, 0.0  ;;  %559 = vst.msk [vmem:[%s982_s25 + $0xe0] sm:$0xff] %vm317_vm2, %v1157_v1  ;;  %v1162_v5 = vpop.f32.mrb[14].mxu1 }
 0x108   : > { %v692_v49 = vsel %vm317_vm2, %v649_v40, 0.0  ;;  %544 = vst.msk [vmem:[%s982_s25 + $0x68] sm:$0xff] %vm317_vm2, %v455_v46  ;;  %v589_v50 = vsel %vm317_vm2, %v455_v46, 0.0  ;;  %v650_v51 = vmul.f32 %v455_v46, %v455_v46  ;;  %v593_v62 = vsel %vm317_vm2, %v886_v41, 0.0  ;;  %562 = vst.msk [vmem:[%s982_s25 + $0xf8] sm:$0xff] %vm317_vm2, %v1162_v5  ;;  %v1171_v39 = vpop.f32.mrb[15].mxu1 }
 0x109   : > { %v693_v52 = vadd.f32 %v692_v49, %v691_v45  ;;  %v590_v53 = vadd.f32 %v589_v50, %v588_v44  ;;  %v698_v6 = vsel %vm317_vm2, %v652_v55, 0.0  ;;  %560 = vst.msk [vmem:[%s982_s25 + $0xe8] sm:$0xff] %vm317_vm2, %v1171_v39  ;;  %v706_v26 = vsel %vm317_vm2, %v656_v18, 0.0 }
 0x10a   : > { %v694_v56 = vsel %vm317_vm2, %v650_v51, 0.0  ;;  %v708_v28 = vsel %vm317_vm2, %v657_v20, 0.0  ;;  %v659_v33 = vmul.f32 %v1074_v63, %v1074_v63  ;;  %v605_v43 = vsel %vm317_vm2, %v1097_v12, 0.0 }
 0x10b   : > { %v592_v58 = vadd.f32 %v591_v54, %v590_v53  ;;  %v695_v59 = vadd.f32 %v694_v56, %v693_v52  ;;  %v607_v3 = vsel %vm317_vm2, %v1074_v63, 0.0  ;;  %v660_v38 = vmul.f32 %v1088_v7, %v1088_v7 }
 0x10c   : > { %v710_v40 = vsel %vm317_vm2, %v658_v29, 0.0  ;;  %v661_v41 = vmul.f32 %v1117_v31, %v1117_v31  ;;  %v712_v46 = vsel %vm317_vm2, %v659_v33, 0.0  ;;  %v609_v12 = vsel %vm317_vm2, %v1088_v7, 0.0 }
 0x10d   : > { %v697_v2 = vadd.f32 %v696_v61, %v695_v59  ;;  %v594_v4 = vadd.f32 %v593_v62, %v592_v58  ;;  %v611_v47 = vsel %vm317_vm2, %v1117_v31, 0.0  ;;  %v714_v50 = vsel %vm317_vm2, %v660_v38, 0.0 }
 0x10e   : > { %v716_v51 = vsel %vm317_vm2, %v661_v41, 0.0  ;;  %v662_v52 = vmul.f32 %v1133_v42, %v1133_v42  ;;  %v663_v55 = vmul.f32 %v1110_v27, %v1110_v27  ;;  %v613_v7 = vsel %vm317_vm2, %v1133_v42, 0.0 }
 0x10f   : > { %v596_v10 = vadd.f32 %v595_v0, %v594_v4  ;;  %v699_v11 = vadd.f32 %v698_v6, %v697_v2  ;;  %v615_v31 = vsel %vm317_vm2, %v1110_v27, 0.0  ;;  %v664_v58 = vmul.f32 %v1124_v36, %v1124_v36 }
 0x110   : > { %v718_v59 = vsel %vm317_vm2, %v662_v52, 0.0  ;;  %v665_v61 = vmul.f32 %v1157_v1, %v1157_v1  ;;  %v720_v2 = vsel %vm317_vm2, %v663_v55, 0.0  ;;  %v617_v42 = vsel %vm317_vm2, %v1124_v36, 0.0 }
 0x111   : > { %v701_v15 = vadd.f32 %v700_v8, %v699_v11  ;;  %v598_v16 = vadd.f32 %v597_v14, %v596_v10  ;;  %v619_v4 = vsel %vm317_vm2, %v1157_v1, 0.0  ;;  %v722_v8 = vsel %vm317_vm2, %v664_v58, 0.0 }
 0x112   : > { %v724_v9 = vsel %vm317_vm2, %v665_v61, 0.0  ;;  %v666_v10 = vmul.f32 %v1171_v39, %v1171_v39  ;;  %v667_v14 = vmul.f32 %v1148_v60, %v1148_v60  ;;  %v621_v36 = vsel %vm317_vm2, %v1171_v39, 0.0 }
 0x113   : > { %v600_v21 = vadd.f32 %v599_v17, %v598_v16  ;;  %v703_v22 = vadd.f32 %v702_v19, %v701_v15  ;;  %v623_v1 = vsel %vm317_vm2, %v1148_v60, 0.0  ;;  %v668_v17 = vmul.f32 %v1162_v5, %v1162_v5 }
 0x114   : > { %v726_v18 = vsel %vm317_vm2, %v666_v10, 0.0 }
 0x115   : > { %v705_v25 = vadd.f32 %v704_v23, %v703_v22  ;;  %v602_v35 = vadd.f32 %v601_v48, %v600_v21  ;;  %v728_v21 = vsel %vm317_vm2, %v667_v14, 0.0  ;;  %v625_v22 = vsel %vm317_vm2, %v1162_v5, 0.0 }
 0x116   : > { %v730_v39 = vsel %vm317_vm2, %v668_v17, 0.0 }
 0x117   : > { %v604_v30 = vadd.f32 %v603_v24, %v602_v35  ;;  %v707_v32 = vadd.f32 %v706_v26, %v705_v25 }
 0x119   : > { %v709_v34 = vadd.f32 %v708_v28, %v707_v32  ;;  %v606_v37 = vadd.f32 %v605_v43, %v604_v30  ;;  %v563_v43 = vld [vmem:[%s1267_s3] sm:$0x1] }
 0x11b   : > { %v608_v44 = vadd.f32 %v607_v3, %v606_v37  ;;  %v711_v45 = vadd.f32 %v710_v40, %v709_v34  ;;  %v636_v37 = vld [vmem:[%s1268_s4] sm:$0x1] }
 0x11d   : > { %v713_v49 = vadd.f32 %v712_v46, %v711_v45  ;;  %v610_v63 = vadd.f32 %v609_v12, %v608_v44 }
 0x11f   : > { %v612_v53 = vadd.f32 %v611_v47, %v610_v63  ;;  %v715_v54 = vadd.f32 %v714_v50, %v713_v49 }
 0x121   : > { %v717_v56 = vadd.f32 %v716_v51, %v715_v54  ;;  %v614_v57 = vadd.f32 %v613_v7, %v612_v53 }
 0x123   : > { %v616_v62 = vadd.f32 %v615_v31, %v614_v57  ;;  %v719_v0 = vadd.f32 %v718_v59, %v717_v56 }
 0x125   : > { %v721_v6 = vadd.f32 %v720_v2, %v719_v0  ;;  %v618_v27 = vadd.f32 %v617_v42, %v616_v62 }
 0x127   : > { %v620_v11 = vadd.f32 %v619_v4, %v618_v27  ;;  %v723_v13 = vadd.f32 %v722_v8, %v721_v6 }
 0x129   : > { %v725_v15 = vadd.f32 %v724_v9, %v723_v13  ;;  %v622_v16 = vadd.f32 %v621_v36, %v620_v11 }
 0x12b   : > { %v624_v19 = vadd.f32 %v623_v1, %v622_v16  ;;  %v727_v20 = vadd.f32 %v726_v18, %v725_v15 }
 0x12d   : > { %v626_v23 = vadd.f32 %v625_v22, %v624_v19  ;;  %v729_v48 = vadd.f32 %v728_v21, %v727_v20 }
 0x12f   : > { %v627_v24 = vrot.slane %v626_v23, 4  ;;  %v731_v25 = vadd.f32 %v730_v39, %v729_v48 }
 0x131   : > { %v628_v35 = vadd.f32 %v627_v24, %v626_v23  ;;  %v732_v60 = vrot.slane %v731_v25, 4 }
 0x133   : > { %v629_v26 = vrot.slane %v628_v35, 2  ;;  %v733_v28 = vadd.f32 %v732_v60, %v731_v25 }
 0x135   : > { %v630_v29 = vadd.f32 %v629_v26, %v628_v35  ;;  %v734_v30 = vrot.slane %v733_v28, 2 }
 0x137   : > { %v631_v32 = vrot.slane %v630_v29, 1  ;;  %v735_v33 = vadd.f32 %v734_v30, %v733_v28 }
 0x139   : > { %v632_v34 = vadd.f32 %v631_v32, %v630_v29  ;;  %v736_v5 = vrot.slane %v735_v33, 1 }
 0x13b   : > { %v633_v3 = vadd.f32 %v632_v34, %v563_v43  ;;  %v737_v38 = vadd.f32 %v736_v5, %v735_v33 }
 0x13d   : > { %635 = vst.msk [vmem:[%s1267_s3] sm:$0x1] %vm634_vm3, %v633_v3  ;;  %v738_v40 = vadd.f32 %v737_v38, %v636_v37 }
 0x13f   : > { %739 = vst.msk [vmem:[%s1268_s4] sm:$0x1] %vm634_vm3, %v738_v40 }
 0x140 PF: > { %s15_s15 = sadd.s32 1, %s938_s15  }
 0x141   : > { %p12_p5 = scmp.ge.s32.totalorder %s15_s15, 4  }
 0x143   :  { %14 = sbr.rel (!%p12_p5) target bundleno = 1 (0x1), region = 78 }

// kernel: sep_inception_forward.14
= control target key start
LH: loop header
LB: loop body
LE: loop exit
PB: predicated region body
PF: predicated region fallthrough
CT: control target
= control target key end

     0   :  { %s338_s12 = smov 0   ;;  %s361_s0 = inlined_call_operand.vmem [shape: f32[16,384], index: 0, kind: input, shape index: {}]   ;;  %s362_s1 = inlined_call_operand.vmem [shape: f32[1,384], index: 1, kind: input, shape index: {}]   ;;  %s363_s2 = inlined_call_operand.vmem [shape: f32[1,384], index: 2, kind: input, shape index: {}]   ;;  %s364_s3 = inlined_call_operand.vmem [shape: bf16[16,384], index: 3, kind: output, shape index: {}]  }
   0x1 LB: > { %s287_s13 = sadd.s32 4294967295, %s316_s12   ;;  %p291_p0 = scmp.ge.s32.totalorder %s316_s12, 1  ;;  %s316_s12 = sphi %s338_s12, %s13_s12  }
   0x2   : > { %p137_p1 = scmp.lt.s32.totalorder %s316_s12, 3 }
   0x4   : > { %p138_p2 = pnand %p291_p0, %p137_p1 }
   0x5   : > { %p161_p3 = scmp.lt.s32.totalorder (!%p138_p2), %s287_s13, 1  ;;  %v176_v0 = vlaneseq (!%p138_p2)  ;;  %v174_v2 = vld [vmem:[%s362_s1] sm:$0x7] (!%p138_p2) }
   0x6   : > { %141 = sbr.rel (%p138_p2) target bundleno = 27 (0x1b), region = 32  ;;  %v194_v3 = vld [vmem:[%s363_s2] sm:$0x7] (!%p138_p2) }
   0x7   : > { %v177_v1 = vshrl.u32 (!%p138_p2), %v176_v0, 7 }
   0x9   : > { %v178_v4 = vsub.s32 (!%p138_p2), 0, %v177_v1  ;;  %v182_v5 = vsub.s32 (!%p138_p2), 1, %v177_v1  ;;  %v186_v6 = vsub.s32 (!%p138_p2), 2, %v177_v1 }
   0xb   : > { %v179_v7 = vrot.slane (!%p138_p2), %v174_v2, %v178_v4  ;;  %v183_v8 = vrot.slane (!%p138_p2), %v174_v2, %v182_v5  ;;  %v199_v9 = vrot.slane (!%p138_p2), %v194_v3, %v178_v4  ;;  %v203_v10 = vrot.slane (!%p138_p2), %v194_v3, %v182_v5 }
   0xc   : > { %v187_v14 = vrot.slane (!%p138_p2), %v174_v2, %v186_v6  ;;  %v207_v15 = vrot.slane (!%p138_p2), %v194_v3, %v186_v6 }
   0xd   : > { %s366_s13 = smov (!%p161_p3, %s287_s13), 1 }
   0xe   : > { %s300_s18 = smul.u32 24, %s366_s13 }
   0xf   : > { %s301_s22 = smul.u32 12, %s366_s13 }
  0x10   : > { %s165_s21 = scalar_lea.vmem %s361_s0, %s300_s18 }
  0x11   : > { %v171_v11 = vld [vmem:[%s165_s21] sm:$0xff]  ;;  %v172_v12 = vld [vmem:[%s165_s21 + $0x8] sm:$0xff]  ;;  %v173_v13 = vld [vmem:[%s165_s21 + $0x10] sm:$0xff]  ;;  %s170_s25 = scalar_lea.vmem %s364_s3, %s301_s22 }
  0x12   : > { %v191_v16 = vsub.f32 %v171_v11, %v179_v7  ;;  %v192_v17 = vsub.f32 %v172_v12, %v183_v8  ;;  %v193_v18 = vsub.f32 %v173_v13, %v187_v14 }
  0x14   : > { %v211_v19 = vmul.f32 %v199_v9, %v191_v16  ;;  %v212_v20 = vmul.f32 %v203_v10, %v192_v17  ;;  %v213_v21 = vmul.f32 %v207_v15, %v193_v18 }
  0x16   : > { %v214_v22 = vmax.f32 %v211_v19, 0.0  ;;  %v215_v23 = vmax.f32 %v212_v20, 0.0  ;;  %v216_v24 = vmax.f32 %v213_v21, 0.0 }
  0x18   : > { %v298_v25 = vpack.c.bf16 %v215_v23, %v214_v22  ;;  %v299_v26 = vpack.c.bf16 %v216_v24, %v216_v24 }
  0x1a   : > { %230 = vst [vmem:[%s170_s25] sm:$0xff] %v298_v25  ;;  %231 = vst [vmem:[%s170_s25 + $0x8] sm:$0xf] %v299_v26 }
  0x1b PF: > { %s13_s12 = sadd.s32 1, %s316_s12  }
  0x1c   : > { %p10_p4 = scmp.ge.s32.totalorder %s13_s12, 4  }
  0x1e   :  { %12 = sbr.rel (!%p10_p4) target bundleno = 1 (0x1), region = 62 }

// kernel: sep_inception_forward.13
= control target key start
LH: loop header
LB: loop body
LE: loop exit
PB: predicated region body
PF: predicated region fallthrough
CT: control target
= control target key end

     0   :  { %s967_s15 = smov 0   ;;  %s1268_s0 = inlined_call_operand.vmem [shape: bf16[512,4], index: 0, kind: input, shape index: {}]   ;;  %s1269_s1 = inlined_call_operand.vmem [shape: bf16[4,12], index: 1, kind: input, shape index: {}]   ;;  %s1270_s2 = inlined_call_operand.vmem [shape: f32[512,12], index: 2, kind: output, shape index: {0}]   ;;  %s1271_s3 = inlined_call_operand.vmem [shape: f32[1,12], index: 3, kind: output, shape index: {1}]   ;;  %s1272_s4 = inlined_call_operand.vmem [shape: f32[1,12], index: 4, kind: output, shape index: {2}]  }
   0x1 LB: > { %s809_s16 = sadd.s32 4294967295, %s939_s15   ;;  %p813_p0 = scmp.ge.s32.totalorder %s939_s15, 1  ;;  %s939_s15 = sphi %s967_s15, %s15_s15  }
   0x2   : > { %p158_p1 = scmp.lt.s32.totalorder %s939_s15, 3 }
   0x4   : > { %p159_p2 = pnand %p813_p0, %p158_p1 }
   0x5   : > { %s814_s17 = sshll.u32 (!%p159_p2), %s809_s16, 5  ;;  %p818_p4 = scmp.ne.s32.totalorder (!%p159_p2), %s809_s16, 0 }
   0x6   : > { %162 = sbr.rel (%p159_p2) target bundleno = 320 (0x140), region = 28  ;;  %p185_p3 = scmp.lt.s32.totalorder (!%p159_p2), %s814_s17, 63 }
   0xd   : > { %s1274_s17 = smov (!%p185_p3, %s814_s17), 63  ;;  %200 = sbr.rel (%p818_p4) target bundleno = 20 (0x14), region = 32 }
   0xe   : > { %s815_s18 = sshll.u32 %s1274_s17, 2  ;;  %s817_s19 = sshll.u32 %s1274_s17, 3  ;;  %vm201_vm0 = vcmask (!%p818_p4), 90112   ;;  %v941_v0 = vmov (!%p818_p4), 0.0  }
   0xf   : > { %s978_s22 = scalar_lea.vmem %s1268_s0, %s815_s18  ;;  %s983_s25 = scalar_lea.vmem %s1270_s2, %s817_s19  ;;  %202 = vst.msk [vmem:[%s1271_s3] sm:$0x1] (!%p818_p4), %vm201_vm0, %v941_v0  ;;  %203 = vst.msk [vmem:[%s1272_s4] sm:$0x1] (!%p818_p4), %vm201_vm0, %v941_v0 }
  0x14 PF: > { %v236_v1 = vld [vmem:[%s1269_s1] sm:$0x3]  ;;  %vm366_vm1 = vcmask 1041408   ;;  %vm317_vm2 = vcmask 31744   ;;  %v918_v4 = vld [vmem:[%s978_s22 + $0x8] sm:$0xff]   ;;  %v919_v5 = vld [vmem:[%s978_s22 + $0x10] sm:$0xff]  }
  0x15   : > { %v917_v2 = vld [vmem:[%s978_s22] sm:$0xff]   ;;  %906 = vmatprep.subr.msk.bf16.mxu0 %vm366_vm1, %v236_v1  ;;  %v368_v3 = vsel %vm366_vm1, %v236_v1, 0  ;;  %907 = vmatprep.subr.msk.bf16.mxu1 %vm366_vm1, %v236_v1  ;;  %v920_v6 = vld [vmem:[%s978_s22 + $0x18] sm:$0xff]   ;;  %v926_v9 = vld [vmem:[%s978_s22 + $0x48] sm:$0xff]   ;;  %vm531_vm3 = vcmask 97280   ;;  %vm635_vm4 = vcmask 90112  }
  0x16   : > { %871 = vmatpush3.bf16.msra.mxu0 %v368_v3  ;;  %872 = vmatprep.mubr.msk.bf16.mxu0 %vm317_vm2, %v917_v2  ;;  %v921_v7 = vld [vmem:[%s978_s22 + $0x20] sm:$0xff]   ;;  %v927_v10 = vld [vmem:[%s978_s22 + $0x50] sm:$0xff]   ;;  %v928_v11 = vld [vmem:[%s978_s22 + $0x58] sm:$0xff]  }
  0x17   : > { %905 = vmatpush3.bf16.msra.mxu1 %v368_v3  ;;  %v925_v8 = vld [vmem:[%s978_s22 + $0x40] sm:$0xff]   ;;  %v922_v12 = vld [vmem:[%s978_s22 + $0x28] sm:$0xff]   ;;  %v923_v14 = vld [vmem:[%s978_s22 + $0x30] sm:$0xff]  }
  0x18   : > { %888 = vmatprep.mubr.msk.bf16.mxu1 %vm317_vm2, %v925_v8  ;;  %v929_v13 = vld [vmem:[%s978_s22 + $0x60] sm:$0xff]   ;;  %v930_v15 = vld [vmem:[%s978_s22 + $0x68] sm:$0xff]   ;;  %v924_v16 = vld [vmem:[%s978_s22 + $0x38] sm:$0xff]  }
  0x19   : > { %873 = vmatmul.mubr.msk.bf16.vlgmr.msra.gmra.mrb[0].mxu0 %vm317_vm2, %v918_v4  ;;  %v931_v17 = vld [vmem:[%s978_s22 + $0x70] sm:$0xff]   ;;  %v932_v18 = vld [vmem:[%s978_s22 + $0x78] sm:$0xff]  }
  0x1a   : > { %876 = vmatprep.mubr.msk.bf16.mxu0 %vm317_vm2, %v919_v5  ;;  %889 = vmatmul.mubr.msk.bf16.vlgmr.msra.gmra.mrb[0].mxu1 %vm317_vm2, %v926_v9 }
  0x1b   : > { %892 = vmatprep.mubr.msk.bf16.mxu1 %vm317_vm2, %v927_v10 }
  0x21   : > { %877 = vmatmul.mubr.msk.bf16.gmra.mrb[4].mxu0 %vm317_vm2, %v920_v6 }
  0x22   : > { %880 = vmatprep.mubr.msk.bf16.mxu0 %vm317_vm2, %v921_v7  ;;  %893 = vmatmul.mubr.msk.bf16.gmra.mrb[4].mxu1 %vm317_vm2, %v928_v11 }
  0x23   : > { %896 = vmatprep.mubr.msk.bf16.mxu1 %vm317_vm2, %v929_v13 }
  0x29   : > { %881 = vmatmul.mubr.msk.bf16.gmra.mrb[8].mxu0 %vm317_vm2, %v922_v12 }
  0x2a   : > { %884 = vmatprep.mubr.msk.bf16.mxu0 %vm317_vm2, %v923_v14  ;;  %897 = vmatmul.mubr.msk.bf16.gmra.mrb[8].mxu1 %vm317_vm2, %v930_v15 }
  0x2b   : > { %900 = vmatprep.mubr.msk.bf16.mxu1 %vm317_vm2, %v931_v17 }
  0x31   : > { %885 = vmatmul.mubr.msk.bf16.gmra.mrb[12].mxu0 %vm317_vm2, %v924_v16 }
  0x32   : > { %901 = vmatmul.mubr.msk.bf16.gmra.mrb[12].mxu1 %vm317_vm2, %v932_v18 }
  0xec   : > { %v874_v19 = vpop.f32.mrb[0].mxu0 }
  0xed   : > { %534 = vst.msk [vmem:[%s983_s25 + $0x10] sm:$0xff] %vm531_vm3, %v874_v19  ;;  %v404_v20 = vpop.f32.mrb[1].mxu0  ;;  %v640_v24 = vmul.f32 %v874_v19, %v874_v19  ;;  %v568_v29 = vsel %vm531_vm3, %v874_v19, 0.0  ;;  %v1039_v35 = vpop.f32.mrb[0].mxu1 }
  0xee   : > { %532 = vst.msk [vmem:[%s983_s25] sm:$0xff] %vm531_vm3, %v404_v20  ;;  %v638_v21 = vmul.f32 %v404_v20, %v404_v20  ;;  %v875_v22 = vpop.f32.mrb[2].mxu0  ;;  %v565_v25 = vsel %vm531_vm3, %v404_v20, 0.0  ;;  %550 = vst.msk [vmem:[%s983_s25 + $0x90] sm:$0xff] %vm531_vm3, %v1039_v35  ;;  %v1046_v39 = vpop.f32.mrb[1].mxu1 }
  0xef   : > { %535 = vst.msk [vmem:[%s983_s25 + $0x18] sm:$0xff] %vm531_vm3, %v875_v22  ;;  %v407_v23 = vpop.f32.mrb[3].mxu0  ;;  %v641_v31 = vmul.f32 %v875_v22, %v875_v22  ;;  %v673_v36 = vsel %vm531_vm3, %v640_v24, 0.0  ;;  %v570_v37 = vsel %vm531_vm3, %v875_v22, 0.0  ;;  %548 = vst.msk [vmem:[%s983_s25 + $0x80] sm:$0xff] %vm531_vm3, %v1046_v39  ;;  %v1053_v43 = vpop.f32.mrb[2].mxu1 }
  0xf0   : > { %533 = vst.msk [vmem:[%s983_s25 + $0x8] sm:$0xff] %vm531_vm3, %v407_v23  ;;  %v566_v26 = vsel %vm531_vm3, %v407_v23, 0.0  ;;  %v639_v27 = vmul.f32 %v407_v23, %v407_v23  ;;  %v670_v30 = vsel %vm531_vm3, %v638_v21, 0.0  ;;  %551 = vst.msk [vmem:[%s983_s25 + $0x98] sm:$0xff] %vm531_vm3, %v1053_v43  ;;  %v1062_v48 = vpop.f32.mrb[3].mxu1 }
  0xf1   : > { %v567_v28 = vadd.f32 %v566_v26, %v565_v25  ;;  %v675_v44 = vsel %vm531_vm3, %v641_v31, 0.0  ;;  %549 = vst.msk [vmem:[%s983_s25 + $0x88] sm:$0xff] %vm531_vm3, %v1062_v48 }
  0xf2   : > { %v671_v32 = vsel %vm531_vm3, %v639_v27, 0.0 }
  0xf3   : > { %v569_v33 = vadd.f32 %v568_v29, %v567_v28  ;;  %v672_v34 = vadd.f32 %v671_v32, %v670_v30 }
  0xf4   : > { %v878_v38 = vpop.f32.mrb[4].mxu0 }
  0xf5   : > { %v674_v40 = vadd.f32 %v673_v36, %v672_v34  ;;  %538 = vst.msk [vmem:[%s983_s25 + $0x30] sm:$0xff] %vm531_vm3, %v878_v38  ;;  %v420_v41 = vpop.f32.mrb[5].mxu0  ;;  %v571_v42 = vadd.f32 %v570_v37, %v569_v33  ;;  %v644_v52 = vmul.f32 %v878_v38, %v878_v38  ;;  %v576_v58 = vsel %vm531_vm3, %v878_v38, 0.0  ;;  %v1075_v63 = vpop.f32.mrb[4].mxu1 }
  0xf6   : > { %536 = vst.msk [vmem:[%s983_s25 + $0x20] sm:$0xff] %vm531_vm3, %v420_v41  ;;  %v572_v45 = vsel %vm531_vm3, %v420_v41, 0.0  ;;  %v642_v46 = vmul.f32 %v420_v41, %v420_v41  ;;  %v879_v47 = vpop.f32.mrb[6].mxu0  ;;  %554 = vst.msk [vmem:[%s983_s25 + $0xb0] sm:$0xff] %vm531_vm3, %v1075_v63  ;;  %v1082_v3 = vpop.f32.mrb[5].mxu1 }
  0xf7   : > { %v573_v49 = vadd.f32 %v572_v45, %v571_v42  ;;  %v676_v50 = vadd.f32 %v675_v44, %v674_v40  ;;  %539 = vst.msk [vmem:[%s983_s25 + $0x38] sm:$0xff] %vm531_vm3, %v879_v47  ;;  %v423_v51 = vpop.f32.mrb[7].mxu0  ;;  %v645_v59 = vmul.f32 %v879_v47, %v879_v47  ;;  %v681_v0 = vsel %vm531_vm3, %v644_v52, 0.0  ;;  %552 = vst.msk [vmem:[%s983_s25 + $0xa0] sm:$0xff] %vm531_vm3, %v1082_v3  ;;  %v1089_v7 = vpop.f32.mrb[6].mxu1 }
  0xf8   : > { %v677_v53 = vsel %vm531_vm3, %v642_v46, 0.0  ;;  %537 = vst.msk [vmem:[%s983_s25 + $0x28] sm:$0xff] %vm531_vm3, %v423_v51  ;;  %v574_v54 = vsel %vm531_vm3, %v423_v51, 0.0  ;;  %v643_v55 = vmul.f32 %v423_v51, %v423_v51  ;;  %v578_v1 = vsel %vm531_vm3, %v879_v47, 0.0  ;;  %555 = vst.msk [vmem:[%s983_s25 + $0xb8] sm:$0xff] %vm531_vm3, %v1089_v7  ;;  %v1098_v12 = vpop.f32.mrb[7].mxu1 }
  0xf9   : > { %v678_v56 = vadd.f32 %v677_v53, %v676_v50  ;;  %v575_v57 = vadd.f32 %v574_v54, %v573_v49  ;;  %v683_v8 = vsel %vm531_vm3, %v645_v59, 0.0  ;;  %553 = vst.msk [vmem:[%s983_s25 + $0xa8] sm:$0xff] %vm531_vm3, %v1098_v12 }
  0xfa   : > { %v679_v60 = vsel %vm531_vm3, %v643_v55, 0.0 }
  0xfb   : > { %v577_v61 = vadd.f32 %v576_v58, %v575_v57  ;;  %v680_v62 = vadd.f32 %v679_v60, %v678_v56  ;;  %v654_v57 = vmul.f32 %v1046_v39, %v1046_v39 }
  0xfc   : > { %v882_v2 = vpop.f32.mrb[8].mxu0 }
  0xfd   : > { %v682_v4 = vadd.f32 %v681_v0, %v680_v62  ;;  %542 = vst.msk [vmem:[%s983_s25 + $0x50] sm:$0xff] %vm531_vm3, %v882_v2  ;;  %v436_v5 = vpop.f32.mrb[9].mxu0  ;;  %v579_v6 = vadd.f32 %v578_v1, %v577_v61  ;;  %v648_v16 = vmul.f32 %v882_v2, %v882_v2  ;;  %v584_v22 = vsel %vm531_vm3, %v882_v2, 0.0  ;;  %v1111_v27 = vpop.f32.mrb[8].mxu1 }
  0xfe   : > { %540 = vst.msk [vmem:[%s983_s25 + $0x40] sm:$0xff] %vm531_vm3, %v436_v5  ;;  %v580_v9 = vsel %vm531_vm3, %v436_v5, 0.0  ;;  %v646_v10 = vmul.f32 %v436_v5, %v436_v5  ;;  %v883_v11 = vpop.f32.mrb[10].mxu0  ;;  %558 = vst.msk [vmem:[%s983_s25 + $0xd0] sm:$0xff] %vm531_vm3, %v1111_v27  ;;  %v1118_v31 = vpop.f32.mrb[9].mxu1  ;;  %v596_v0 = vsel %vm531_vm3, %v1046_v39, 0.0 }
  0xff   : > { %v581_v13 = vadd.f32 %v580_v9, %v579_v6  ;;  %v684_v14 = vadd.f32 %v683_v8, %v682_v4  ;;  %543 = vst.msk [vmem:[%s983_s25 + $0x58] sm:$0xff] %vm531_vm3, %v883_v11  ;;  %v439_v15 = vpop.f32.mrb[11].mxu0  ;;  %v649_v23 = vmul.f32 %v883_v11, %v883_v11  ;;  %v689_v28 = vsel %vm531_vm3, %v648_v16, 0.0  ;;  %556 = vst.msk [vmem:[%s983_s25 + $0xc0] sm:$0xff] %vm531_vm3, %v1118_v31  ;;  %v1125_v36 = vpop.f32.mrb[10].mxu1 }
 0x100   : > { %v685_v17 = vsel %vm531_vm3, %v646_v10, 0.0  ;;  %541 = vst.msk [vmem:[%s983_s25 + $0x48] sm:$0xff] %vm531_vm3, %v439_v15  ;;  %v582_v18 = vsel %vm531_vm3, %v439_v15, 0.0  ;;  %v647_v19 = vmul.f32 %v439_v15, %v439_v15  ;;  %v586_v29 = vsel %vm531_vm3, %v883_v11, 0.0  ;;  %559 = vst.msk [vmem:[%s983_s25 + $0xd8] sm:$0xff] %vm531_vm3, %v1125_v36  ;;  %v1134_v42 = vpop.f32.mrb[11].mxu1 }
 0x101   : > { %v686_v20 = vadd.f32 %v685_v17, %v684_v14  ;;  %v583_v21 = vadd.f32 %v582_v18, %v581_v13  ;;  %v691_v37 = vsel %vm531_vm3, %v649_v23, 0.0  ;;  %557 = vst.msk [vmem:[%s983_s25 + $0xc8] sm:$0xff] %vm531_vm3, %v1134_v42  ;;  %v701_v8 = vsel %vm531_vm3, %v654_v57, 0.0 }
 0x102   : > { %v687_v24 = vsel %vm531_vm3, %v647_v19, 0.0  ;;  %v655_v9 = vmul.f32 %v1062_v48, %v1062_v48  ;;  %v656_v14 = vmul.f32 %v1039_v35, %v1039_v35  ;;  %v598_v15 = vsel %vm531_vm3, %v1062_v48, 0.0 }
 0x103   : > { %v585_v25 = vadd.f32 %v584_v22, %v583_v21  ;;  %v688_v26 = vadd.f32 %v687_v24, %v686_v20  ;;  %v600_v19 = vsel %vm531_vm3, %v1039_v35, 0.0  ;;  %v657_v20 = vmul.f32 %v1053_v43, %v1053_v43 }
 0x104   : > { %v886_v30 = vpop.f32.mrb[12].mxu0  ;;  %v703_v21 = vsel %vm531_vm3, %v655_v9, 0.0  ;;  %v658_v22 = vmul.f32 %v1082_v3, %v1082_v3  ;;  %v705_v48 = vsel %vm531_vm3, %v656_v14, 0.0  ;;  %v664_v57 = vmul.f32 %v1111_v27, %v1111_v27 }
 0x105   : > { %v690_v32 = vadd.f32 %v689_v28, %v688_v26  ;;  %546 = vst.msk [vmem:[%s983_s25 + $0x70] sm:$0xff] %vm531_vm3, %v886_v30  ;;  %v452_v33 = vpop.f32.mrb[13].mxu0  ;;  %v587_v34 = vadd.f32 %v586_v29, %v585_v25  ;;  %v652_v47 = vmul.f32 %v886_v30, %v886_v30  ;;  %v592_v54 = vsel %vm531_vm3, %v886_v30, 0.0  ;;  %v1149_v60 = vpop.f32.mrb[12].mxu1 }
 0x106   : > { %544 = vst.msk [vmem:[%s983_s25 + $0x60] sm:$0xff] %vm531_vm3, %v452_v33  ;;  %v588_v38 = vsel %vm531_vm3, %v452_v33, 0.0  ;;  %v650_v40 = vmul.f32 %v452_v33, %v452_v33  ;;  %v887_v41 = vpop.f32.mrb[14].mxu0  ;;  %562 = vst.msk [vmem:[%s983_s25 + $0xf0] sm:$0xff] %vm531_vm3, %v1149_v60  ;;  %v1158_v1 = vpop.f32.mrb[13].mxu1  ;;  %v602_v25 = vsel %vm531_vm3, %v1053_v43, 0.0 }
 0x107   : > { %v589_v44 = vadd.f32 %v588_v38, %v587_v34  ;;  %v692_v45 = vadd.f32 %v691_v37, %v690_v32  ;;  %547 = vst.msk [vmem:[%s983_s25 + $0x78] sm:$0xff] %vm531_vm3, %v887_v41  ;;  %v455_v46 = vpop.f32.mrb[15].mxu0  ;;  %v653_v55 = vmul.f32 %v887_v41, %v887_v41  ;;  %v697_v61 = vsel %vm531_vm3, %v652_v47, 0.0  ;;  %560 = vst.msk [vmem:[%s983_s25 + $0xe0] sm:$0xff] %vm531_vm3, %v1158_v1  ;;  %v1163_v5 = vpop.f32.mrb[14].mxu1 }
 0x108   : > { %v693_v49 = vsel %vm531_vm3, %v650_v40, 0.0  ;;  %545 = vst.msk [vmem:[%s983_s25 + $0x68] sm:$0xff] %vm531_vm3, %v455_v46  ;;  %v590_v50 = vsel %vm531_vm3, %v455_v46, 0.0  ;;  %v651_v51 = vmul.f32 %v455_v46, %v455_v46  ;;  %v594_v62 = vsel %vm531_vm3, %v887_v41, 0.0  ;;  %563 = vst.msk [vmem:[%s983_s25 + $0xf8] sm:$0xff] %vm531_vm3, %v1163_v5  ;;  %v1174_v10 = vpop.f32.mrb[15].mxu1 }
 0x109   : > { %v694_v52 = vadd.f32 %v693_v49, %v692_v45  ;;  %v591_v53 = vadd.f32 %v590_v50, %v589_v44  ;;  %v699_v6 = vsel %vm531_vm3, %v653_v55, 0.0  ;;  %v669_v39 = vmul.f32 %v1163_v5, %v1163_v5  ;;  %561 = vst.msk [vmem:[%s983_s25 + $0xe8] sm:$0xff] %vm531_vm3, %v1174_v10 }
 0x10a   : > { %v695_v56 = vsel %vm531_vm3, %v651_v51, 0.0  ;;  %v604_v26 = vsel %vm531_vm3, %v1082_v3, 0.0  ;;  %v707_v29 = vsel %vm531_vm3, %v657_v20, 0.0  ;;  %v709_v30 = vsel %vm531_vm3, %v658_v22, 0.0 }
 0x10b   : > { %v593_v58 = vadd.f32 %v592_v54, %v591_v53  ;;  %v696_v59 = vadd.f32 %v695_v56, %v694_v52  ;;  %v1184_v16 = vsel %vm531_vm3, %v669_v39, 0.0  ;;  %v659_v32 = vmul.f32 %v1098_v12, %v1098_v12 }
 0x10c   : > { %v660_v37 = vmul.f32 %v1075_v63, %v1075_v63  ;;  %v606_v43 = vsel %vm531_vm3, %v1098_v12, 0.0  ;;  %v608_v3 = vsel %vm531_vm3, %v1075_v63, 0.0  ;;  %v661_v41 = vmul.f32 %v1089_v7, %v1089_v7 }
 0x10d   : > { %v698_v2 = vadd.f32 %v697_v61, %v696_v59  ;;  %v595_v4 = vadd.f32 %v594_v62, %v593_v58  ;;  %v711_v44 = vsel %vm531_vm3, %v659_v32, 0.0  ;;  %v662_v45 = vmul.f32 %v1118_v31, %v1118_v31 }
 0x10e   : > { %v713_v49 = vsel %vm531_vm3, %v660_v37, 0.0  ;;  %v610_v12 = vsel %vm531_vm3, %v1089_v7, 0.0  ;;  %v612_v50 = vsel %vm531_vm3, %v1118_v31, 0.0  ;;  %v715_v52 = vsel %vm531_vm3, %v661_v41, 0.0  ;;  %v564_v37 = vld [vmem:[%s1271_s3] sm:$0x1] }
 0x10f   : > { %v597_v11 = vadd.f32 %v596_v0, %v595_v4  ;;  %v700_v13 = vadd.f32 %v699_v6, %v698_v2  ;;  %v717_v53 = vsel %vm531_vm3, %v662_v45, 0.0  ;;  %v663_v54 = vmul.f32 %v1134_v42, %v1134_v42 }
 0x110   : > { %v614_v7 = vsel %vm531_vm3, %v1134_v42, 0.0  ;;  %v616_v31 = vsel %vm531_vm3, %v1111_v27, 0.0  ;;  %v665_v61 = vmul.f32 %v1125_v36, %v1125_v36  ;;  %v666_v0 = vmul.f32 %v1158_v1, %v1158_v1 }
 0x111   : > { %v702_v17 = vadd.f32 %v701_v8, %v700_v13  ;;  %v599_v18 = vadd.f32 %v598_v15, %v597_v11  ;;  %v719_v62 = vsel %vm531_vm3, %v663_v54, 0.0  ;;  %v721_v6 = vsel %vm531_vm3, %v664_v57, 0.0 }
 0x112   : > { %v618_v42 = vsel %vm531_vm3, %v1125_v36, 0.0  ;;  %v620_v8 = vsel %vm531_vm3, %v1158_v1, 0.0  ;;  %v723_v39 = vsel %vm531_vm3, %v665_v61, 0.0  ;;  %v725_v11 = vsel %vm531_vm3, %v666_v0, 0.0 }
 0x113   : > { %v601_v23 = vadd.f32 %v600_v19, %v599_v18  ;;  %v704_v24 = vadd.f32 %v703_v21, %v702_v17  ;;  %v667_v13 = vmul.f32 %v1174_v10, %v1174_v10  ;;  %v668_v17 = vmul.f32 %v1149_v60, %v1149_v60 }
 0x114   : > { %v622_v36 = vsel %vm531_vm3, %v1174_v10, 0.0  ;;  %v624_v1 = vsel %vm531_vm3, %v1149_v60, 0.0 }
 0x115   : > { %v706_v28 = vadd.f32 %v705_v48, %v704_v24  ;;  %v603_v35 = vadd.f32 %v602_v25, %v601_v23  ;;  %v727_v20 = vsel %vm531_vm3, %v667_v13, 0.0  ;;  %v729_v23 = vsel %vm531_vm3, %v668_v17, 0.0 }
 0x116   : > { %v626_v24 = vsel %vm531_vm3, %v1163_v5, 0.0  ;;  %v637_v5 = vld [vmem:[%s1272_s4] sm:$0x1] }
 0x117   : > { %v605_v33 = vadd.f32 %v604_v26, %v603_v35  ;;  %v708_v34 = vadd.f32 %v707_v29, %v706_v28 }
 0x119   : > { %v710_v38 = vadd.f32 %v709_v30, %v708_v34  ;;  %v607_v40 = vadd.f32 %v606_v43, %v605_v33 }
 0x11b   : > { %v609_v46 = vadd.f32 %v608_v3, %v607_v40  ;;  %v712_v47 = vadd.f32 %v711_v44, %v710_v38 }
 0x11d   : > { %v714_v51 = vadd.f32 %v713_v49, %v712_v47  ;;  %v611_v63 = vadd.f32 %v610_v12, %v609_v46 }
 0x11f   : > { %v613_v55 = vadd.f32 %v612_v50, %v611_v63  ;;  %v716_v56 = vadd.f32 %v715_v52, %v714_v51 }
 0x121   : > { %v718_v58 = vadd.f32 %v717_v53, %v716_v56  ;;  %v615_v59 = vadd.f32 %v614_v7, %v613_v55 }
 0x123   : > { %v617_v2 = vadd.f32 %v616_v31, %v615_v59  ;;  %v720_v4 = vadd.f32 %v719_v62, %v718_v58 }
 0x125   : > { %v722_v9 = vadd.f32 %v721_v6, %v720_v4  ;;  %v619_v27 = vadd.f32 %v618_v42, %v617_v2 }
 0x127   : > { %v621_v14 = vadd.f32 %v620_v8, %v619_v27  ;;  %v724_v15 = vadd.f32 %v723_v39, %v722_v9 }
 0x129   : > { %v726_v18 = vadd.f32 %v725_v11, %v724_v15  ;;  %v623_v19 = vadd.f32 %v622_v36, %v621_v14 }
 0x12b   : > { %v625_v21 = vadd.f32 %v624_v1, %v623_v19  ;;  %v728_v22 = vadd.f32 %v727_v20, %v726_v18 }
 0x12d   : > { %v627_v48 = vadd.f32 %v626_v24, %v625_v21  ;;  %v730_v25 = vadd.f32 %v729_v23, %v728_v22 }
 0x12f   : > { %v628_v26 = vrot.slane %v627_v48, 4  ;;  %v732_v28 = vadd.f32 %v1184_v16, %v730_v25 }
 0x131   : > { %v629_v10 = vadd.f32 %v628_v26, %v627_v48  ;;  %v733_v35 = vrot.slane %v732_v28, 4 }
 0x133   : > { %v630_v29 = vrot.slane %v629_v10, 2  ;;  %v734_v30 = vadd.f32 %v733_v35, %v732_v28 }
 0x135   : > { %v631_v32 = vadd.f32 %v630_v29, %v629_v10  ;;  %v735_v60 = vrot.slane %v734_v30, 2 }
 0x137   : > { %v632_v33 = vrot.slane %v631_v32, 1  ;;  %v736_v34 = vadd.f32 %v735_v60, %v734_v30 }
 0x139   : > { %v633_v43 = vadd.f32 %v632_v33, %v631_v32  ;;  %v737_v38 = vrot.slane %v736_v34, 1 }
 0x13b   : > { %v634_v16 = vadd.f32 %v633_v43, %v564_v37  ;;  %v738_v40 = vadd.f32 %v737_v38, %v736_v34 }
 0x13d   : > { %636 = vst.msk [vmem:[%s1271_s3] sm:$0x1] %vm635_vm4, %v634_v16  ;;  %v739_v3 = vadd.f32 %v738_v40, %v637_v5 }
 0x13f   : > { %740 = vst.msk [vmem:[%s1272_s4] sm:$0x1] %vm635_vm4, %v739_v3 }
 0x140 PF: > { %s15_s15 = sadd.s32 1, %s939_s15  }
 0x141   : > { %p12_p5 = scmp.ge.s32.totalorder %s15_s15, 4  }
 0x143   :  { %14 = sbr.rel (!%p12_p5) target bundleno = 1 (0x1), region = 78 }

// kernel: sep_inception_forward.20
= control target key start
LH: loop header
LB: loop body
LE: loop exit
PB: predicated region body
PF: predicated region fallthrough
CT: control target
= control target key end

     0   :  { %s320_s12 = smov 0   ;;  %s337_s0 = inlined_call_operand.vmem [shape: f32[32,128], index: 0, kind: input, shape index: {}]   ;;  %s338_s1 = inlined_call_operand.vmem [shape: f32[1,128], index: 1, kind: input, shape index: {}]   ;;  %s339_s2 = inlined_call_operand.vmem [shape: f32[1,128], index: 2, kind: input, shape index: {}]   ;;  %s340_s3 = inlined_call_operand.vmem [shape: bf16[32,128], index: 3, kind: output, shape index: {}]  }
   0x1 LB: > { %s262_s13 = sadd.s32 4294967295, %s298_s12   ;;  %p266_p0 = scmp.ge.s32.totalorder %s298_s12, 1  ;;  %s298_s12 = sphi %s320_s12, %s13_s12  }
   0x2   : > { %p138_p1 = scmp.lt.s32.totalorder %s298_s12, 3 }
   0x4   : > { %p139_p2 = pnand %p266_p0, %p138_p1 }
   0x5   : > { %s267_s14 = sshll.u32 (!%p139_p2), %s262_s13, 1  ;;  %v271_v0 = vld [vmem:[%s338_s1] ss:$0 sm:$0xff] (!%p139_p2) }
   0x6   : > { %142 = sbr.rel (%p139_p2) target bundleno = 26 (0x1a), region = 32  ;;  %p163_p3 = scmp.lt.s32.totalorder (!%p139_p2), %s267_s14, 3  ;;  %v272_v3 = vld [vmem:[%s339_s2] ss:$0 sm:$0xff] (!%p139_p2) }
   0xd   : > { %s342_s14 = smov (!%p163_p3, %s267_s14), 3 }
   0xe   : > { %s268_s15 = sshll.u32 %s342_s14, 3  ;;  %s270_s23 = sshll.u32 %s342_s14, 2 }
   0xf   : > { %s166_s20 = scalar_lea.vmem %s337_s0, %s268_s15  ;;  %s172_s26 = scalar_lea.vmem %s340_s3, %s270_s23 }
  0x10   : > { %v174_v1 = vld [vmem:[%s166_s20] sm:$0xff]  ;;  %v175_v2 = vld [vmem:[%s166_s20 + $0x8] sm:$0xff] }
  0x11   : > { %v183_v4 = vsub.f32 %v174_v1, %v271_v0  ;;  %v184_v5 = vsub.f32 %v175_v2, %v271_v0 }
  0x13   : > { %v192_v6 = vmul.f32 %v272_v3, %v183_v4  ;;  %v193_v7 = vmul.f32 %v272_v3, %v184_v5 }
  0x15   : > { %v194_v8 = vmax.f32 %v192_v6, 0.0  ;;  %v195_v9 = vmax.f32 %v193_v7, 0.0 }
  0x17   : > { %v282_v10 = vpack.c.bf16 %v195_v9, %v194_v8 }
  0x19   : > { %283 = vst [vmem:[%s172_s26] sm:$0xff] %v282_v10  }
  0x1a PF: > { %s13_s12 = sadd.s32 1, %s298_s12  }
  0x1b   : > { %p10_p4 = scmp.ge.s32.totalorder %s13_s12, 4  }
  0x1d   :  { %12 = sbr.rel (!%p10_p4) target bundleno = 1 (0x1), region = 62 }

// kernel: sep_inception_forward.22
= control target key start
LH: loop header
LB: loop body
LE: loop exit
PB: predicated region body
PF: predicated region fallthrough
CT: control target
= control target key end

     0   :  { %s303_s12 = smov 0   ;;  %s320_s0 = inlined_call_operand.vmem [shape: f32[32,128], index: 0, kind: input, shape index: {}]   ;;  %s321_s1 = inlined_call_operand.vmem [shape: f32[1,128], index: 1, kind: input, shape index: {}]   ;;  %s322_s2 = inlined_call_operand.vmem [shape: f32[1,128], index: 2, kind: input, shape index: {}]   ;;  %s323_s3 = inlined_call_operand.vmem [shape: f32[32,128], index: 3, kind: output, shape index: {}]  }
   0x1 LB: > { %s254_s13 = sadd.s32 4294967295, %s281_s12   ;;  %p258_p0 = scmp.ge.s32.totalorder %s281_s12, 1  ;;  %s281_s12 = sphi %s303_s12, %s13_s12  }
   0x2   : > { %p138_p1 = scmp.lt.s32.totalorder %s281_s12, 3 }
   0x4   : > { %p139_p2 = pnand %p258_p0, %p138_p1 }
   0x5   : > { %s259_s14 = sshll.u32 (!%p139_p2), %s254_s13, 1  ;;  %v263_v0 = vld [vmem:[%s321_s1] ss:$0 sm:$0xff] (!%p139_p2) }
   0x6   : > { %142 = sbr.rel (%p139_p2) target bundleno = 24 (0x18), region = 32  ;;  %p163_p3 = scmp.lt.s32.totalorder (!%p139_p2), %s259_s14, 3  ;;  %v264_v3 = vld [vmem:[%s322_s2] ss:$0 sm:$0xff] (!%p139_p2) }
   0xd   : > { %s325_s14 = smov (!%p163_p3, %s259_s14), 3 }
   0xe   : > { %s260_s15 = sshll.u32 %s325_s14, 3 }
   0xf   : > { %s166_s20 = scalar_lea.vmem %s320_s0, %s260_s15  ;;  %s172_s25 = scalar_lea.vmem %s323_s3, %s260_s15 }
  0x10   : > { %v174_v1 = vld [vmem:[%s166_s20] sm:$0xff]  ;;  %v175_v2 = vld [vmem:[%s166_s20 + $0x8] sm:$0xff] }
  0x11   : > { %v183_v4 = vsub.f32 %v174_v1, %v263_v0  ;;  %v184_v5 = vsub.f32 %v175_v2, %v263_v0 }
  0x13   : > { %v192_v6 = vmul.f32 %v264_v3, %v183_v4  ;;  %v193_v7 = vmul.f32 %v264_v3, %v184_v5 }
  0x15   : > { %v194_v8 = vmax.f32 %v192_v6, 0.0  ;;  %v195_v9 = vmax.f32 %v193_v7, 0.0 }
  0x17   : > { %196 = vst [vmem:[%s172_s25] sm:$0xff] %v194_v8  ;;  %197 = vst [vmem:[%s172_s25 + $0x8] sm:$0xff] %v195_v9 }
  0x18 PF: > { %s13_s12 = sadd.s32 1, %s281_s12  }
  0x19   : > { %p10_p4 = scmp.ge.s32.totalorder %s13_s12, 4  }
  0x1b   :  { %12 = sbr.rel (!%p10_p4) target bundleno = 1 (0x1), region = 62 }

// kernel: sep_inception_forward.21
= control target key start
LH: loop header
LB: loop body
LE: loop exit
PB: predicated region body
PF: predicated region fallthrough
CT: control target
= control target key end

     0   :  { %s1577_s15 = smov 0   ;;  %s1856_s0 = inlined_call_operand.vmem [shape: bf16[2,6,64,8], index: 0, kind: input, shape index: {}]   ;;  %s1857_s1 = inlined_call_operand.vmem [shape: bf16[3,8,8], index: 1, kind: input, shape index: {}]   ;;  %s1858_s2 = inlined_call_operand.vmem [shape: f32[2,4,64,8], index: 2, kind: output, shape index: {0}]   ;;  %s1859_s3 = inlined_call_operand.vmem [shape: f32[1,8], index: 3, kind: output, shape index: {1}]   ;;  %s1860_s4 = inlined_call_operand.vmem [shape: f32[1,8], index: 4, kind: output, shape index: {2}]  }
   0x1 LB: > { %s1200_s16 = sadd.s32 4294967295, %s1549_s15   ;;  %p1204_p0 = scmp.ge.s32.totalorder %s1549_s15, 1  ;;  %s1549_s15 = sphi %s1577_s15, %s15_s15  }
   0x2   : > { %p157_p1 = scmp.lt.s32.totalorder %s1549_s15, 3 }
   0x4   : > { %p158_p2 = pnand %p1204_p0, %p157_p1 }
   0x5   : > { %p183_p3 = scmp.lt.s32.totalorder (!%p158_p2), %s1200_s16, 1  ;;  %p1208_p4 = scmp.ne.s32.totalorder (!%p158_p2), %s1200_s16, 0 }
   0x6   : > { %161 = sbr.rel (%p158_p2) target bundleno = 355 (0x163), region = 28 }
   0xd   : > { %s184_s17 = scalar_select %p183_p3, %s1200_s16, 1 }
   0xe   : > { %197 = sbr.rel (%p1208_p4) target bundleno = 21 (0x15), region = 32  ;;  %vm198_vm0 = vcmask (!%p1208_p4), 57344   ;;  %v1551_v0 = vmov (!%p1208_p4), 0.0  }
   0xf   : > { %s1509_s18 = smul.u32 192, %s184_s17  ;;  %s1285_s19 = sshll.u32 %s184_s17, 8  ;;  %199 = vst.msk [vmem:[%s1859_s3] sm:$0x1] (!%p1208_p4), %vm198_vm0, %v1551_v0  ;;  %200 = vst.msk [vmem:[%s1860_s4] sm:$0x1] (!%p1208_p4), %vm198_vm0, %v1551_v0 }
  0x10   : > { %s1588_s22 = scalar_lea.vmem %s1858_s2, %s1285_s19 }
  0x11   : > { %s1593_s25 = scalar_lea.vmem %s1856_s0, %s1509_s18 }
  0x15 PF: > { %v1229_v1 = vld [vmem:[%s1857_s1 + $0x4] sm:$0xf]  ;;  %vm369_vm1 = vcmask 1043456   ;;  %v313_v2 = vld [vmem:[%s1857_s1] sm:$0xf]  ;;  %vm320_vm2 = vcmask 64512  }
  0x16   : > { %v1519_v3 = vld [vmem:[%s1593_s25 + $0x20] sm:$0xff]   ;;  %1505 = vmatprep.subr.msk.bf16.mxu1 %vm369_vm1, %v1229_v1  ;;  %1506 = vmatprep.subr.msk.bf16.mxu0 %vm369_vm1, %v313_v2  ;;  %v371_v4 = vsel %vm369_vm1, %v1229_v1, 0  ;;  %v547_v5 = vsel %vm369_vm1, %v313_v2, 0  ;;  %v1521_v7 = vld [vmem:[%s1593_s25 + $0x28] sm:$0xff]   ;;  %v1523_v11 = vld [vmem:[%s1593_s25 + $0x30] sm:$0xff]   ;;  %vm1027_vm3 = vcmask 57344  }
  0x17   : > { %1338 = vmatpush3.bf16.msra.mxu1 %v371_v4  ;;  %1372 = vmatpush3.bf16.msra.mxu0 %v547_v5  ;;  %v1520_v6 = vld [vmem:[%s1593_s25] sm:$0xff]   ;;  %v1522_v8 = vld [vmem:[%s1593_s25 + $0x8] sm:$0xff]   ;;  %v1524_v12 = vld [vmem:[%s1593_s25 + $0x10] sm:$0xff]  }
  0x18   : > { %1339 = vmatprep.mubr.msk.bf16.mxu1 %vm320_vm2, %v1519_v3  ;;  %1507 = vmatprep.subr.msk.bf16.mxu1 %vm369_vm1, %v313_v2  ;;  %v1266_v9 = vld [vmem:[%s1857_s1 + $0x8] sm:$0xf]  ;;  %v1525_v13 = vld [vmem:[%s1593_s25 + $0x38] sm:$0xff]   ;;  %v1527_v15 = vld [vmem:[%s1593_s25 + $0x40] sm:$0xff]  }
  0x19   : > { %1373 = vmatprep.mubr.msk.bf16.mxu0 %vm320_vm2, %v1520_v6  ;;  %1508 = vmatprep.subr.msk.bf16.mxu0 %vm369_vm1, %v1266_v9  ;;  %v729_v10 = vsel %vm369_vm1, %v1266_v9, 0  ;;  %v1526_v14 = vld [vmem:[%s1593_s25 + $0x18] sm:$0xff]   ;;  %v1528_v16 = vld [vmem:[%s1593_s25 + $0x48] sm:$0xff]   ;;  %v1529_v17 = vld [vmem:[%s1593_s25 + $0x50] sm:$0xff]  }
  0x1a   : > { %1340 = vmatmul.mubr.msk.bf16.vlgmr.msra.gmra.mrb[0].mxu1 %vm320_vm2, %v1521_v7  ;;  %1374 = vmatmul.mubr.msk.bf16.vlgmr.msra.gmra.mrb[0].mxu0 %vm320_vm2, %v1522_v8  ;;  %v1530_v18 = vld [vmem:[%s1593_s25 + $0x58] sm:$0xff]   ;;  %v1531_v19 = vld [vmem:[%s1593_s25 + $0x60] sm:$0xff]   ;;  %v1532_v20 = vld [vmem:[%s1593_s25 + $0x68] sm:$0xff]  }
  0x1b   : > { %1440 = vmatpush3.bf16.msra.mxu1 %v547_v5  ;;  %1406 = vmatpush3.bf16.msra.mxu0 %v729_v10  ;;  %v1533_v21 = vld [vmem:[%s1593_s25 + $0x70] sm:$0xff]   ;;  %v1534_v22 = vld [vmem:[%s1593_s25 + $0x78] sm:$0xff]   ;;  %v1535_v23 = vld [vmem:[%s1593_s25 + $0x80] sm:$0xff]  }
  0x1c   : > { %1343 = vmatprep.mubr.msk.bf16.mxu1 %vm320_vm2, %v1523_v11  ;;  %1377 = vmatprep.mubr.msk.bf16.mxu0 %vm320_vm2, %v1524_v12  ;;  %v1536_v24 = vld [vmem:[%s1593_s25 + $0x88] sm:$0xff]   ;;  %v1537_v25 = vld [vmem:[%s1593_s25 + $0x90] sm:$0xff]   ;;  %v1538_v26 = vld [vmem:[%s1593_s25 + $0x98] sm:$0xff]  }
  0x1d   : > { %v1539_v27 = vld [vmem:[%s1593_s25 + $0xa0] sm:$0xff]   ;;  %v1540_v28 = vld [vmem:[%s1593_s25 + $0xa8] sm:$0xff]   ;;  %v1541_v29 = vld [vmem:[%s1593_s25 + $0xb0] sm:$0xff]  }
  0x1e   : > { %v1542_v30 = vld [vmem:[%s1593_s25 + $0xb8] sm:$0xff]  }
  0x22   : > { %1344 = vmatmul.mubr.msk.bf16.gmra.mrb[4].mxu1 %vm320_vm2, %v1525_v13  ;;  %1378 = vmatmul.mubr.msk.bf16.gmra.mrb[4].mxu0 %vm320_vm2, %v1526_v14 }
  0x23   : > { %1347 = vmatprep.mubr.msk.bf16.mxu1 %vm320_vm2, %v1527_v15  ;;  %1381 = vmatprep.mubr.msk.bf16.mxu0 %vm320_vm2, %v1519_v3 }
  0x2a   : > { %1348 = vmatmul.mubr.msk.bf16.gmra.mrb[8].mxu1 %vm320_vm2, %v1528_v16  ;;  %1382 = vmatmul.mubr.msk.bf16.gmra.mrb[8].mxu0 %vm320_vm2, %v1521_v7 }
  0x2b   : > { %1351 = vmatprep.mubr.msk.bf16.mxu1 %vm320_vm2, %v1529_v17  ;;  %1385 = vmatprep.mubr.msk.bf16.mxu0 %vm320_vm2, %v1523_v11 }
  0x32   : > { %1352 = vmatmul.mubr.msk.bf16.gmra.mrb[12].mxu1 %vm320_vm2, %v1530_v18  ;;  %1386 = vmatmul.mubr.msk.bf16.gmra.mrb[12].mxu0 %vm320_vm2, %v1525_v13 }
  0x33   : > { %1355 = vmatprep.mubr.msk.bf16.mxu1 %vm320_vm2, %v1531_v19  ;;  %1407 = vmatprep.mubr.msk.bf16.mxu0 %vm320_vm2, %v1527_v15 }
  0x3a   : > { %1356 = vmatmul.mubr.msk.bf16.gmra.mrb[16].mxu1 %vm320_vm2, %v1532_v20  ;;  %1408 = vmatmul.mubr.msk.bf16.vlgmr.msra.gmra.mrb[0].mxu0 %vm320_vm2, %v1528_v16 }
  0x3b   : > { %1359 = vmatprep.mubr.msk.bf16.mxu1 %vm320_vm2, %v1533_v21  ;;  %1411 = vmatprep.mubr.msk.bf16.mxu0 %vm320_vm2, %v1529_v17 }
  0x42   : > { %1360 = vmatmul.mubr.msk.bf16.gmra.mrb[20].mxu1 %vm320_vm2, %v1534_v22  ;;  %1412 = vmatmul.mubr.msk.bf16.gmra.mrb[4].mxu0 %vm320_vm2, %v1530_v18 }
  0x43   : > { %1363 = vmatprep.mubr.msk.bf16.mxu1 %vm320_vm2, %v1535_v23  ;;  %1415 = vmatprep.mubr.msk.bf16.mxu0 %vm320_vm2, %v1531_v19 }
  0x4a   : > { %1364 = vmatmul.mubr.msk.bf16.gmra.mrb[24].mxu1 %vm320_vm2, %v1536_v24  ;;  %1416 = vmatmul.mubr.msk.bf16.gmra.mrb[8].mxu0 %vm320_vm2, %v1532_v20 }
  0x4b   : > { %1367 = vmatprep.mubr.msk.bf16.mxu1 %vm320_vm2, %v1537_v25  ;;  %1419 = vmatprep.mubr.msk.bf16.mxu0 %vm320_vm2, %v1533_v21 }
  0x52   : > { %1368 = vmatmul.mubr.msk.bf16.gmra.mrb[28].mxu1 %vm320_vm2, %v1538_v26  ;;  %1420 = vmatmul.mubr.msk.bf16.gmra.mrb[12].mxu0 %vm320_vm2, %v1534_v22 }
  0x53   : > { %1389 = vmatprep.mubr.msk.bf16.mxu1 %vm320_vm2, %v1527_v15  ;;  %1423 = vmatprep.mubr.msk.bf16.mxu0 %vm320_vm2, %v1535_v23 }
  0x5a   : > { %1390 = vmatmul.mubr.msk.bf16.vlgmr.msra.gmra.mrb[16].mxu1 %vm320_vm2, %v1528_v16  ;;  %1424 = vmatmul.mubr.msk.bf16.gmra.mrb[16].mxu0 %vm320_vm2, %v1536_v24 }
  0x5b   : > { %1393 = vmatprep.mubr.msk.bf16.mxu1 %vm320_vm2, %v1529_v17  ;;  %1427 = vmatprep.mubr.msk.bf16.mxu0 %vm320_vm2, %v1537_v25 }
  0x62   : > { %1394 = vmatmul.mubr.msk.bf16.gmra.mrb[20].mxu1 %vm320_vm2, %v1530_v18  ;;  %1428 = vmatmul.mubr.msk.bf16.gmra.mrb[20].mxu0 %vm320_vm2, %v1538_v26 }
  0x63   : > { %1397 = vmatprep.mubr.msk.bf16.mxu1 %vm320_vm2, %v1531_v19  ;;  %1431 = vmatprep.mubr.msk.bf16.mxu0 %vm320_vm2, %v1539_v27 }
  0x6a   : > { %1398 = vmatmul.mubr.msk.bf16.gmra.mrb[24].mxu1 %vm320_vm2, %v1532_v20  ;;  %1432 = vmatmul.mubr.msk.bf16.gmra.mrb[24].mxu0 %vm320_vm2, %v1540_v28 }
  0x6b   : > { %1401 = vmatprep.mubr.msk.bf16.mxu1 %vm320_vm2, %v1533_v21  ;;  %1435 = vmatprep.mubr.msk.bf16.mxu0 %vm320_vm2, %v1541_v29 }
  0x72   : > { %1402 = vmatmul.mubr.msk.bf16.gmra.mrb[28].mxu1 %vm320_vm2, %v1534_v22  ;;  %1436 = vmatmul.mubr.msk.bf16.gmra.mrb[28].mxu0 %vm320_vm2, %v1542_v30 }
  0xed   : > { %v1341_v31 = vpop.f32.mrb[0].mxu1 }
  0xee   : > { %v407_v32 = vpop.f32.mrb[1].mxu1 }
  0xef   : > { %v1342_v33 = vpop.f32.mrb[2].mxu1 }
  0xf0   : > { %v410_v34 = vpop.f32.mrb[3].mxu1 }
  0xf5   : > { %v1345_v35 = vpop.f32.mrb[4].mxu1 }
  0xf6   : > { %v423_v36 = vpop.f32.mrb[5].mxu1 }
  0xf7   : > { %v1346_v37 = vpop.f32.mrb[6].mxu1 }
  0xf8   : > { %v426_v38 = vpop.f32.mrb[7].mxu1 }
  0xfd   : > { %v1689_v39 = vpop.f32.mrb[8].mxu1 }
  0xfe   : > { %v1691_v40 = vpop.f32.mrb[9].mxu1 }
  0xff   : > { %v1693_v41 = vpop.f32.mrb[10].mxu1 }
 0x100   : > { %v1695_v42 = vpop.f32.mrb[11].mxu1 }
 0x105   : > { %v1697_v43 = vpop.f32.mrb[12].mxu1 }
 0x106   : > { %v1699_v44 = vpop.f32.mrb[13].mxu1 }
 0x107   : > { %v1701_v45 = vpop.f32.mrb[14].mxu1 }
 0x108   : > { %v1703_v46 = vpop.f32.mrb[15].mxu1 }
 0x10d   : > { %v1409_v47 = vpop.f32.mrb[0].mxu0 }
 0x10e   : > { %v1441_v48 = vadd.f32 %v1409_v47, %v1341_v31  ;;  %v765_v49 = vpop.f32.mrb[1].mxu0 }
 0x10f   : > { %v1442_v50 = vadd.f32 %v765_v49, %v407_v32  ;;  %v1410_v51 = vpop.f32.mrb[2].mxu0 }
 0x110   : > { %926 = vst.msk [vmem:[%s1588_s22 + $0x10] sm:$0xff] %vm320_vm2, %v1441_v48  ;;  %v1443_v52 = vadd.f32 %v1410_v51, %v1342_v33  ;;  %v768_v53 = vpop.f32.mrb[3].mxu0  ;;  %v1032_v56 = vmul.f32 %v1441_v48, %v1441_v48  ;;  %v960_v62 = vsel %vm320_vm2, %v1441_v48, 0.0 }
 0x111   : > { %924 = vst.msk [vmem:[%s1588_s22] sm:$0xff] %vm320_vm2, %v1442_v50  ;;  %v1030_v54 = vmul.f32 %v1442_v50, %v1442_v50  ;;  %v1444_v55 = vadd.f32 %v768_v53, %v410_v34  ;;  %v957_v57 = vsel %vm320_vm2, %v1442_v50, 0.0 }
 0x112   : > { %927 = vst.msk [vmem:[%s1588_s22 + $0x18] sm:$0xff] %vm320_vm2, %v1443_v52  ;;  %v1033_v60 = vmul.f32 %v1443_v52, %v1443_v52  ;;  %v1065_v6 = vsel %vm320_vm2, %v1032_v56, 0.0  ;;  %v962_v7 = vsel %vm320_vm2, %v1443_v52, 0.0 }
 0x113   : > { %925 = vst.msk [vmem:[%s1588_s22 + $0x8] sm:$0xff] %vm320_vm2, %v1444_v55  ;;  %v958_v58 = vsel %vm320_vm2, %v1444_v55, 0.0  ;;  %v1031_v59 = vmul.f32 %v1444_v55, %v1444_v55  ;;  %v1062_v63 = vsel %vm320_vm2, %v1030_v54, 0.0 }
 0x114   : > { %v959_v61 = vadd.f32 %v958_v58, %v957_v57  ;;  %v1067_v10 = vsel %vm320_vm2, %v1033_v60, 0.0 }
 0x115   : > { %v1063_v0 = vsel %vm320_vm2, %v1031_v59, 0.0  ;;  %v1413_v1 = vpop.f32.mrb[4].mxu0 }
 0x116   : > { %v961_v2 = vadd.f32 %v960_v62, %v959_v61  ;;  %v1064_v3 = vadd.f32 %v1063_v0, %v1062_v63  ;;  %v1445_v4 = vadd.f32 %v1413_v1, %v1345_v35  ;;  %v781_v5 = vpop.f32.mrb[5].mxu0 }
 0x117   : > { %v1446_v8 = vadd.f32 %v781_v5, %v423_v36  ;;  %v1414_v9 = vpop.f32.mrb[6].mxu0 }
 0x118   : > { %v1066_v11 = vadd.f32 %v1065_v6, %v1064_v3  ;;  %930 = vst.msk [vmem:[%s1588_s22 + $0x30] sm:$0xff] %vm320_vm2, %v1445_v4  ;;  %v963_v12 = vadd.f32 %v962_v7, %v961_v2  ;;  %v784_v13 = vpop.f32.mrb[7].mxu0  ;;  %v1447_v16 = vadd.f32 %v1414_v9, %v1346_v37  ;;  %v1036_v22 = vmul.f32 %v1445_v4, %v1445_v4 }
 0x119   : > { %928 = vst.msk [vmem:[%s1588_s22 + $0x20] sm:$0xff] %vm320_vm2, %v1446_v8  ;;  %v964_v14 = vsel %vm320_vm2, %v1446_v8, 0.0  ;;  %v1034_v15 = vmul.f32 %v1446_v8, %v1446_v8  ;;  %v1448_v17 = vadd.f32 %v784_v13, %v426_v38  ;;  %v968_v26 = vsel %vm320_vm2, %v1445_v4, 0.0 }
 0x11a   : > { %v965_v18 = vadd.f32 %v964_v14, %v963_v12  ;;  %v1068_v19 = vadd.f32 %v1067_v10, %v1066_v11  ;;  %931 = vst.msk [vmem:[%s1588_s22 + $0x38] sm:$0xff] %vm320_vm2, %v1447_v16  ;;  %v1037_v28 = vmul.f32 %v1447_v16, %v1447_v16  ;;  %v970_v33 = vsel %vm320_vm2, %v1447_v16, 0.0 }
 0x11b   : > { %v1069_v20 = vsel %vm320_vm2, %v1034_v15, 0.0  ;;  %929 = vst.msk [vmem:[%s1588_s22 + $0x28] sm:$0xff] %vm320_vm2, %v1448_v17  ;;  %v966_v21 = vsel %vm320_vm2, %v1448_v17, 0.0  ;;  %v1035_v25 = vmul.f32 %v1448_v17, %v1448_v17  ;;  %v1073_v37 = vsel %vm320_vm2, %v1036_v22, 0.0 }
 0x11c   : > { %v1070_v23 = vadd.f32 %v1069_v20, %v1068_v19  ;;  %v967_v24 = vadd.f32 %v966_v21, %v965_v18 }
 0x11d   : > { %v1417_v27 = vpop.f32.mrb[8].mxu0  ;;  %v1071_v30 = vsel %vm320_vm2, %v1035_v25, 0.0 }
 0x11e   : > { %v969_v29 = vadd.f32 %v968_v26, %v967_v24  ;;  %v1449_v31 = vadd.f32 %v1417_v27, %v1689_v39  ;;  %v797_v32 = vpop.f32.mrb[9].mxu0  ;;  %v1072_v34 = vadd.f32 %v1071_v30, %v1070_v23 }
 0x11f   : > { %v1450_v35 = vadd.f32 %v797_v32, %v1691_v40  ;;  %v1418_v36 = vpop.f32.mrb[10].mxu0  ;;  %v1075_v40 = vsel %vm320_vm2, %v1037_v28, 0.0 }
 0x120   : > { %934 = vst.msk [vmem:[%s1588_s22 + $0x50] sm:$0xff] %vm320_vm2, %v1449_v31  ;;  %v971_v38 = vadd.f32 %v970_v33, %v969_v29  ;;  %v1451_v47 = vadd.f32 %v1418_v36, %v1693_v41  ;;  %v800_v48 = vpop.f32.mrb[11].mxu0  ;;  %v1074_v49 = vadd.f32 %v1073_v37, %v1072_v34  ;;  %v1040_v56 = vmul.f32 %v1449_v31, %v1449_v31 }
 0x121   : > { %932 = vst.msk [vmem:[%s1588_s22 + $0x40] sm:$0xff] %vm320_vm2, %v1450_v35  ;;  %v972_v39 = vsel %vm320_vm2, %v1450_v35, 0.0  ;;  %v1038_v50 = vmul.f32 %v1450_v35, %v1450_v35  ;;  %v1452_v51 = vadd.f32 %v800_v48, %v1695_v42  ;;  %v976_v58 = vsel %vm320_vm2, %v1449_v31, 0.0 }
 0x122   : > { %v973_v52 = vadd.f32 %v972_v39, %v971_v38  ;;  %935 = vst.msk [vmem:[%s1588_s22 + $0x58] sm:$0xff] %vm320_vm2, %v1451_v47  ;;  %v1076_v53 = vadd.f32 %v1075_v40, %v1074_v49  ;;  %v1041_v61 = vmul.f32 %v1451_v47, %v1451_v47  ;;  %v978_v1 = vsel %vm320_vm2, %v1451_v47, 0.0 }
 0x123   : > { %v1077_v54 = vsel %vm320_vm2, %v1038_v50, 0.0  ;;  %933 = vst.msk [vmem:[%s1588_s22 + $0x48] sm:$0xff] %vm320_vm2, %v1452_v51  ;;  %v974_v41 = vsel %vm320_vm2, %v1452_v51, 0.0  ;;  %v1039_v55 = vmul.f32 %v1452_v51, %v1452_v51  ;;  %v1081_v5 = vsel %vm320_vm2, %v1040_v56, 0.0 }
 0x124   : > { %v975_v57 = vadd.f32 %v974_v41, %v973_v52  ;;  %v1078_v59 = vadd.f32 %v1077_v54, %v1076_v53 }
 0x125   : > { %v1079_v42 = vsel %vm320_vm2, %v1039_v55, 0.0  ;;  %v1421_v60 = vpop.f32.mrb[12].mxu0 }
 0x126   : > { %v977_v62 = vadd.f32 %v976_v58, %v975_v57  ;;  %v1453_v63 = vadd.f32 %v1421_v60, %v1697_v43  ;;  %v813_v0 = vpop.f32.mrb[13].mxu0  ;;  %v1080_v2 = vadd.f32 %v1079_v42, %v1078_v59 }
 0x127   : > { %v1454_v3 = vadd.f32 %v813_v0, %v1699_v44  ;;  %v1422_v4 = vpop.f32.mrb[14].mxu0  ;;  %v1083_v44 = vsel %vm320_vm2, %v1041_v61, 0.0 }
 0x128   : > { %938 = vst.msk [vmem:[%s1588_s22 + $0x70] sm:$0xff] %vm320_vm2, %v1453_v63  ;;  %v979_v6 = vadd.f32 %v978_v1, %v977_v62  ;;  %v1455_v7 = vadd.f32 %v1422_v4, %v1701_v45  ;;  %v816_v8 = vpop.f32.mrb[15].mxu0  ;;  %v1082_v9 = vadd.f32 %v1081_v5, %v1080_v2  ;;  %v1044_v16 = vmul.f32 %v1453_v63, %v1453_v63 }
 0x129   : > { %936 = vst.msk [vmem:[%s1588_s22 + $0x60] sm:$0xff] %vm320_vm2, %v1454_v3  ;;  %v980_v43 = vsel %vm320_vm2, %v1454_v3, 0.0  ;;  %v1042_v10 = vmul.f32 %v1454_v3, %v1454_v3  ;;  %v1456_v11 = vadd.f32 %v816_v8, %v1703_v46  ;;  %v984_v19 = vsel %vm320_vm2, %v1453_v63, 0.0 }
 0x12a   : > { %v981_v12 = vadd.f32 %v980_v43, %v979_v6  ;;  %939 = vst.msk [vmem:[%s1588_s22 + $0x78] sm:$0xff] %vm320_vm2, %v1455_v7  ;;  %v1084_v13 = vadd.f32 %v1083_v44, %v1082_v9  ;;  %v1045_v23 = vmul.f32 %v1455_v7, %v1455_v7  ;;  %v986_v28 = vsel %vm320_vm2, %v1455_v7, 0.0 }
 0x12b   : > { %v1085_v14 = vsel %vm320_vm2, %v1042_v10, 0.0  ;;  %937 = vst.msk [vmem:[%s1588_s22 + $0x68] sm:$0xff] %vm320_vm2, %v1456_v11  ;;  %v982_v45 = vsel %vm320_vm2, %v1456_v11, 0.0  ;;  %v1043_v15 = vmul.f32 %v1456_v11, %v1456_v11  ;;  %v1089_v33 = vsel %vm320_vm2, %v1044_v16, 0.0 }
 0x12c   : > { %v983_v17 = vadd.f32 %v982_v45, %v981_v12  ;;  %v1086_v46 = vadd.f32 %v1085_v14, %v1084_v13  ;;  %v1091_v49 = vsel %vm320_vm2, %v1045_v23, 0.0 }
 0x12d   : > { %v1391_v18 = vpop.f32.mrb[16].mxu1  ;;  %v1087_v20 = vsel %vm320_vm2, %v1043_v15, 0.0  ;;  %v1425_v21 = vpop.f32.mrb[16].mxu0 }
 0x12e   : > { %v647_v22 = vpop.f32.mrb[17].mxu1  ;;  %v985_v24 = vadd.f32 %v984_v19, %v983_v17  ;;  %v1457_v25 = vadd.f32 %v1425_v21, %v1391_v18  ;;  %v829_v26 = vpop.f32.mrb[17].mxu0  ;;  %v1088_v29 = vadd.f32 %v1087_v20, %v1086_v46 }
 0x12f   : > { %v1392_v27 = vpop.f32.mrb[18].mxu1  ;;  %v1458_v30 = vadd.f32 %v829_v26, %v647_v22  ;;  %v1426_v31 = vpop.f32.mrb[18].mxu0 }
 0x130   : > { %v650_v32 = vpop.f32.mrb[19].mxu1  ;;  %942 = vst.msk [vmem:[%s1588_s22 + $0x90] sm:$0xff] %vm320_vm2, %v1457_v25  ;;  %v987_v34 = vadd.f32 %v986_v28, %v985_v24  ;;  %v1459_v35 = vadd.f32 %v1426_v31, %v1392_v27  ;;  %v832_v36 = vpop.f32.mrb[19].mxu0  ;;  %v1090_v37 = vadd.f32 %v1089_v33, %v1088_v29  ;;  %v1048_v53 = vmul.f32 %v1457_v25, %v1457_v25 }
 0x131   : > { %940 = vst.msk [vmem:[%s1588_s22 + $0x80] sm:$0xff] %vm320_vm2, %v1458_v30  ;;  %v988_v38 = vsel %vm320_vm2, %v1458_v30, 0.0  ;;  %v1046_v47 = vmul.f32 %v1458_v30, %v1458_v30  ;;  %v1460_v48 = vadd.f32 %v832_v36, %v650_v32  ;;  %v992_v55 = vsel %vm320_vm2, %v1457_v25, 0.0 }
 0x132   : > { %v989_v39 = vadd.f32 %v988_v38, %v987_v34  ;;  %943 = vst.msk [vmem:[%s1588_s22 + $0x98] sm:$0xff] %vm320_vm2, %v1459_v35  ;;  %v1092_v50 = vadd.f32 %v1091_v49, %v1090_v37  ;;  %v1049_v42 = vmul.f32 %v1459_v35, %v1459_v35  ;;  %v994_v0 = vsel %vm320_vm2, %v1459_v35, 0.0 }
 0x133   : > { %v1093_v51 = vsel %vm320_vm2, %v1046_v47, 0.0  ;;  %941 = vst.msk [vmem:[%s1588_s22 + $0x88] sm:$0xff] %vm320_vm2, %v1460_v48  ;;  %v990_v40 = vsel %vm320_vm2, %v1460_v48, 0.0  ;;  %v1047_v52 = vmul.f32 %v1460_v48, %v1460_v48  ;;  %v1097_v5 = vsel %vm320_vm2, %v1048_v53, 0.0 }
 0x134   : > { %v991_v54 = vadd.f32 %v990_v40, %v989_v39  ;;  %v1094_v56 = vadd.f32 %v1093_v51, %v1092_v50  ;;  %v1099_v44 = vsel %vm320_vm2, %v1049_v42, 0.0 }
 0x135   : > { %v1395_v41 = vpop.f32.mrb[20].mxu1  ;;  %v1095_v57 = vsel %vm320_vm2, %v1047_v52, 0.0  ;;  %v1429_v58 = vpop.f32.mrb[20].mxu0 }
 0x136   : > { %v663_v59 = vpop.f32.mrb[21].mxu1  ;;  %v993_v60 = vadd.f32 %v992_v55, %v991_v54  ;;  %v1461_v61 = vadd.f32 %v1429_v58, %v1395_v41  ;;  %v845_v62 = vpop.f32.mrb[21].mxu0  ;;  %v1096_v1 = vadd.f32 %v1095_v57, %v1094_v56 }
 0x137   : > { %v1396_v63 = vpop.f32.mrb[22].mxu1  ;;  %v1462_v2 = vadd.f32 %v845_v62, %v663_v59  ;;  %v1430_v3 = vpop.f32.mrb[22].mxu0 }
 0x138   : > { %v666_v4 = vpop.f32.mrb[23].mxu1  ;;  %946 = vst.msk [vmem:[%s1588_s22 + $0xb0] sm:$0xff] %vm320_vm2, %v1461_v61  ;;  %v995_v6 = vadd.f32 %v994_v0, %v993_v60  ;;  %v1463_v7 = vadd.f32 %v1430_v3, %v1396_v63  ;;  %v848_v8 = vpop.f32.mrb[23].mxu0  ;;  %v1098_v9 = vadd.f32 %v1097_v5, %v1096_v1  ;;  %v1052_v16 = vmul.f32 %v1461_v61, %v1461_v61 }
 0x139   : > { %944 = vst.msk [vmem:[%s1588_s22 + $0xa0] sm:$0xff] %vm320_vm2, %v1462_v2  ;;  %v996_v43 = vsel %vm320_vm2, %v1462_v2, 0.0  ;;  %v1050_v10 = vmul.f32 %v1462_v2, %v1462_v2  ;;  %v1464_v11 = vadd.f32 %v848_v8, %v666_v4  ;;  %v1000_v19 = vsel %vm320_vm2, %v1461_v61, 0.0 }
 0x13a   : > { %v997_v12 = vadd.f32 %v996_v43, %v995_v6  ;;  %947 = vst.msk [vmem:[%s1588_s22 + $0xb8] sm:$0xff] %vm320_vm2, %v1463_v7  ;;  %v1100_v13 = vadd.f32 %v1099_v44, %v1098_v9  ;;  %v1053_v23 = vmul.f32 %v1463_v7, %v1463_v7  ;;  %v1002_v28 = vsel %vm320_vm2, %v1463_v7, 0.0 }
 0x13b   : > { %v1101_v14 = vsel %vm320_vm2, %v1050_v10, 0.0  ;;  %945 = vst.msk [vmem:[%s1588_s22 + $0xa8] sm:$0xff] %vm320_vm2, %v1464_v11  ;;  %v998_v45 = vsel %vm320_vm2, %v1464_v11, 0.0  ;;  %v1051_v15 = vmul.f32 %v1464_v11, %v1464_v11  ;;  %v1105_v33 = vsel %vm320_vm2, %v1052_v16, 0.0 }
 0x13c   : > { %v999_v17 = vadd.f32 %v998_v45, %v997_v12  ;;  %v1102_v46 = vadd.f32 %v1101_v14, %v1100_v13  ;;  %v1107_v49 = vsel %vm320_vm2, %v1053_v23, 0.0 }
 0x13d   : > { %v1399_v18 = vpop.f32.mrb[24].mxu1  ;;  %v1103_v20 = vsel %vm320_vm2, %v1051_v15, 0.0  ;;  %v1433_v21 = vpop.f32.mrb[24].mxu0 }
 0x13e   : > { %v679_v22 = vpop.f32.mrb[25].mxu1  ;;  %v1001_v24 = vadd.f32 %v1000_v19, %v999_v17  ;;  %v1465_v25 = vadd.f32 %v1433_v21, %v1399_v18  ;;  %v861_v26 = vpop.f32.mrb[25].mxu0  ;;  %v1104_v29 = vadd.f32 %v1103_v20, %v1102_v46 }
 0x13f   : > { %v1400_v27 = vpop.f32.mrb[26].mxu1  ;;  %v1466_v30 = vadd.f32 %v861_v26, %v679_v22  ;;  %v1434_v31 = vpop.f32.mrb[26].mxu0 }
 0x140   : > { %v682_v32 = vpop.f32.mrb[27].mxu1  ;;  %950 = vst.msk [vmem:[%s1588_s22 + $0xd0] sm:$0xff] %vm320_vm2, %v1465_v25  ;;  %v1003_v34 = vadd.f32 %v1002_v28, %v1001_v24  ;;  %v1467_v35 = vadd.f32 %v1434_v31, %v1400_v27  ;;  %v864_v36 = vpop.f32.mrb[27].mxu0  ;;  %v1106_v37 = vadd.f32 %v1105_v33, %v1104_v29  ;;  %v1056_v53 = vmul.f32 %v1465_v25, %v1465_v25 }
 0x141   : > { %948 = vst.msk [vmem:[%s1588_s22 + $0xc0] sm:$0xff] %vm320_vm2, %v1466_v30  ;;  %v1004_v38 = vsel %vm320_vm2, %v1466_v30, 0.0  ;;  %v1054_v47 = vmul.f32 %v1466_v30, %v1466_v30  ;;  %v1468_v48 = vadd.f32 %v864_v36, %v682_v32  ;;  %v1008_v55 = vsel %vm320_vm2, %v1465_v25, 0.0 }
 0x142   : > { %v1005_v39 = vadd.f32 %v1004_v38, %v1003_v34  ;;  %951 = vst.msk [vmem:[%s1588_s22 + $0xd8] sm:$0xff] %vm320_vm2, %v1467_v35  ;;  %v1108_v50 = vadd.f32 %v1107_v49, %v1106_v37  ;;  %v1057_v42 = vmul.f32 %v1467_v35, %v1467_v35  ;;  %v1010_v0 = vsel %vm320_vm2, %v1467_v35, 0.0  ;;  %v956_v37 = vld [vmem:[%s1859_s3] sm:$0x1] }
 0x143   : > { %v1109_v51 = vsel %vm320_vm2, %v1054_v47, 0.0  ;;  %949 = vst.msk [vmem:[%s1588_s22 + $0xc8] sm:$0xff] %vm320_vm2, %v1468_v48  ;;  %v1006_v40 = vsel %vm320_vm2, %v1468_v48, 0.0  ;;  %v1055_v52 = vmul.f32 %v1468_v48, %v1468_v48  ;;  %v1113_v5 = vsel %vm320_vm2, %v1056_v53, 0.0 }
 0x144   : > { %v1007_v54 = vadd.f32 %v1006_v40, %v1005_v39  ;;  %v1110_v56 = vadd.f32 %v1109_v51, %v1108_v50  ;;  %v1115_v44 = vsel %vm320_vm2, %v1057_v42, 0.0  ;;  %v1029_v39 = vld [vmem:[%s1860_s4] sm:$0x1] }
 0x145   : > { %v1403_v41 = vpop.f32.mrb[28].mxu1  ;;  %v1111_v57 = vsel %vm320_vm2, %v1055_v52, 0.0  ;;  %v1437_v58 = vpop.f32.mrb[28].mxu0 }
 0x146   : > { %v695_v59 = vpop.f32.mrb[29].mxu1  ;;  %v1009_v60 = vadd.f32 %v1008_v55, %v1007_v54  ;;  %v1469_v61 = vadd.f32 %v1437_v58, %v1403_v41  ;;  %v877_v62 = vpop.f32.mrb[29].mxu0  ;;  %v1112_v1 = vadd.f32 %v1111_v57, %v1110_v56 }
 0x147   : > { %v1404_v63 = vpop.f32.mrb[30].mxu1  ;;  %v1470_v2 = vadd.f32 %v877_v62, %v695_v59  ;;  %v1438_v3 = vpop.f32.mrb[30].mxu0 }
 0x148   : > { %v698_v4 = vpop.f32.mrb[31].mxu1  ;;  %954 = vst.msk [vmem:[%s1588_s22 + $0xf0] sm:$0xff] %vm320_vm2, %v1469_v61  ;;  %v1011_v6 = vadd.f32 %v1010_v0, %v1009_v60  ;;  %v1471_v7 = vadd.f32 %v1438_v3, %v1404_v63  ;;  %v880_v8 = vpop.f32.mrb[31].mxu0  ;;  %v1114_v9 = vadd.f32 %v1113_v5, %v1112_v1  ;;  %v1060_v16 = vmul.f32 %v1469_v61, %v1469_v61 }
 0x149   : > { %952 = vst.msk [vmem:[%s1588_s22 + $0xe0] sm:$0xff] %vm320_vm2, %v1470_v2  ;;  %v1012_v43 = vsel %vm320_vm2, %v1470_v2, 0.0  ;;  %v1058_v10 = vmul.f32 %v1470_v2, %v1470_v2  ;;  %v1472_v11 = vadd.f32 %v880_v8, %v698_v4  ;;  %v1016_v18 = vsel %vm320_vm2, %v1469_v61, 0.0 }
 0x14a   : > { %v1013_v12 = vadd.f32 %v1012_v43, %v1011_v6  ;;  %955 = vst.msk [vmem:[%s1588_s22 + $0xf8] sm:$0xff] %vm320_vm2, %v1471_v7  ;;  %v1116_v13 = vadd.f32 %v1115_v44, %v1114_v9  ;;  %v1061_v20 = vmul.f32 %v1471_v7, %v1471_v7  ;;  %v1018_v22 = vsel %vm320_vm2, %v1471_v7, 0.0 }
 0x14b   : > { %v1117_v14 = vsel %vm320_vm2, %v1058_v10, 0.0  ;;  %953 = vst.msk [vmem:[%s1588_s22 + $0xe8] sm:$0xff] %vm320_vm2, %v1472_v11  ;;  %v1014_v45 = vsel %vm320_vm2, %v1472_v11, 0.0  ;;  %v1059_v15 = vmul.f32 %v1472_v11, %v1472_v11  ;;  %v1121_v24 = vsel %vm320_vm2, %v1060_v16, 0.0 }
 0x14c   : > { %v1015_v17 = vadd.f32 %v1014_v45, %v1013_v12  ;;  %v1118_v19 = vadd.f32 %v1117_v14, %v1116_v13  ;;  %v1123_v27 = vsel %vm320_vm2, %v1061_v20, 0.0 }
 0x14d   : > { %v1119_v46 = vsel %vm320_vm2, %v1059_v15, 0.0 }
 0x14e   : > { %v1017_v21 = vadd.f32 %v1016_v18, %v1015_v17  ;;  %v1120_v23 = vadd.f32 %v1119_v46, %v1118_v19 }
 0x150   : > { %v1019_v25 = vadd.f32 %v1018_v22, %v1017_v21  ;;  %v1122_v26 = vadd.f32 %v1121_v24, %v1120_v23 }
 0x152   : > { %v1020_v28 = vrot.slane %v1019_v25, 4  ;;  %v1124_v29 = vadd.f32 %v1123_v27, %v1122_v26 }
 0x154   : > { %v1021_v30 = vadd.f32 %v1020_v28, %v1019_v25  ;;  %v1125_v31 = vrot.slane %v1124_v29, 4 }
 0x156   : > { %v1022_v32 = vrot.slane %v1021_v30, 2  ;;  %v1126_v33 = vadd.f32 %v1125_v31, %v1124_v29 }
 0x158   : > { %v1023_v34 = vadd.f32 %v1022_v32, %v1021_v30  ;;  %v1127_v35 = vrot.slane %v1126_v33, 2 }
 0x15a   : > { %v1024_v36 = vrot.slane %v1023_v34, 1  ;;  %v1128_v38 = vadd.f32 %v1127_v35, %v1126_v33 }
 0x15c   : > { %v1025_v47 = vadd.f32 %v1024_v36, %v1023_v34  ;;  %v1129_v48 = vrot.slane %v1128_v38, 1 }
 0x15e   : > { %v1026_v49 = vadd.f32 %v1025_v47, %v956_v37  ;;  %v1130_v50 = vadd.f32 %v1129_v48, %v1128_v38 }
 0x160   : > { %1028 = vst.msk [vmem:[%s1859_s3] sm:$0x1] %vm1027_vm3, %v1026_v49  ;;  %v1131_v51 = vadd.f32 %v1130_v50, %v1029_v39 }
 0x162   : > { %1132 = vst.msk [vmem:[%s1860_s4] sm:$0x1] %vm1027_vm3, %v1131_v51 }
 0x163 PF: > { %s15_s15 = sadd.s32 1, %s1549_s15  }
 0x164   : > { %p12_p5 = scmp.ge.s32.totalorder %s15_s15, 4  }
 0x166   :  { %14 = sbr.rel (!%p12_p5) target bundleno = 1 (0x1), region = 80 }

// kernel: sep_inception_forward.19
= control target key start
LH: loop header
LB: loop body
LE: loop exit
PB: predicated region body
PF: predicated region fallthrough
CT: control target
= control target key end

     0   :  { %s4222_s15 = smov 0   ;;  %s5713_s0 = inlined_call_operand.vmem [shape: bf16[8,10,10,4], index: 0, kind: input, shape index: {}]   ;;  %s5714_s1 = inlined_call_operand.vmem [shape: bf16[9,4,8], index: 1, kind: input, shape index: {}]   ;;  %s5715_s2 = inlined_call_operand.vmem [shape: f32[8,8,8,8], index: 2, kind: output, shape index: {0}]   ;;  %s5716_s3 = inlined_call_operand.vmem [shape: f32[1,8], index: 3, kind: output, shape index: {1}]   ;;  %s5717_s4 = inlined_call_operand.vmem [shape: f32[1,8], index: 4, kind: output, shape index: {2}]  }
   0x1 LB: > { %s3202_s16 = sadd.s32 4294967295, %s4194_s15   ;;  %p3206_p0 = scmp.ge.s32.totalorder %s4194_s15, 1  ;;  %s4194_s15 = sphi %s4222_s15, %s15_s15  }
   0x2   : > { %p159_p1 = scmp.lt.s32.totalorder %s4194_s15, 3 }
   0x4   : > { %p160_p2 = pnand %p3206_p0, %p159_p1 }
   0x6   : > { %163 = sbr.rel (%p160_p2) target bundleno = 567 (0x237), region = 28 }
   0xd   : > { %s3207_s17 = sshll.u32 %s3202_s16, 2  ;;  %p3212_p4 = scmp.ne.s32.totalorder %s3202_s16, 0 }
   0xe   : > { %p188_p3 = scmp.lt.s32.totalorder %s3207_s17, 7  ;;  %vm206_vm0 = vcmask (!%p3212_p4), 57344   ;;  %v4196_v0 = vmov (!%p3212_p4), 0.0  }
   0xf   : > { %205 = sbr.rel (%p3212_p4) target bundleno = 22 (0x16), region = 32  ;;  %207 = vst.msk [vmem:[%s5716_s3] sm:$0x1] (!%p3212_p4), %vm206_vm0, %v4196_v0  ;;  %208 = vst.msk [vmem:[%s5717_s4] sm:$0x1] (!%p3212_p4), %vm206_vm0, %v4196_v0 }
  0x10   : > { %s6033_s17 = smov (!%p188_p3, %s3207_s17), 7 }
  0x11   : > { %s4131_s18 = smul.u32 80, %s6033_s17  ;;  %s3403_s19 = sshll.u32 %s6033_s17, 6 }
  0x12   : > { %s4233_s22 = scalar_lea.vmem %s5715_s2, %s3403_s19 }
  0x13   : > { %s4238_s25 = scalar_lea.vmem %s5713_s0, %s4131_s18 }
  0x16 PF: > { %v3229_v1 = vld [vmem:[%s5714_s1 + $0x2] sm:$0x3]  ;;  %vm646_vm1 = vcmask 1041408   ;;  %v3312_v2 = vld [vmem:[%s5714_s1 + $0x8] sm:$0x3]  ;;  %vm450_vm2 = vcmask 1046528  }
  0x17   : > { %4121 = vmatprep.subr.msk.bf16.mxu1 %vm646_vm1, %v3229_v1  ;;  %4125 = vmatprep.subr.msk.bf16.mxu0 %vm646_vm1, %v3312_v2  ;;  %v648_v3 = vsel %vm646_vm1, %v3229_v1, 0  ;;  %v4256_v4 = vsel %vm646_vm1, %v3312_v2, 0  ;;  %v4259_v5 = vld [vmem:[%s4238_s25] sm:$0xf]  ;;  %v4262_v6 = vld [vmem:[%s4238_s25 + $0x4] sm:$0x1] }
  0x18   : > { %5831 = vst [vmem:[#allocation2_spill] sm:$0xff] %v4256_v4  ;;  %5832 = vst [vmem:[#allocation3_spill] sm:$0xff] %v4262_v6  ;;  %3558 = vmatpush3.bf16.msra.mxu1 %v648_v3  ;;  %3694 = vmatpush3.bf16.msra.mxu0 %v4256_v4  ;;  %v4266_v7 = vld [vmem:[%s4238_s25 + $0x8] sm:$0xf]  ;;  %v212_v8 = vld [vmem:[%s4238_s25 + $0xc] sm:$0x1]  ;;  %v5721_v9 = vunpack.c.l.bf16 %v4259_v5  ;;  %v5720_v10 = vunpack.c.l.bf16 %v4262_v6 }
  0x19   : > { %v291_v11 = vunpack.c.l.bf16 %v4266_v7  ;;  %v292_v12 = vunpack.c.l.bf16 %v212_v8  ;;  %v385_v13 = vld [vmem:[%s5714_s1] sm:$0x3]  ;;  %v4276_v14 = vld [vmem:[%s4238_s25 + $0x10] sm:$0xf]  ;;  %v214_v15 = vld [vmem:[%s4238_s25 + $0x14] sm:$0x1] }
  0x1a   : > { %v451_v16 = vrot.slane %v5721_v9, 1  ;;  %v452_v17 = vrot.slane %v5720_v10, 1  ;;  %vm597_vm3 = vcmask 31744   ;;  %4122 = vmatprep.subr.msk.bf16.mxu1 %vm646_vm1, %v385_v13  ;;  %v4285_v18 = vld [vmem:[%s4238_s25 + $0x18] sm:$0xf]  ;;  %v293_v27 = vunpack.c.l.bf16 %v4276_v14 }
  0x1b   : > { %5833 = vst [vmem:[#allocation4_spill] sm:$0xff] %v4285_v18  ;;  %v454_v19 = vrot.slane %v291_v11, 1  ;;  %v455_v20 = vrot.slane %v292_v12, 1  ;;  %v4287_v21 = vrot.slane %v291_v11, 2  ;;  %v216_v22 = vld [vmem:[%s4238_s25 + $0x1c] sm:$0x1]  ;;  %v294_v28 = vunpack.c.l.bf16 %v214_v15 }
  0x1c   : > { %v453_v24 = vsel %vm450_vm2, %v451_v16, %v452_v17  ;;  %v4294_v25 = vld [vmem:[%s4238_s25 + $0x20] sm:$0xf]  ;;  %v218_v26 = vld [vmem:[%s4238_s25 + $0x24] sm:$0x1]  ;;  %v295_v29 = vunpack.c.l.bf16 %v4285_v18  ;;  %v3329_v30 = vld [vmem:[%s5714_s1 + $0xa] sm:$0x3]  ;;  %v296_v32 = vunpack.c.l.bf16 %v216_v22 }
  0x1d   : > { %5834 = vst [vmem:[#allocation5_spill] sm:$0xff] %v4294_v25  ;;  %v456_v31 = vsel %vm450_vm2, %v454_v19, %v455_v20  ;;  %v297_v33 = vunpack.c.l.bf16 %v4294_v25  ;;  %v298_v34 = vunpack.c.l.bf16 %v218_v26  ;;  %4127 = vmatprep.subr.msk.bf16.mxu0 %vm646_vm1, %v3329_v30  ;;  %v4305_v36 = vrot.slane %v292_v12, 2  ;;  %v4308_v39 = vld [vmem:[%s4238_s25 + $0x28] sm:$0xf]  ;;  %v4311_v44 = vld [vmem:[%s4238_s25 + $0x2c] sm:$0x1] }
  0x1e   : > { %v579_v35 = vpack.c.bf16 %v456_v31, %v453_v24  ;;  %v457_v37 = vrot.slane %v293_v27, 1  ;;  %v458_v38 = vrot.slane %v294_v28, 1  ;;  %v460_v40 = vrot.slane %v295_v29, 1  ;;  %v4314_v45 = vld [vmem:[%s4238_s25 + $0x30] sm:$0xf] }
  0x1f   : > { %v461_v41 = vrot.slane %v296_v32, 1  ;;  %v463_v42 = vrot.slane %v297_v33, 1  ;;  %v464_v43 = vrot.slane %v298_v34, 1  ;;  %v4318_v47 = vrot.slane %v293_v27, 2  ;;  %v4325_v50 = vld [vmem:[%s4238_s25 + $0x34] sm:$0x1] }
  0x20   : > { %3559 = vmatprep.mubr.msk.bf16.mxu1 %vm597_vm3, %v579_v35  ;;  %v459_v46 = vsel %vm450_vm2, %v457_v37, %v458_v38  ;;  %v4320_v48 = vrot.slane %v294_v28, 2  ;;  %v4322_v49 = vrot.slane %v295_v29, 2  ;;  %v4329_v53 = vrot.slane %v296_v32, 2  ;;  %v4334_v55 = vld [vmem:[%s4238_s25 + $0x38] sm:$0xf] }
  0x21   : > { %v462_v51 = vsel %vm450_vm2, %v460_v40, %v461_v41  ;;  %v465_v52 = vsel %vm450_vm2, %v463_v42, %v464_v43  ;;  %v4331_v54 = vrot.slane %v297_v33, 2  ;;  %v4337_v56 = vld [vmem:[%s4238_s25 + $0x3c] sm:$0x1]  ;;  %v4341_v58 = vrot.slane %v298_v34, 2  ;;  %v4346_v61 = vld [vmem:[%s4238_s25 + $0x40] sm:$0xf] }
  0x22   : > { %v4339_v57 = vpack.c.bf16 %v462_v51, %v459_v46  ;;  %v1700_v60 = vpack.c.bf16 %v459_v46, %v456_v31  ;;  %5836 = vst [vmem:[#allocation7_spill] sm:$0xff] %v4346_v61  ;;  %v4349_v62 = vld [vmem:[%s4238_s25 + $0x44] sm:$0x1]  ;;  %v1701_v63 = vpack.c.bf16 %v465_v52, %v462_v51  ;;  %v860_v0 = vsel %vm646_vm1, %v385_v13, 0  ;;  %v4362_v13 = vld [vmem:[%s4238_s25 + $0x50] sm:$0xf] }
  0x23   : > { %v2045_v1 = vsel %vm646_vm1, %v3329_v30, 0  ;;  %v5738_v2 = vunpack.c.l.bf16 %v4308_v39  ;;  %v5737_v3 = vunpack.c.l.bf16 %v4311_v44  ;;  %v5735_v8 = vunpack.c.l.bf16 %v4314_v45  ;;  %v4371_v20 = vld [vmem:[%s4238_s25 + $0x54] sm:$0x1]  ;;  %v4374_v22 = vld [vmem:[%s4238_s25 + $0x58] sm:$0xf] }
  0x24   : > { %5835 = vst [vmem:[#allocation6_spill] sm:$0xff] %v4339_v57  ;;  %3695 = vmatprep.mubr.msk.bf16.mxu0 %vm597_vm3, %v1700_v60  ;;  %3560 = vmatmul.mubr.msk.bf16.vlgmr.msra.gmra.mrb[0].mxu1 %vm597_vm3, %v4339_v57  ;;  %v5734_v11 = vunpack.c.l.bf16 %v4325_v50  ;;  %v5732_v12 = vunpack.c.l.bf16 %v4334_v55  ;;  %v5730_v16 = vunpack.c.l.bf16 %v4337_v56  ;;  %v5727_v17 = vunpack.c.l.bf16 %v4346_v61  ;;  %5837 = vst [vmem:[#allocation8_spill] sm:$0xff] %v4371_v20  ;;  %v4391_v32 = vld [vmem:[%s4238_s25 + $0x5c] sm:$0x1]  ;;  %v4399_v40 = vld [vmem:[%s4238_s25 + $0x60] sm:$0xf] }
  0x25   : > { %3592 = vmatpush3.bf16.msra.mxu1 %v860_v0  ;;  %3696 = vmatmul.mubr.msk.bf16.vlgmr.msra.gmra.mrb[0].mxu0 %vm597_vm3, %v1701_v63  ;;  %v466_v15 = vrot.slane %v5738_v2, 1  ;;  %v5726_v19 = vunpack.c.l.bf16 %v4349_v62  ;;  %v467_v24 = vrot.slane %v5737_v3, 1  ;;  %v469_v26 = vrot.slane %v5735_v8, 1  ;;  %5838 = vst [vmem:[#allocation9_spill] sm:$0xff] %v4399_v40  ;;  %v4402_v41 = vld [vmem:[%s4238_s25 + $0x64] sm:$0x1] }
  0x26   : > { %3728 = vmatpush3.bf16.msra.mxu0 %v2045_v1  ;;  %v470_v27 = vrot.slane %v5734_v11, 1  ;;  %v472_v28 = vrot.slane %v5732_v12, 1  ;;  %v473_v29 = vrot.slane %v5730_v16, 1  ;;  %v1684_v30 = vrot.slane %v5727_v17, 1  ;;  %v4411_v60 = vld [vmem:[%s4238_s25 + $0x68] sm:$0xf] }
  0x27   : > { %v1685_v31 = vrot.slane %v5726_v19, 1  ;;  %v5719_v33 = vunpack.c.l.bf16 %v4362_v13  ;;  %v468_v34 = vsel %vm450_vm2, %v466_v15, %v467_v24  ;;  %v5718_v37 = vunpack.c.l.bf16 %v4371_v20  ;;  %v4414_v63 = vld [vmem:[%s4238_s25 + $0x6c] sm:$0x1]  ;;  %v4417_v0 = vld [vmem:[%s4238_s25 + $0x70] sm:$0xf] }
  0x28   : > { %v471_v35 = vsel %vm450_vm2, %v469_v26, %v470_v27  ;;  %v5725_v38 = vunpack.c.l.bf16 %v4374_v22  ;;  %v4404_v42 = vpack.c.bf16 %v468_v34, %v465_v52  ;;  %v474_v46 = vsel %vm450_vm2, %v472_v28, %v473_v29  ;;  %5841 = vst [vmem:[#allocation12_spill] sm:$0xff] %v4417_v0  ;;  %v4426_v26 = vld [vmem:[%s4238_s25 + $0x74] sm:$0x1]  ;;  %v4450_v59 = vld [vmem:[%s5714_s1 + $0xc] sm:$0x3] }
  0x29   : > { %v1702_v43 = vpack.c.bf16 %v471_v35, %v468_v34  ;;  %v4408_v51 = vsel %vm450_vm2, %v1684_v30, %v1685_v31  ;;  %v4419_v1 = vpack.c.bf16 %v474_v46, %v471_v35  ;;  %v5722_v52 = vunpack.c.l.bf16 %v4391_v32  ;;  %v4460_v23 = vld [vmem:[%s4238_s25 + $0x7c] sm:$0x1]  ;;  %4128 = vmatprep.subr.msk.bf16.mxu0 %vm646_vm1, %v4450_v59  ;;  %v4488_v12 = vld [vmem:[%s4238_s25 + $0x8c] sm:$0x1]  ;;  %v4507_v11 = vld [vmem:[%s4238_s25 + $0xa4] sm:$0x1] }
  0x2a   : > { %5839 = vst [vmem:[#allocation10_spill] sm:$0xff] %v4404_v42  ;;  %5840 = vst [vmem:[#allocation11_spill] sm:$0xff] %v4408_v51  ;;  %v1703_v15 = vpack.c.bf16 %v4408_v51, %v474_v46  ;;  %v475_v24 = vrot.slane %v5719_v33, 1  ;;  %3563 = vmatprep.mubr.msk.bf16.mxu1 %vm597_vm3, %v4404_v42  ;;  %v476_v27 = vrot.slane %v5718_v37, 1  ;;  %v478_v28 = vrot.slane %v5725_v38, 1 }
  0x2b   : > { %5842 = vst [vmem:[#allocation13_spill] sm:$0xff] %v4419_v1  ;;  %3699 = vmatprep.mubr.msk.bf16.mxu0 %vm597_vm3, %v1702_v43  ;;  %v5724_v29 = vunpack.c.l.bf16 %v4399_v40  ;;  %v5723_v30 = vunpack.c.l.bf16 %v4402_v41  ;;  %v479_v31 = vrot.slane %v5722_v52, 1  ;;  %v5728_v34 = vunpack.c.l.bf16 %v4411_v60  ;;  %v4445_v46 = vld [vmem:[%s4238_s25 + $0x78] sm:$0xf]  ;;  %v4463_v52 = vld [vmem:[%s4238_s25 + $0x80] sm:$0xf] }
  0x2c   : > { %3564 = vmatmul.mubr.msk.bf16.gmra.mrb[4].mxu1 %vm597_vm3, %v4419_v1  ;;  %v5729_v35 = vunpack.c.l.bf16 %v4414_v63  ;;  %v5731_v43 = vunpack.c.l.bf16 %v4417_v0  ;;  %5843 = vst [vmem:[#allocation14_spill] sm:$0xff] %v4445_v46  ;;  %vm1023_vm4 = vcmask 1045504   ;;  %v477_v37 = vsel %vm450_vm2, %v475_v24, %v476_v27  ;;  %5844 = vst [vmem:[#allocation15_spill] sm:$0xff] %v4463_v52  ;;  %v4521_v4 = vld [vmem:[%s4238_s25 + $0xa8] sm:$0xf] }
  0x2d   : > { %3700 = vmatmul.mubr.msk.bf16.gmra.mrb[4].mxu0 %vm597_vm3, %v1703_v15  ;;  %v481_v33 = vrot.slane %v5724_v29, 1  ;;  %v482_v10 = vrot.slane %v5723_v30, 1  ;;  %v5733_v9 = vunpack.c.l.bf16 %v4426_v26  ;;  %v480_v15 = vsel %vm450_vm2, %v478_v28, %v479_v31  ;;  %v4475_v29 = vld [vmem:[%s4238_s25 + $0x84] sm:$0x1]  ;;  %v4482_v31 = vld [vmem:[%s4238_s25 + $0x88] sm:$0xf] }
  0x2e   : > { %v484_v24 = vrot.slane %v5728_v34, 1  ;;  %v485_v27 = vrot.slane %v5729_v35, 1  ;;  %v487_v30 = vrot.slane %v5731_v43, 1  ;;  %v583_v38 = vpack.c.bf16 %v480_v15, %v477_v37  ;;  %v4491_v37 = vld [vmem:[%s4238_s25 + $0x90] sm:$0xf]  ;;  %5847 = vst [vmem:[#allocation18_spill] sm:$0xff] %v4507_v11 }
  0x2f   : > { %v483_v19 = vsel %vm450_vm2, %v481_v33, %v482_v10  ;;  %v488_v17 = vrot.slane %v5733_v9, 1  ;;  %v5736_v28 = vunpack.c.l.bf16 %v4445_v46  ;;  %v5742_v16 = vunpack.c.l.bf16 %v4460_v23  ;;  %v4494_v10 = vld [vmem:[%s4238_s25 + $0x94] sm:$0x1]  ;;  %v4504_v9 = vld [vmem:[%s4238_s25 + $0xa0] sm:$0xf] }
  0x30   : > { %v1704_v34 = vpack.c.bf16 %v483_v19, %v480_v15  ;;  %v486_v35 = vsel %vm450_vm2, %v484_v24, %v485_v27  ;;  %v5740_v43 = vunpack.c.l.bf16 %v4463_v52  ;;  %3567 = vmatprep.mubr.msk.bf16.mxu1 %vm597_vm3, %v583_v38  ;;  %v5741_v27 = vunpack.c.l.bf16 %v4475_v29  ;;  %5846 = vst [vmem:[#allocation17_spill] sm:$0xff] %v4504_v9  ;;  %v4641_v1 = vld [vmem:[%s4238_s25 + $0xd0] sm:$0xf]  ;;  %v4652_v57 = vld [vmem:[%s4238_s25 + $0xd4] sm:$0x1] }
  0x31   : > { %v4497_v33 = vpack.c.bf16 %v486_v35, %v483_v19  ;;  %v489_v15 = vsel %vm450_vm2, %v487_v30, %v488_v17  ;;  %v490_v24 = vrot.slane %v5736_v28, 1  ;;  %v491_v38 = vrot.slane %v5742_v16, 1  ;;  %v4698_v6 = vld [vmem:[%s4238_s25 + $0xf0] sm:$0xf] }
  0x32   : > { %3703 = vmatprep.mubr.msk.bf16.mxu0 %vm597_vm3, %v1704_v34  ;;  %v1705_v8 = vpack.c.bf16 %v489_v15, %v486_v35  ;;  %v493_v19 = vrot.slane %v5740_v43, 1  ;;  %v5745_v17 = vunpack.c.l.bf16 %v4482_v31  ;;  %v494_v30 = vrot.slane %v5741_v27, 1  ;;  %v4524_v34 = vld [vmem:[%s4238_s25 + $0xac] sm:$0x1]  ;;  %5877 = vst [vmem:[#allocation32_spill] sm:$0xff] %v4698_v6 }
  0x33   : > { %5845 = vst [vmem:[#allocation16_spill] sm:$0xff] %v4497_v33  ;;  %v5746_v28 = vunpack.c.l.bf16 %v4488_v12  ;;  %v492_v35 = vsel %vm450_vm2, %v490_v24, %v491_v38  ;;  %v5748_v16 = vunpack.c.l.bf16 %v4521_v4  ;;  %vm2922_vm5 = vcmask 64512  }
  0x34   : > { %3568 = vmatmul.mubr.msk.bf16.gmra.mrb[8].mxu1 %vm597_vm3, %v4497_v33  ;;  %v496_v43 = vrot.slane %v5745_v17, 1  ;;  %v4534_v3 = vpack.c.bf16 %v492_v35, %v489_v15  ;;  %v495_v2 = vsel %vm450_vm2, %v493_v19, %v494_v30  ;;  %v5849_v33 = vunpack.c.l.bf16 %v4491_v37 }
  0x35   : > { %3704 = vmatmul.mubr.msk.bf16.gmra.mrb[8].mxu0 %vm597_vm3, %v1705_v8  ;;  %v497_v51 = vrot.slane %v5746_v28, 1  ;;  %v1706_v38 = vpack.c.bf16 %v495_v2, %v492_v35  ;;  %v5850_v17 = vunpack.c.l.bf16 %v4494_v10  ;;  %v5851_v19 = vunpack.c.l.bf16 %v4504_v9 }
  0x36   : > { %5848 = vst [vmem:[#allocation19_spill] sm:$0xff] %v4534_v3  ;;  %v1687_v24 = vrot.slane %v5849_v33, 1  ;;  %3571 = vmatprep.mubr.msk.bf16.mxu1 %vm597_vm3, %v4534_v3  ;;  %v5852_v33 = vunpack.c.l.bf16 %v4507_v11  ;;  %v4571_v3 = vld [vmem:[%s4238_s25 + $0xb4] sm:$0x1]  ;;  %v4664_v11 = vld [vmem:[%s4238_s25 + $0xd8] sm:$0xf] }
  0x37   : > { %v1688_v27 = vrot.slane %v5850_v17, 1  ;;  %v498_v15 = vsel %vm450_vm2, %v496_v43, %v497_v51  ;;  %v499_v30 = vrot.slane %v5851_v19, 1  ;;  %v4555_v17 = vsel %vm1023_vm4, %v4287_v21, %v4305_v36  ;;  %3707 = vmatprep.mubr.msk.bf16.mxu0 %vm597_vm3, %v1706_v38  ;;  %v4587_v38 = vld [vmem:[%s4238_s25 + $0xbc] sm:$0x1] }
  0x38   : > { %v500_v35 = vrot.slane %v5852_v33, 1  ;;  %5853 = vst [vmem:[#allocation20_spill] sm:$0xff] %v4555_v17  ;;  %v4558_v28 = vpack.c.bf16 %v498_v15, %v495_v2  ;;  %v502_v51 = vrot.slane %v5748_v16, 1  ;;  %v5856_v43 = vunpack.c.l.bf16 %v4524_v34  ;;  %v4568_v33 = vld [vmem:[%s4238_s25 + $0xb0] sm:$0xf] }
  0x39   : > { %v4561_v8 = vsel %vm450_vm2, %v1687_v24, %v1688_v27  ;;  %v1032_v2 = vsel %vm1023_vm4, %v4318_v47, %v4320_v48  ;;  %v4581_v27 = vsel %vm1023_vm4, %v4322_v49, %v4329_v53  ;;  %v4584_v24 = vld [vmem:[%s4238_s25 + $0xb8] sm:$0xf]  ;;  %v4605_v49 = vld [vmem:[%s4238_s25 + $0xc4] sm:$0x1]  ;;  %v4608_v53 = vld [vmem:[%s4238_s25 + $0xc8] sm:$0xf] }
  0x3a   : > { %5854 = vst [vmem:[#allocation21_spill] sm:$0xff] %v4558_v28  ;;  %5855 = vst [vmem:[#allocation22_spill] sm:$0xff] %v4561_v8  ;;  %v503_v19 = vrot.slane %v5856_v43, 1  ;;  %v1707_v21 = vpack.c.bf16 %v4561_v8, %v498_v15  ;;  %v501_v36 = vsel %vm450_vm2, %v499_v30, %v500_v35  ;;  %v4590_v43 = vld [vmem:[%s4238_s25 + $0xc0] sm:$0xf]  ;;  %v4598_v30 = vsel %vm1023_vm4, %v4331_v54, %v4341_v58 }
  0x3b   : > { %5858 = vst [vmem:[#allocation24_spill] sm:$0xff] %v4598_v30  ;;  %v4601_v47 = vpack.c.bf16 %v4581_v27, %v1032_v2  ;;  %v1978_v48 = vpack.c.bf16 %v1032_v2, %v4555_v17  ;;  %v4613_v35 = vld [vmem:[%s5714_s1 + $0x4] sm:$0x3]  ;;  %v1979_v54 = vpack.c.bf16 %v4598_v30, %v4581_v27  ;;  %v4621_v2 = vld [vmem:[%s4238_s25 + $0xcc] sm:$0x1]  ;;  %v2259_v27 = vsel %vm646_vm1, %v4450_v59, 0 }
  0x3c   : > { %v4593_v15 = vsel %vm450_vm2, %v502_v51, %v503_v19  ;;  %4123 = vmatprep.subr.msk.bf16.mxu1 %vm646_vm1, %v4613_v35  ;;  %3572 = vmatmul.mubr.msk.bf16.gmra.mrb[12].mxu1 %vm597_vm3, %v4558_v28  ;;  %v5860_v19 = vunpack.c.l.bf16 %v4568_v33  ;;  %v5861_v8 = vunpack.c.l.bf16 %v4571_v3  ;;  %v5760_v16 = vunpack.c.l.bf16 %v4605_v49 }
  0x3d   : > { %5857 = vst [vmem:[#allocation23_spill] sm:$0xff] %v4593_v15  ;;  %5859 = vst [vmem:[#allocation25_spill] sm:$0xff] %v4601_v47  ;;  %v587_v51 = vpack.c.bf16 %v4593_v15, %v501_v36  ;;  %3708 = vmatmul.mubr.msk.bf16.gmra.mrb[12].mxu0 %vm597_vm3, %v1707_v21  ;;  %v5862_v59 = vunpack.c.l.bf16 %v4584_v24  ;;  %v5864_v42 = vunpack.c.l.bf16 %v4590_v43  ;;  %vm3026_vm6 = vcmask 57344  }
  0x3e   : > { %v505_v15 = vrot.slane %v5860_v19, 1  ;;  %v506_v28 = vrot.slane %v5861_v8, 1  ;;  %3729 = vmatprep.mubr.msk.bf16.mxu0 %vm597_vm3, %v1978_v48  ;;  %v512_v47 = vrot.slane %v5760_v16, 1  ;;  %v5866_v48 = vunpack.c.l.bf16 %v4608_v53 }
  0x3f   : > { %3575 = vmatprep.mubr.msk.bf16.mxu1 %vm597_vm3, %v587_v51  ;;  %v508_v21 = vrot.slane %v5862_v59, 1  ;;  %v5863_v51 = vunpack.c.l.bf16 %v4587_v38  ;;  %v511_v8 = vrot.slane %v5864_v42, 1  ;;  %v5867_v59 = vunpack.c.l.bf16 %v4308_v39 }
  0x40   : > { %v4655_v36 = vsel %vm450_vm2, %v505_v15, %v506_v28  ;;  %v514_v20 = vrot.slane %v5866_v48, 1  ;;  %v5869_v42 = vunpack.c.l.bf16 %v4621_v2  ;;  %v5870_v28 = vunpack.c.l.bf16 %v4311_v44  ;;  %v4676_v48 = vld [vmem:[%s4238_s25 + $0xdc] sm:$0x1] }
  0x41   : > { %v509_v58 = vrot.slane %v5863_v51, 1  ;;  %5865 = vst [vmem:[#allocation26_spill] sm:$0xff] %v4655_v36  ;;  %v1039_v51 = vrot.slane %v5867_v59, 2  ;;  %v5871_v16 = vunpack.c.l.bf16 %v4314_v45  ;;  %v5767_v44 = vunpack.c.l.bf16 %v4641_v1 }
  0x42   : > { %v515_v9 = vrot.slane %v5869_v42, 1  ;;  %v1040_v15 = vrot.slane %v5870_v28, 2 }
  0x43   : > { %v4667_v19 = vsel %vm450_vm2, %v508_v21, %v509_v58  ;;  %v1042_v17 = vrot.slane %v5871_v16, 2  ;;  %v4683_v58 = vsel %vm450_vm2, %v511_v8, %v512_v47  ;;  %v5874_v21 = vunpack.c.l.bf16 %v4325_v50  ;;  %v4710_v8 = vld [vmem:[%s4238_s25 + $0xf4] sm:$0x1] }
  0x44   : > { %5868 = vst [vmem:[#allocation27_spill] sm:$0xff] %v4667_v19  ;;  %v4680_v59 = vpack.c.bf16 %v4667_v19, %v4655_v36  ;;  %5873 = vst [vmem:[#allocation29_spill] sm:$0xff] %v4683_v58  ;;  %v4689_v28 = vsel %vm450_vm2, %v514_v20, %v515_v9  ;;  %v4694_v30 = vsel %vm1023_vm4, %v1039_v51, %v1040_v15  ;;  %v5769_v36 = vunpack.c.l.bf16 %v4652_v57  ;;  %v4716_v51 = vld [vmem:[%s4238_s25 + $0xfc] sm:$0x1]  ;;  %v4731_v9 = vld [vmem:[%s5714_s1 + $0xe] sm:$0x3] }
  0x45   : > { %v1043_v42 = vrot.slane %v5874_v21, 2  ;;  %5875 = vst [vmem:[#allocation30_spill] sm:$0xff] %v4689_v28  ;;  %5876 = vst [vmem:[#allocation31_spill] sm:$0xff] %v4694_v30  ;;  %v4702_v47 = vpack.c.bf16 %v4689_v28, %v4683_v58  ;;  %v4713_v21 = vld [vmem:[%s4238_s25 + $0xf8] sm:$0xf]  ;;  %v5881_v16 = vunpack.c.l.bf16 %v4334_v55  ;;  %3730 = vmatmul.mubr.msk.bf16.vlgmr.msra.gmra.mrb[0].mxu0 %vm597_vm3, %v1979_v54  ;;  %v5883_v19 = vunpack.c.l.bf16 %v4664_v11 }
  0x46   : > { %5872 = vst [vmem:[#allocation28_spill] sm:$0xff] %v4680_v59  ;;  %5880 = vst [vmem:[#allocation35_spill] sm:$0xff] %v4710_v8  ;;  %3576 = vmatmul.mubr.msk.bf16.gmra.mrb[16].mxu1 %vm597_vm3, %v4680_v59  ;;  %v5884_v58 = vunpack.c.l.bf16 %v4676_v48  ;;  %v5885_v28 = vunpack.c.l.bf16 %v4337_v56  ;;  %v5886_v59 = vunpack.c.l.bf16 %v4346_v61  ;;  %3762 = vmatpush3.bf16.msra.mxu0 %v2259_v27 }
  0x47   : > { %5878 = vst [vmem:[#allocation33_spill] sm:$0xff] %v4702_v47  ;;  %v4705_v50 = vsel %vm1023_vm4, %v1042_v17, %v1043_v42  ;;  %v517_v17 = vrot.slane %v5767_v44, 1  ;;  %v518_v42 = vrot.slane %v5769_v36, 1  ;;  %v1045_v20 = vrot.slane %v5881_v16, 2  ;;  %5882 = vst [vmem:[#allocation36_spill] sm:$0xff] %v4731_v9  ;;  %3579 = vmatprep.mubr.msk.bf16.mxu1 %vm597_vm3, %v4702_v47  ;;  %4129 = vmatprep.subr.msk.bf16.mxu0 %vm646_vm1, %v4731_v9 }
  0x48   : > { %5879 = vst [vmem:[#allocation34_spill] sm:$0xff] %v4705_v50  ;;  %v1980_v15 = vpack.c.bf16 %v4705_v50, %v4694_v30  ;;  %v520_v44 = vrot.slane %v5883_v19, 1  ;;  %v521_v36 = vrot.slane %v5884_v58, 1  ;;  %v1046_v16 = vrot.slane %v5885_v28, 2 }
  0x49   : > { %v1962_v50 = vrot.slane %v5886_v59, 2  ;;  %v4746_v54 = vsel %vm450_vm2, %v517_v17, %v518_v42  ;;  %v5888_v47 = vunpack.c.l.bf16 %v4349_v62  ;;  %v5775_v30 = vunpack.c.l.bf16 %v4698_v6  ;;  %v4780_v17 = vld [vmem:[%s4238_s25 + $0x108] sm:$0xf] }
  0x4a   : > { %3733 = vmatprep.mubr.msk.bf16.mxu0 %vm597_vm3, %v1980_v15  ;;  %5887 = vst [vmem:[#allocation37_spill] sm:$0xff] %v4746_v54  ;;  %v5777_v58 = vunpack.c.l.bf16 %v4710_v8  ;;  %v4753_v56 = vsel %vm450_vm2, %v520_v44, %v521_v36  ;;  %v4756_v27 = vsel %vm1023_vm4, %v1045_v20, %v1046_v16  ;;  %v5782_v59 = vunpack.c.l.bf16 %v4713_v21  ;;  %v4761_v15 = vld [vmem:[%s4238_s25 + $0x100] sm:$0xf]  ;;  %v4777_v20 = vld [vmem:[%s4238_s25 + $0x104] sm:$0x1] }
  0x4b   : > { %v1963_v19 = vrot.slane %v5888_v47, 2  ;;  %5889 = vst [vmem:[#allocation38_spill] sm:$0xff] %v4753_v56  ;;  %5890 = vst [vmem:[#allocation39_spill] sm:$0xff] %v4756_v27  ;;  %v5784_v28 = vunpack.c.l.bf16 %v4716_v51  ;;  %v4767_v62 = vpack.c.bf16 %v4753_v56, %v4746_v54  ;;  %v523_v44 = vrot.slane %v5775_v30, 1  ;;  %v4791_v56 = vld [vmem:[%s4238_s25 + $0x10c] sm:$0x1] }
  0x4c   : > { %v524_v47 = vrot.slane %v5777_v58, 1  ;;  %v526_v16 = vrot.slane %v5782_v59, 1  ;;  %v5894_v54 = vunpack.c.l.bf16 %v4391_v32  ;;  %v5896_v59 = vunpack.c.l.bf16 %v4402_v41 }
  0x4d   : > { %5891 = vst [vmem:[#allocation40_spill] sm:$0xff] %v4767_v62  ;;  %v4770_v36 = vsel %vm1023_vm4, %v1962_v50, %v1963_v19  ;;  %v527_v50 = vrot.slane %v5784_v28, 1  ;;  %v5893_v19 = vunpack.c.l.bf16 %v4374_v22  ;;  %v5791_v6 = vunpack.c.l.bf16 %v4777_v20 }
  0x4e   : > { %5892 = vst [vmem:[#allocation41_spill] sm:$0xff] %v4770_v36  ;;  %v1981_v42 = vpack.c.bf16 %v4770_v36, %v4756_v27  ;;  %v525_v58 = vsel %vm450_vm2, %v523_v44, %v524_v47  ;;  %v1052_v61 = vrot.slane %v5894_v54, 2  ;;  %v5895_v36 = vunpack.c.l.bf16 %v4399_v40  ;;  %3580 = vmatmul.mubr.msk.bf16.gmra.mrb[20].mxu1 %vm597_vm3, %v4767_v62  ;;  %v4820_v44 = vld [vmem:[%s4238_s25 + $0x114] sm:$0x1]  ;;  %v4823_v47 = vld [vmem:[%s4238_s25 + $0x118] sm:$0xf] }
  0x4f   : > { %v1051_v30 = vrot.slane %v5893_v19, 2  ;;  %v1055_v8 = vrot.slane %v5896_v59, 2  ;;  %v4801_v28 = vsel %vm450_vm2, %v526_v16, %v527_v50  ;;  %v5789_v19 = vunpack.c.l.bf16 %v4761_v15 }
  0x50   : > { %v1054_v9 = vrot.slane %v5895_v36, 2  ;;  %5897 = vst [vmem:[#allocation42_spill] sm:$0xff] %v4801_v28  ;;  %v5792_v27 = vunpack.c.l.bf16 %v4780_v17  ;;  %v591_v32 = vpack.c.bf16 %v4801_v28, %v525_v58  ;;  %v5794_v59 = vunpack.c.l.bf16 %v4791_v56  ;;  %v4817_v36 = vld [vmem:[%s4238_s25 + $0x110] sm:$0xf]  ;;  %3734 = vmatmul.mubr.msk.bf16.gmra.mrb[4].mxu0 %vm597_vm3, %v1981_v42 }
  0x51   : > { %v4810_v54 = vsel %vm1023_vm4, %v1051_v30, %v1052_v61  ;;  %v529_v61 = vrot.slane %v5789_v19, 1  ;;  %v530_v30 = vrot.slane %v5791_v6, 1  ;;  %v5900_v42 = vunpack.c.l.bf16 %v4411_v60 }
  0x52   : > { %5898 = vst [vmem:[#allocation43_spill] sm:$0xff] %v4810_v54  ;;  %v4813_v41 = vsel %vm1023_vm4, %v1054_v9, %v1055_v8  ;;  %v532_v9 = vrot.slane %v5792_v27, 1  ;;  %v4835_v8 = vld [vmem:[%s4238_s25 + $0x11c] sm:$0x1]  ;;  %3583 = vmatprep.mubr.msk.bf16.mxu1 %vm597_vm3, %v591_v32  ;;  %v533_v58 = vrot.slane %v5794_v59, 1  ;;  %v5901_v28 = vunpack.c.l.bf16 %v4414_v63 }
  0x53   : > { %5899 = vst [vmem:[#allocation44_spill] sm:$0xff] %v4813_v41  ;;  %v1982_v16 = vpack.c.bf16 %v4813_v41, %v4810_v54  ;;  %v1057_v50 = vrot.slane %v5900_v42, 2  ;;  %v5902_v62 = vunpack.c.l.bf16 %v4417_v0  ;;  %v4848_v27 = vsel %vm450_vm2, %v529_v61, %v530_v30  ;;  %v4863_v61 = vld [vmem:[%s4238_s25 + $0x120] sm:$0xf] }
  0x54   : > { %v1058_v19 = vrot.slane %v5901_v28, 2  ;;  %5903 = vst [vmem:[#allocation45_spill] sm:$0xff] %v4848_v27  ;;  %v5904_v32 = vunpack.c.l.bf16 %v4426_v26  ;;  %v5797_v59 = vunpack.c.l.bf16 %v4817_v36  ;;  %v5798_v42 = vunpack.c.l.bf16 %v4820_v44 }
  0x55   : > { %v1060_v6 = vrot.slane %v5902_v62, 2  ;;  %3737 = vmatprep.mubr.msk.bf16.mxu0 %vm597_vm3, %v1982_v16  ;;  %v4855_v63 = vsel %vm450_vm2, %v532_v9, %v533_v58  ;;  %v5804_v62 = vunpack.c.l.bf16 %v4823_v47  ;;  %v4877_v58 = vld [vmem:[%s4238_s25 + $0x124] sm:$0x1]  ;;  %v5912_v41 = vunpack.c.l.bf16 %v4460_v23 }
  0x56   : > { %v1061_v54 = vrot.slane %v5904_v32, 2  ;;  %5905 = vst [vmem:[#allocation46_spill] sm:$0xff] %v4855_v63  ;;  %v4858_v28 = vsel %vm1023_vm4, %v1057_v50, %v1058_v19  ;;  %v4867_v26 = vpack.c.bf16 %v4855_v63, %v4848_v27  ;;  %v535_v9 = vrot.slane %v5797_v59, 1  ;;  %v4880_v50 = vld [vmem:[%s4238_s25 + $0x128] sm:$0xf] }
  0x57   : > { %5906 = vst [vmem:[#allocation47_spill] sm:$0xff] %v4858_v28  ;;  %v536_v19 = vrot.slane %v5798_v42, 1  ;;  %v538_v16 = vrot.slane %v5804_v62, 1  ;;  %v5909_v63 = vunpack.c.l.bf16 %v4835_v8  ;;  %v4891_v59 = vld [vmem:[%s4238_s25 + $0x12c] sm:$0x1]  ;;  %v1064_v0 = vrot.slane %v5912_v41, 2 }
  0x58   : > { %5907 = vst [vmem:[#allocation48_spill] sm:$0xff] %v4867_v26  ;;  %v4870_v30 = vsel %vm1023_vm4, %v1060_v6, %v1061_v54  ;;  %v5910_v54 = vunpack.c.l.bf16 %v4445_v46  ;;  %v5913_v40 = vunpack.c.l.bf16 %v4463_v52  ;;  %3584 = vmatmul.mubr.msk.bf16.gmra.mrb[24].mxu1 %vm597_vm3, %v4867_v26  ;;  %v5811_v41 = vunpack.c.l.bf16 %v4891_v59 }
  0x59   : > { %5908 = vst [vmem:[#allocation49_spill] sm:$0xff] %v4870_v30  ;;  %v1983_v32 = vpack.c.bf16 %v4870_v30, %v4858_v28  ;;  %v539_v6 = vrot.slane %v5909_v63, 1  ;;  %v4894_v42 = vsel %vm450_vm2, %v535_v9, %v536_v19  ;;  %v5914_v28 = vunpack.c.l.bf16 %v4475_v29 }
  0x5a   : > { %v1063_v27 = vrot.slane %v5910_v54, 2  ;;  %5911 = vst [vmem:[#allocation50_spill] sm:$0xff] %v4894_v42  ;;  %v1066_v30 = vrot.slane %v5913_v40, 2  ;;  %v5806_v54 = vunpack.c.l.bf16 %v4863_v61  ;;  %v5809_v9 = vunpack.c.l.bf16 %v4877_v58 }
  0x5b   : > { %v1067_v62 = vrot.slane %v5914_v28, 2  ;;  %v4905_v63 = vsel %vm450_vm2, %v538_v16, %v539_v6  ;;  %v5808_v19 = vunpack.c.l.bf16 %v4880_v50  ;;  %3738 = vmatmul.mubr.msk.bf16.gmra.mrb[8].mxu0 %vm597_vm3, %v1983_v32 }
  0x5c   : > { %5915 = vst [vmem:[#allocation51_spill] sm:$0xff] %v4905_v63  ;;  %v4913_v23 = vpack.c.bf16 %v4905_v63, %v4894_v42  ;;  %v4916_v40 = vsel %vm1023_vm4, %v1063_v27, %v1064_v0  ;;  %v541_v16 = vrot.slane %v5806_v54, 1  ;;  %v542_v32 = vrot.slane %v5809_v9, 1 }
  0x5d   : > { %v4919_v29 = vsel %vm1023_vm4, %v1066_v30, %v1067_v62  ;;  %v544_v6 = vrot.slane %v5808_v19, 1  ;;  %v545_v0 = vrot.slane %v5811_v41, 1  ;;  %v5917_v27 = vunpack.c.l.bf16 %v4482_v31 }
  0x5e   : > { %5916 = vst [vmem:[#allocation52_spill] sm:$0xff] %v4913_v23  ;;  %v1984_v28 = vpack.c.bf16 %v4919_v29, %v4916_v40  ;;  %3587 = vmatprep.mubr.msk.bf16.mxu1 %vm597_vm3, %v4913_v23  ;;  %v5918_v30 = vunpack.c.l.bf16 %v4488_v12  ;;  %v5919_v54 = vunpack.c.l.bf16 %v4491_v37  ;;  %v4942_v19 = vsel %vm450_vm2, %v541_v16, %v542_v32 }
  0x5f   : > { %v1069_v62 = vrot.slane %v5917_v27, 2  ;;  %5920 = vst [vmem:[#allocation53_spill] sm:$0xff] %v4942_v19  ;;  %v5921_v9 = vunpack.c.l.bf16 %v4494_v10  ;;  %v5922_v41 = vunpack.c.l.bf16 %v4521_v4  ;;  %v5923_v27 = vunpack.c.l.bf16 %v4524_v34 }
  0x60   : > { %v1070_v63 = vrot.slane %v5918_v30, 2  ;;  %v1965_v42 = vrot.slane %v5919_v54, 2  ;;  %3741 = vmatprep.mubr.msk.bf16.mxu0 %vm597_vm3, %v1984_v28  ;;  %v4951_v12 = vsel %vm450_vm2, %v544_v6, %v545_v0  ;;  %v5925_v28 = vunpack.c.l.bf16 %v4568_v33 }
  0x61   : > { %v1966_v23 = vrot.slane %v5921_v9, 2  ;;  %v1075_v26 = vrot.slane %v5922_v41, 2  ;;  %v1076_v52 = vrot.slane %v5923_v27, 2  ;;  %5924 = vst [vmem:[#allocation54_spill] sm:$0xff] %v4951_v12  ;;  %v5926_v32 = vunpack.c.l.bf16 %v4571_v3  ;;  %v4980_v27 = vld [vmem:[%s4238_s25 + $0xe0] sm:$0xf] }
  0x62   : > { %v4954_v54 = vsel %vm1023_vm4, %v1069_v62, %v1070_v63  ;;  %v1078_v16 = vrot.slane %v5925_v28, 2  ;;  %v4962_v9 = vpack.c.bf16 %v4951_v12, %v4942_v19  ;;  %v5928_v0 = vunpack.c.l.bf16 %v4584_v24 }
  0x63   : > { %v1079_v10 = vrot.slane %v5926_v32, 2  ;;  %v4965_v34 = vsel %vm1023_vm4, %v1965_v42, %v1966_v23  ;;  %v4968_v41 = vsel %vm1023_vm4, %v1075_v26, %v1076_v52  ;;  %v5929_v62 = vunpack.c.l.bf16 %v4587_v38 }
  0x64   : > { %5927 = vst [vmem:[#allocation55_spill] sm:$0xff] %v4962_v9  ;;  %v1985_v63 = vpack.c.bf16 %v4965_v34, %v4954_v54  ;;  %v1081_v3 = vrot.slane %v5928_v0, 2  ;;  %3588 = vmatmul.mubr.msk.bf16.gmra.mrb[28].mxu1 %vm597_vm3, %v4962_v9  ;;  %v5930_v42 = vunpack.c.l.bf16 %v4590_v43  ;;  %v5931_v23 = vunpack.c.l.bf16 %v4605_v49 }
  0x65   : > { %v4973_v6 = vsel %vm1023_vm4, %v1078_v16, %v1079_v10  ;;  %v1082_v30 = vrot.slane %v5929_v62, 2  ;;  %v4991_v16 = vld [vmem:[%s4238_s25 + $0xe4] sm:$0x1]  ;;  %v5932_v38 = vcombine.low %v4259_v5, %v4266_v7  ;;  %v5933_v32 = vunpack.c.l.bf16 %v4608_v53 }
  0x66   : > { %v1986_v52 = vpack.c.bf16 %v4973_v6, %v4968_v41  ;;  %v1084_v26 = vrot.slane %v5930_v42, 2  ;;  %v1085_v28 = vrot.slane %v5931_v23, 2  ;;  %3742 = vmatmul.mubr.msk.bf16.gmra.mrb[12].mxu0 %vm597_vm3, %v1985_v63  ;;  %v5934_v0 = vunpack.c.l.bf16 %v4621_v2 }
  0x67   : > { %3593 = vmatprep.mubr.msk.bf16.mxu1 %vm597_vm3, %v5932_v38  ;;  %v1087_v10 = vrot.slane %v5933_v32, 2  ;;  %v5935_v42 = vunpack.c.l.bf16 %v4641_v1  ;;  %v5006_v49 = vsel %vm1023_vm4, %v1081_v3, %v1082_v30  ;;  %v5936_v7 = vunpack.c.l.bf16 %v4652_v57 }
  0x68   : > { %v1088_v62 = vrot.slane %v5934_v0, 2  ;;  %3745 = vmatprep.mubr.msk.bf16.mxu0 %vm597_vm3, %v1986_v52  ;;  %v5009_v63 = vsel %vm1023_vm4, %v1084_v26, %v1085_v28  ;;  %v5820_v38 = vunpack.c.l.bf16 %v4980_v27  ;;  %v5819_v2 = vunpack.c.l.bf16 %v4991_v16 }
  0x69   : > { %v1090_v12 = vrot.slane %v5935_v42, 2  ;;  %v1091_v23 = vrot.slane %v5936_v7, 2  ;;  %v5020_v0 = vcombine.low %v4276_v14, %v4285_v18  ;;  %v1219_v30 = vsel %vm646_vm1, %v4613_v35, 0 }
  0x6a   : > { %v5015_v32 = vsel %vm1023_vm4, %v1087_v10, %v1088_v62  ;;  %v1987_v57 = vpack.c.bf16 %v5009_v63, %v5006_v49  ;;  %v5031_v52 = vcombine.low %v4294_v25, %v4308_v39  ;;  %v5937_v26 = vunpack.c.l.bf16 %v4664_v11 }
  0x6b   : > { %v5023_v3 = vsel %vm1023_vm4, %v1090_v12, %v1091_v23  ;;  %v5938_v10 = vunpack.c.l.bf16 %v4676_v48  ;;  %v1968_v62 = vrot.slane %v5820_v38, 2  ;;  %v1969_v35 = vrot.slane %v5819_v2, 2  ;;  %v5056_v48 = vld [vmem:[%s5714_s1 + $0x6] sm:$0x3]  ;;  %v286_v2 = vld [vmem:[%s4238_s25 + $0x134] sm:$0x1] }
  0x6c   : > { %v1093_v28 = vrot.slane %v5937_v26, 2  ;;  %v1988_v14 = vpack.c.bf16 %v5023_v3, %v5015_v32  ;;  %v5939_v42 = vunpack.c.l.bf16 %v4713_v21  ;;  %v5940_v39 = vunpack.c.l.bf16 %v4716_v51  ;;  %3594 = vmatmul.mubr.msk.bf16.vlgmr.msra.gmra.mrb[0].mxu1 %vm597_vm3, %v5020_v0 }
  0x6d   : > { %v1094_v12 = vrot.slane %v5938_v10, 2  ;;  %v5941_v26 = vunpack.c.l.bf16 %v4761_v15  ;;  %v5942_v9 = vunpack.c.l.bf16 %v4777_v20  ;;  %3626 = vmatpush3.bf16.msra.mxu1 %v1219_v30  ;;  %3597 = vmatprep.mubr.msk.bf16.mxu1 %vm597_vm3, %v5031_v52  ;;  %v5064_v20 = vsel %vm1023_vm4, %v1968_v62, %v1969_v35 }
  0x6e   : > { %v1099_v7 = vrot.slane %v5939_v42, 2  ;;  %v1100_v23 = vrot.slane %v5940_v39, 2  ;;  %3746 = vmatmul.mubr.msk.bf16.gmra.mrb[16].mxu0 %vm597_vm3, %v1987_v57  ;;  %5943 = vst [vmem:[#allocation56_spill] sm:$0xff] %v5064_v20  ;;  %4124 = vmatprep.subr.msk.bf16.mxu1 %vm646_vm1, %v5056_v48  ;;  %v5074_v30 = vcombine.low %v4314_v45, %v4334_v55  ;;  %v3217_v57 = vcombine.low %v4362_v13, %v4374_v22  ;;  %v5088_v39 = vld [vmem:[%s4238_s25 + $0x130] sm:$0xf]  ;;  %v5950_v22 = vld [vmem:[#allocation3_spill] sm:$0xff] }
  0x6f   : > { %v1102_v19 = vrot.slane %v5941_v26, 2  ;;  %v1103_v25 = vrot.slane %v5942_v9, 2  ;;  %3749 = vmatprep.mubr.msk.bf16.mxu0 %vm597_vm3, %v1988_v14  ;;  %v1095_v51 = vsel %vm1023_vm4, %v1093_v28, %v1094_v12  ;;  %v5944_v28 = vunpack.c.l.bf16 %v4780_v17  ;;  %5948 = vst [vmem:[#allocation57_spill] sm:$0xff] %v5088_v39 }
  0x70   : > { %v5067_v9 = vsel %vm1023_vm4, %v1099_v7, %v1100_v23  ;;  %v1989_v12 = vpack.c.bf16 %v5064_v20, %v1095_v51  ;;  %v5945_v62 = vunpack.c.l.bf16 %v4791_v56  ;;  %v5947_v42 = vunpack.c.l.bf16 %v4820_v44 }
  0x71   : > { %v1104_v10 = vsel %vm1023_vm4, %v1102_v19, %v1103_v25  ;;  %v1105_v14 = vrot.slane %v5944_v28, 2  ;;  %v5946_v25 = vunpack.c.l.bf16 %v4817_v36  ;;  %v5949_v45 = vunpack.c.l.bf16 %v4259_v5 }
  0x72   : > { %v1106_v35 = vrot.slane %v5945_v62, 2  ;;  %v1109_v7 = vrot.slane %v5947_v42, 2  ;;  %v5951_v23 = vunpack.c.l.bf16 %v5950_v22  ;;  %v1990_v28 = vpack.c.bf16 %v1104_v10, %v5067_v9  ;;  %v5956_v22 = vld [vmem:[#allocation9_spill] sm:$0xff] }
  0x73   : > { %v1108_v19 = vrot.slane %v5946_v25, 2  ;;  %v1024_v55 = vrot.slane %v5949_v45, 2  ;;  %v5952_v56 = vunpack.c.l.bf16 %v4823_v47  ;;  %v5953_v38 = vunpack.c.l.bf16 %v4835_v8 }
  0x74   : > { %v1025_v26 = vrot.slane %v5951_v23, 2  ;;  %v5954_v44 = vunpack.c.l.bf16 %v4863_v61  ;;  %v5955_v20 = vunpack.c.l.bf16 %v4877_v58  ;;  %3598 = vmatmul.mubr.msk.bf16.gmra.mrb[4].mxu1 %vm597_vm3, %v5074_v30  ;;  %v365_v5 = vunpack.c.l.bf16 %v5088_v39  ;;  %v5966_v39 = vld [vmem:[#allocation44_spill] sm:$0xff] }
  0x75   : > { %v1111_v62 = vrot.slane %v5952_v56, 2  ;;  %v1112_v25 = vrot.slane %v5953_v38, 2  ;;  %3601 = vmatprep.mubr.msk.bf16.mxu1 %vm597_vm3, %v3217_v57  ;;  %v1107_v45 = vsel %vm1023_vm4, %v1105_v14, %v1106_v35  ;;  %v1110_v8 = vsel %vm1023_vm4, %v1108_v19, %v1109_v7  ;;  %v5959_v57 = vld [vmem:[#allocation31_spill] sm:$0xff]  ;;  %v5960_v35 = vld [vmem:[#allocation20_spill] sm:$0xff]  ;;  %v5969_v19 = vld [vmem:[#allocation17_spill] sm:$0xff] }
  0x76   : > { %v1114_v42 = vrot.slane %v5954_v44, 2  ;;  %v1115_v18 = vrot.slane %v5955_v20, 2  ;;  %3750 = vmatmul.mubr.msk.bf16.gmra.mrb[20].mxu0 %vm597_vm3, %v1989_v12  ;;  %v366_v38 = vunpack.c.l.bf16 %v286_v2  ;;  %v5114_v58 = vcombine.low %v5956_v22, %v4411_v60  ;;  %v5957_v20 = vld [vmem:[#allocation12_spill] sm:$0xff]  ;;  %v5961_v60 = vld [vmem:[#allocation34_spill] sm:$0xff]  ;;  %v5962_v7 = vld [vmem:[#allocation39_spill] sm:$0xff] }
  0x77   : > { %3753 = vmatprep.mubr.msk.bf16.mxu0 %vm597_vm3, %v1990_v28  ;;  %v5118_v23 = vcombine.low %v5957_v20, %v4445_v46  ;;  %v5121_v56 = vsel %vm1023_vm4, %v1024_v55, %v1025_v26  ;;  %v5958_v12 = vld [vmem:[#allocation24_spill] sm:$0xff]  ;;  %v1113_v14 = vsel %vm1023_vm4, %v1111_v62, %v1112_v25  ;;  %v5133_v28 = vpack.c.bf16 %v5962_v7, %v5961_v60  ;;  %v5967_v62 = vld [vmem:[#allocation47_spill] sm:$0xff] }
  0x78   : > { %v5125_v44 = vpack.c.bf16 %v5959_v57, %v5958_v12  ;;  %v1116_v2 = vsel %vm1023_vm4, %v1114_v42, %v1115_v18  ;;  %v1991_v22 = vpack.c.bf16 %v1110_v8, %v1107_v45  ;;  %v5964_v20 = vunpack.c.l.bf16 %v4880_v50  ;;  %v5968_v18 = vld [vmem:[#allocation49_spill] sm:$0xff] }
  0x79   : > { %5963 = vst [vmem:[#allocation3_spill] sm:$0xff] %v5133_v28  ;;  %v5965_v26 = vunpack.c.l.bf16 %v4891_v59  ;;  %v1971_v12 = vrot.slane %v365_v5, 2  ;;  %v1972_v57 = vrot.slane %v366_v38, 2  ;;  %v5141_v25 = vpack.c.bf16 %v5967_v62, %v5966_v39 }
  0x7a   : > { %v1117_v55 = vrot.slane %v5964_v20, 2  ;;  %v5145_v42 = vpack.c.bf16 %v4916_v40, %v5968_v18  ;;  %v5149_v60 = vpack.c.bf16 %v4954_v54, %v4919_v29  ;;  %v1992_v7 = vpack.c.bf16 %v1116_v2, %v1113_v14 }
  0x7b   : > { %v1118_v46 = vrot.slane %v5965_v26, 2  ;;  %v5970_v20 = vunpack.c.l.bf16 %v5969_v19  ;;  %v5971_v26 = vld [vmem:[#allocation18_spill] sm:$0xff]  ;;  %v5160_v40 = vpack.c.bf16 %v5006_v49, %v4973_v6  ;;  %v5164_v29 = vpack.c.bf16 %v5015_v32, %v5009_v63  ;;  %v5975_v6 = vld [vmem:[#allocation35_spill] sm:$0xff] }
  0x7c   : > { %3602 = vmatmul.mubr.msk.bf16.gmra.mrb[8].mxu1 %vm597_vm3, %v5114_v58  ;;  %v5972_v39 = vunpack.c.l.bf16 %v5971_v26  ;;  %v5170_v54 = vsel %vm1023_vm4, %v1971_v12, %v1972_v57  ;;  %v5976_v49 = vunpack.c.l.bf16 %v5975_v6  ;;  %v5183_v32 = vpack.c.bf16 %v1107_v45, %v1104_v10  ;;  %v5977_v57 = vld [vmem:[#allocation15_spill] sm:$0xff]  ;;  %v5980_v6 = vld [vmem:[#allocation36_spill] sm:$0xff] }
  0x7d   : > { %v1072_v28 = vrot.slane %v5970_v20, 2  ;;  %v1119_v59 = vsel %vm1023_vm4, %v1117_v55, %v1118_v46  ;;  %3605 = vmatprep.mubr.msk.bf16.mxu1 %vm597_vm3, %v5118_v23  ;;  %v5173_v46 = vpack.c.bf16 %v1095_v51, %v5023_v3  ;;  %v5973_v55 = vld [vmem:[#allocation32_spill] sm:$0xff]  ;;  %v3221_v45 = vcombine.low %v5969_v19, %v4521_v4 }
  0x7e   : > { %v1073_v62 = vrot.slane %v5972_v39, 2  ;;  %3754 = vmatmul.mubr.msk.bf16.gmra.mrb[24].mxu0 %vm597_vm3, %v1991_v22  ;;  %v5974_v18 = vunpack.c.l.bf16 %v5973_v55  ;;  %v1097_v26 = vrot.slane %v5976_v49, 2  ;;  %v5185_v22 = vpack.c.bf16 %v1113_v14, %v1110_v8  ;;  %v5223_v49 = vld [vmem:[%s4238_s25 + $0x48] sm:$0xf] }
  0x7f   : > { %3757 = vmatprep.mubr.msk.bf16.mxu0 %vm597_vm3, %v1992_v7  ;;  %v5187_v12 = vpack.c.bf16 %v1119_v59, %v1116_v2  ;;  %v3220_v39 = vcombine.low %v5977_v57, %v4482_v31  ;;  %v1993_v10 = vpack.c.bf16 %v5170_v54, %v1119_v59  ;;  %v5978_v8 = vunpack.c.l.bf16 %v4980_v27 }
  0x80   : > { %v1096_v20 = vrot.slane %v5974_v18, 2  ;;  %v5181_v63 = vsel %vm1023_vm4, %v1072_v28, %v1073_v62  ;;  %v5979_v2 = vunpack.c.l.bf16 %v4991_v16  ;;  %v1693_v18 = vrot.slane %v365_v5, 1 }
  0x81   : > { %v1160_v3 = vpack.c.bf16 %v4968_v41, %v5181_v63  ;;  %v1690_v14 = vrot.slane %v5978_v8, 1  ;;  %v1694_v59 = vrot.slane %v366_v38, 1  ;;  %v3222_v16 = vcombine.low %v4568_v33, %v4584_v24  ;;  %v5233_v38 = vld [vmem:[%s5714_s1 + $0x10] sm:$0x3]  ;;  %v5994_v41 = vld [vmem:[#allocation13_spill] sm:$0xff] }
  0x82   : > { %v5192_v51 = vsel %vm1023_vm4, %v1096_v20, %v1097_v26  ;;  %v1691_v28 = vrot.slane %v5979_v2, 1  ;;  %v3223_v20 = vcombine.low %v4590_v43, %v4608_v53  ;;  %v2497_v5 = vsel %vm646_vm1, %v5980_v6, 0  ;;  %v5226_v26 = vld [vmem:[%s4238_s25 + $0x4c] sm:$0x1]  ;;  %v5266_v6 = vld [vmem:[%s4238_s25 + $0x98] sm:$0xf] }
  0x83   : > { %v5214_v19 = vsel %vm450_vm2, %v1693_v18, %v1694_v59  ;;  %v3224_v8 = vcombine.low %v4641_v1, %v4664_v11  ;;  %v3226_v18 = vcombine.low %v4761_v15, %v4780_v17  ;;  %v3227_v59 = vcombine.low %v4817_v36, %v4823_v47 }
  0x84   : > { %3606 = vmatmul.mubr.msk.bf16.gmra.mrb[12].mxu1 %vm597_vm3, %v3220_v39  ;;  %v5207_v62 = vsel %vm450_vm2, %v1690_v14, %v1691_v28  ;;  %v5981_v14 = vld [vmem:[#allocation7_spill] sm:$0xff] }
  0x85   : > { %3609 = vmatprep.mubr.msk.bf16.mxu1 %vm597_vm3, %v3221_v45  ;;  %v5829_v45 = vunpack.c.l.bf16 %v5226_v26  ;;  %v3346_v2 = vcombine.low %v5981_v14, %v5223_v49 }
  0x86   : > { %3758 = vmatmul.mubr.msk.bf16.gmra.mrb[28].mxu0 %vm597_vm3, %v1993_v10 }
  0x87   : > { %3763 = vmatprep.mubr.msk.bf16.mxu0 %vm597_vm3, %v5020_v0  ;;  %v5830_v0 = vunpack.c.l.bf16 %v5223_v49 }
  0x89   : > { %v2692_v10 = vrot.slane %v5830_v0, 2  ;;  %v5308_v0 = vld [vmem:[%s4238_s25 + $0xec] sm:$0x1] }
  0x8c   : > { %3610 = vmatmul.mubr.msk.bf16.gmra.mrb[16].mxu1 %vm597_vm3, %v3222_v16 }
  0x8d   : > { %3613 = vmatprep.mubr.msk.bf16.mxu1 %vm597_vm3, %v3223_v20 }
  0x8e   : > { %3764 = vmatmul.mubr.msk.bf16.vlgmr.msra.gmra.mrb[0].mxu0 %vm597_vm3, %v5031_v52  ;;  %v2693_v52 = vrot.slane %v5829_v45, 2  ;;  %v5305_v45 = vld [vmem:[%s4238_s25 + $0xe8] sm:$0xf] }
  0x8f   : > { %3796 = vmatpush3.bf16.msra.mxu0 %v2497_v5  ;;  %3767 = vmatprep.mubr.msk.bf16.mxu0 %vm597_vm3, %v5074_v30  ;;  %v3225_v30 = vcombine.low %v5973_v55, %v4713_v21  ;;  %v5269_v55 = vld [vmem:[%s4238_s25 + $0x9c] sm:$0x1]  ;;  %v5828_v5 = vunpack.c.l.bf16 %v5266_v6 }
  0x90   : > { %4130 = vmatprep.subr.msk.bf16.mxu0 %vm646_vm1, %v5233_v38  ;;  %v5254_v28 = vsel %vm1023_vm4, %v2692_v10, %v2693_v52  ;;  %v5827_v10 = vunpack.c.l.bf16 %v5269_v55  ;;  %v3228_v52 = vcombine.low %v4863_v61, %v4880_v50 }
  0x92   : > { %v2696_v14 = vrot.slane %v5827_v10, 2  ;;  %v1481_v10 = vsel %vm646_vm1, %v5056_v48, 0 }
  0x94   : > { %3614 = vmatmul.mubr.msk.bf16.gmra.mrb[20].mxu1 %vm597_vm3, %v3224_v8 }
  0x95   : > { %3617 = vmatprep.mubr.msk.bf16.mxu1 %vm597_vm3, %v3225_v30  ;;  %v5982_v30 = vpack.c.bf16 %v5960_v35, %v5121_v56  ;;  %v347_v56 = vunpack.c.l.bf16 %v5305_v45  ;;  %v348_v35 = vunpack.c.l.bf16 %v5308_v0  ;;  %v5337_v0 = vld [vmem:[%s4238_s25 + $0x138] sm:$0xf] }
  0x96   : > { %3768 = vmatmul.mubr.msk.bf16.gmra.mrb[4].mxu0 %vm597_vm3, %v3346_v2 }
  0x97   : > { %3771 = vmatprep.mubr.msk.bf16.mxu0 %vm597_vm3, %v5114_v58  ;;  %v2695_v58 = vrot.slane %v5828_v5, 2  ;;  %v5984_v5 = vld [vmem:[#allocation8_spill] sm:$0xff] }
  0x98   : > { %v5985_v7 = vunpack.c.l.bf16 %v5984_v5  ;;  %v5987_v5 = vld [vmem:[#allocation43_spill] sm:$0xff] }
  0x99   : > { %v5287_v2 = vsel %vm1023_vm4, %v2695_v58, %v2696_v14  ;;  %v5983_v58 = vunpack.c.l.bf16 %v4362_v13  ;;  %v2698_v13 = vrot.slane %v347_v56, 2 }
  0x9b   : > { %v1048_v14 = vrot.slane %v5983_v58, 2  ;;  %v367_v58 = vunpack.c.l.bf16 %v5337_v0 }
  0x9c   : > { %3618 = vmatmul.mubr.msk.bf16.gmra.mrb[24].mxu1 %vm597_vm3, %v3226_v18 }
  0x9d   : > { %3621 = vmatprep.mubr.msk.bf16.mxu1 %vm597_vm3, %v3227_v59 }
  0x9e   : > { %3772 = vmatmul.mubr.msk.bf16.gmra.mrb[8].mxu0 %vm597_vm3, %v5118_v23  ;;  %v3347_v23 = vcombine.low %v4491_v37, %v5266_v6 }
  0x9f   : > { %3775 = vmatprep.mubr.msk.bf16.mxu0 %vm597_vm3, %v3220_v39  ;;  %v1049_v39 = vrot.slane %v5985_v7, 2  ;;  %v4177_v7 = vld [vmem:[%s5714_s1 + $0x8] sm:$0x3] }
  0xa1   : > { %v1050_v48 = vsel %vm1023_vm4, %v1048_v14, %v1049_v39  ;;  %v5340_v39 = vld [vmem:[%s4238_s25 + $0x13c] sm:$0x1]  ;;  %v2701_v14 = vrot.slane %v367_v58, 2 }
  0xa4   : > { %3622 = vmatmul.mubr.msk.bf16.gmra.mrb[28].mxu1 %vm597_vm3, %v3228_v52 }
  0xa5   : > { %3627 = vmatprep.mubr.msk.bf16.mxu1 %vm597_vm3, %v5982_v30  ;;  %v5988_v30 = vld [vmem:[#allocation3_spill] sm:$0xff] }
  0xa6   : > { %3776 = vmatmul.mubr.msk.bf16.gmra.mrb[12].mxu0 %vm597_vm3, %v3347_v23  ;;  %v5986_v23 = vld [vmem:[#allocation25_spill] sm:$0xff] }
  0xa7   : > { %3779 = vmatprep.mubr.msk.bf16.mxu0 %vm597_vm3, %v3222_v16  ;;  %v2699_v16 = vrot.slane %v348_v35, 2 }
  0xac   : > { %3628 = vmatmul.mubr.msk.bf16.vlgmr.msra.gmra.mrb[0].mxu1 %vm597_vm3, %v5986_v23 }
  0xad   : > { %3660 = vmatpush3.bf16.msra.mxu1 %v1481_v10  ;;  %3631 = vmatprep.mubr.msk.bf16.mxu1 %vm597_vm3, %v5125_v44  ;;  %v1156_v10 = vpack.c.bf16 %v5987_v5, %v1050_v48  ;;  %v5989_v48 = vld [vmem:[#allocation57_spill] sm:$0xff]  ;;  %v5992_v5 = vunpack.c.l.bf16 %v5226_v26  ;;  %v5996_v26 = vpack.c.bf16 %v5067_v9, %v5192_v51 }
  0xae   : > { %3780 = vmatmul.mubr.msk.bf16.gmra.mrb[16].mxu0 %vm597_vm3, %v3223_v20  ;;  %4126 = vmatprep.subr.msk.bf16.mxu1 %vm646_vm1, %v4177_v7  ;;  %v3348_v20 = vcombine.low %v4980_v27, %v5305_v45  ;;  %v3349_v7 = vcombine.low %v5989_v48, %v5337_v0  ;;  %v6001_v9 = vld [vmem:[#allocation21_spill] sm:$0xff]  ;;  %v6009_v45 = vld [vmem:[#allocation40_spill] sm:$0xff] }
  0xaf   : > { %3783 = vmatprep.mubr.msk.bf16.mxu0 %vm597_vm3, %v3224_v8  ;;  %v5329_v8 = vsel %vm1023_vm4, %v2698_v13, %v2699_v16 }
  0xb4   : > { %3632 = vmatmul.mubr.msk.bf16.gmra.mrb[4].mxu1 %vm597_vm3, %v5988_v30 }
  0xb5   : > { %3635 = vmatprep.mubr.msk.bf16.mxu1 %vm597_vm3, %v1156_v10  ;;  %v2463_v10 = vrot.slane %v5992_v5, 1  ;;  %v6000_v5 = vld [vmem:[#allocation19_spill] sm:$0xff] }
  0xb6   : > { %3784 = vmatmul.mubr.msk.bf16.gmra.mrb[20].mxu0 %vm597_vm3, %v3348_v20 }
  0xb7   : > { %3787 = vmatprep.mubr.msk.bf16.mxu0 %vm597_vm3, %v3226_v18  ;;  %v368_v18 = vunpack.c.l.bf16 %v5340_v39  ;;  %v3287_v39 = vcombine.low %v4521_v4, %v4568_v33  ;;  %v3290_v4 = vcombine.low %v4664_v11, %v4980_v27  ;;  %v3293_v11 = vcombine.low %v4823_v47, %v4863_v61  ;;  %v6019_v47 = vld [vmem:[#allocation37_spill] sm:$0xff] }
  0xb8   : > { %v6020_v27 = vld [vmem:[#allocation29_spill] sm:$0xff] }
  0xb9   : > { %v2702_v13 = vrot.slane %v368_v18, 2 }
  0xbb   : > { %v5357_v16 = vsel %vm1023_vm4, %v2701_v14, %v2702_v13  ;;  %v2727_v14 = vsel %vm646_vm1, %v5233_v38, 0  ;;  %v5993_v13 = vld [vmem:[#allocation10_spill] sm:$0xff]  ;;  %v5997_v38 = vld [vmem:[#allocation16_spill] sm:$0xff] }
  0xbc   : > { %3636 = vmatmul.mubr.msk.bf16.gmra.mrb[8].mxu1 %vm597_vm3, %v5141_v25 }
  0xbd   : > { %3639 = vmatprep.mubr.msk.bf16.mxu1 %vm597_vm3, %v5145_v42 }
  0xbe   : > { %3788 = vmatmul.mubr.msk.bf16.gmra.mrb[24].mxu0 %vm597_vm3, %v3227_v59  ;;  %v5990_v59 = vld [vmem:[#allocation6_spill] sm:$0xff] }
  0xbf   : > { %3791 = vmatprep.mubr.msk.bf16.mxu0 %vm597_vm3, %v3228_v52  ;;  %v5991_v52 = vunpack.c.l.bf16 %v5223_v49 }
  0xc1   : > { %v2462_v20 = vrot.slane %v5991_v52, 1  ;;  %v5999_v52 = vunpack.c.l.bf16 %v5269_v55  ;;  %v4178_v55 = vld [vmem:[%s4238_s25 + $0x8] sm:$0xf] }
  0xc3   : > { %v2464_v63 = vsel %vm450_vm2, %v2462_v20, %v2463_v10  ;;  %v2466_v20 = vrot.slane %v5999_v52, 1 }
  0xc4   : > { %3640 = vmatmul.mubr.msk.bf16.gmra.mrb[12].mxu1 %vm597_vm3, %v5149_v60 }
  0xc5   : > { %3643 = vmatprep.mubr.msk.bf16.mxu1 %vm597_vm3, %v1160_v3  ;;  %v5995_v3 = vld [vmem:[#allocation11_spill] sm:$0xff] }
  0xc6   : > { %3792 = vmatmul.mubr.msk.bf16.gmra.mrb[28].mxu0 %vm597_vm3, %v3349_v7  ;;  %v2478_v49 = vpack.c.bf16 %v2464_v63, %v5995_v3  ;;  %v5998_v7 = vunpack.c.l.bf16 %v5266_v6  ;;  %v6002_v6 = vld [vmem:[#allocation22_spill] sm:$0xff]  ;;  %v2468_v63 = vrot.slane %v347_v56, 1  ;;  %v4180_v3 = vld [vmem:[%s4238_s25 + $0x28] sm:$0xf] }
  0xc7   : > { %3797 = vmatprep.mubr.msk.bf16.mxu0 %vm597_vm3, %v5990_v59 }
  0xc8   : > { %v2465_v59 = vrot.slane %v5998_v7, 1  ;;  %v6004_v7 = vld [vmem:[#allocation4_spill] sm:$0xff] }
  0xca   : > { %v2467_v51 = vsel %vm450_vm2, %v2465_v59, %v2466_v20  ;;  %v6005_v59 = vld [vmem:[#allocation5_spill] sm:$0xff]  ;;  %v6007_v20 = vld [vmem:[#allocation2_spill] sm:$0xff] }
  0xcb   : > { %v2479_v10 = vpack.c.bf16 %v2467_v51, %v6002_v6  ;;  %v6006_v52 = vcombine.low %v6004_v7, %v6005_v59  ;;  %v2472_v7 = vrot.slane %v368_v18, 1  ;;  %v6012_v59 = vld [vmem:[#allocation52_spill] sm:$0xff] }
  0xcc   : > { %3644 = vmatmul.mubr.msk.bf16.gmra.mrb[16].mxu1 %vm597_vm3, %v5160_v40 }
  0xcd   : > { %3647 = vmatprep.mubr.msk.bf16.mxu1 %vm597_vm3, %v5164_v29 }
  0xce   : > { %3798 = vmatmul.mubr.msk.bf16.vlgmr.msra.gmra.mrb[0].mxu0 %vm597_vm3, %v5993_v13 }
  0xcf   : > { %3830 = vmatpush3.bf16.msra.mxu0 %v2727_v14  ;;  %3801 = vmatprep.mubr.msk.bf16.mxu0 %vm597_vm3, %v5994_v41  ;;  %v4179_v14 = vld [vmem:[%s4238_s25 + $0x10] sm:$0xf] }
  0xd0   : > { %v3279_v13 = vcombine.low %v4178_v55, %v4179_v14  ;;  %v6003_v41 = vld [vmem:[#allocation28_spill] sm:$0xff]  ;;  %v4185_v55 = vld [vmem:[%s4238_s25 + $0x60] sm:$0xf] }
  0xd4   : > { %3648 = vmatmul.mubr.msk.bf16.gmra.mrb[20].mxu1 %vm597_vm3, %v5173_v46 }
  0xd5   : > { %3651 = vmatprep.mubr.msk.bf16.mxu1 %vm597_vm3, %v5996_v26 }
  0xd6   : > { %3802 = vmatmul.mubr.msk.bf16.gmra.mrb[4].mxu0 %vm597_vm3, %v2478_v49  ;;  %v4181_v49 = vld [vmem:[%s4238_s25 + $0x30] sm:$0xf] }
  0xd7   : > { %3805 = vmatprep.mubr.msk.bf16.mxu0 %vm597_vm3, %v5997_v38  ;;  %v3281_v26 = vcombine.low %v4180_v3, %v4181_v49  ;;  %v2469_v38 = vrot.slane %v348_v35, 1  ;;  %v4182_v35 = vld [vmem:[%s4238_s25 + $0x38] sm:$0xf]  ;;  %v4187_v3 = vld [vmem:[%s4238_s25 + $0x70] sm:$0xf]  ;;  %v6011_v49 = vld [vmem:[#allocation14_spill] sm:$0xff] }
  0xd9   : > { %v2470_v56 = vsel %vm450_vm2, %v2468_v63, %v2469_v38  ;;  %v2471_v38 = vrot.slane %v367_v58, 1  ;;  %v3288_v58 = vcombine.low %v4584_v24, %v4590_v43  ;;  %v3291_v24 = vcombine.low %v4713_v21, %v4761_v15  ;;  %v6016_v21 = vld [vmem:[#allocation26_spill] sm:$0xff] }
  0xda   : > { %v2480_v6 = vpack.c.bf16 %v2470_v56, %v5207_v62  ;;  %v3294_v43 = vcombine.low %v4880_v50, %v5989_v48  ;;  %v6021_v50 = vld [vmem:[#allocation27_spill] sm:$0xff] }
  0xdc   : > { %3652 = vmatmul.mubr.msk.bf16.gmra.mrb[24].mxu1 %vm597_vm3, %v5183_v32 }
  0xdd   : > { %3655 = vmatprep.mubr.msk.bf16.mxu1 %vm597_vm3, %v5185_v22 }
  0xde   : > { %3806 = vmatmul.mubr.msk.bf16.gmra.mrb[8].mxu0 %vm597_vm3, %v6000_v5  ;;  %v6008_v5 = vld [vmem:[#allocation33_spill] sm:$0xff] }
  0xdf   : > { %3809 = vmatprep.mubr.msk.bf16.mxu0 %vm597_vm3, %v6001_v9  ;;  %v4183_v9 = vld [vmem:[%s4238_s25 + $0x40] sm:$0xf] }
  0xe0   : > { %v3282_v51 = vcombine.low %v4182_v35, %v4183_v9 }
  0xe4   : > { %3656 = vmatmul.mubr.msk.bf16.gmra.mrb[28].mxu1 %vm597_vm3, %v5187_v12 }
  0xe5   : > { %3661 = vmatprep.mubr.msk.bf16.mxu1 %vm597_vm3, %v3279_v13  ;;  %v6010_v13 = vld [vmem:[#allocation48_spill] sm:$0xff] }
  0xe6   : > { %3810 = vmatmul.mubr.msk.bf16.gmra.mrb[12].mxu0 %vm597_vm3, %v2479_v10  ;;  %v4184_v10 = vld [vmem:[%s4238_s25 + $0x58] sm:$0xf] }
  0xe7   : > { %3813 = vmatprep.mubr.msk.bf16.mxu0 %vm597_vm3, %v6003_v41  ;;  %v3283_v14 = vcombine.low %v4184_v10, %v4185_v55  ;;  %v4186_v41 = vld [vmem:[%s4238_s25 + $0x68] sm:$0xf] }
  0xe8   : > { %v3284_v63 = vcombine.low %v4186_v41, %v4187_v3 }
  0xec   : > { %3662 = vmatmul.mubr.msk.bf16.vlgmr.msra.gmra.mrb[0].mxu1 %vm597_vm3, %v6006_v52  ;;  %v6013_v52 = vld [vmem:[#allocation55_spill] sm:$0xff] }
  0xed   : > { %3864 = vmatpush3.bf16.msra.mxu1 %v6007_v20  ;;  %3665 = vmatprep.mubr.msk.bf16.mxu1 %vm597_vm3, %v3281_v26  ;;  %v3285_v26 = vcombine.low %v6011_v49, %v5977_v57  ;;  %v2473_v20 = vsel %vm450_vm2, %v2471_v38, %v2472_v7  ;;  %v3286_v57 = vcombine.low %v4482_v31, %v4491_v37  ;;  %v6014_v37 = vld [vmem:[#allocation41_spill] sm:$0xff] }
  0xee   : > { %3814 = vmatmul.mubr.msk.bf16.gmra.mrb[16].mxu0 %vm597_vm3, %v6008_v5  ;;  %v2481_v0 = vpack.c.bf16 %v2473_v20, %v5214_v19  ;;  %v3289_v31 = vcombine.low %v4608_v53, %v4641_v1  ;;  %v2708_v33 = vpack.c.bf16 %v5254_v28, %v6014_v37  ;;  %v3292_v1 = vcombine.low %v4780_v17, %v4817_v36  ;;  %v6015_v53 = vld [vmem:[#allocation23_spill] sm:$0xff]  ;;  %v6018_v36 = vld [vmem:[#allocation30_spill] sm:$0xff]  ;;  %v6026_v28 = vld [vmem:[#allocation45_spill] sm:$0xff] }
  0xef   : > { %3817 = vmatprep.mubr.msk.bf16.mxu0 %vm597_vm3, %v6009_v45  ;;  %v1708_v15 = vpack.c.bf16 %v6016_v21, %v6015_v53  ;;  %v6017_v17 = vpack.c.bf16 %v5287_v2, %v4965_v34  ;;  %v1710_v61 = vpack.c.bf16 %v6019_v47, %v6018_v36  ;;  %v6023_v34 = vld [vmem:[#allocation38_spill] sm:$0xff] }
  0xf4   : > { %3666 = vmatmul.mubr.msk.bf16.gmra.mrb[4].mxu1 %vm597_vm3, %v3282_v51 }
  0xf5   : > { %3669 = vmatprep.mubr.msk.bf16.mxu1 %vm597_vm3, %v3283_v14 }
  0xf6   : > { %3818 = vmatmul.mubr.msk.bf16.gmra.mrb[20].mxu0 %vm597_vm3, %v2480_v6 }
  0xf7   : > { %3821 = vmatprep.mubr.msk.bf16.mxu0 %vm597_vm3, %v6010_v13 }
  0xfc   : > { %3670 = vmatmul.mubr.msk.bf16.gmra.mrb[8].mxu1 %vm597_vm3, %v3284_v63 }
  0xfd   : > { %3673 = vmatprep.mubr.msk.bf16.mxu1 %vm597_vm3, %v3285_v26 }
  0xfe   : > { %3822 = vmatmul.mubr.msk.bf16.gmra.mrb[24].mxu0 %vm597_vm3, %v6012_v59 }
  0xff   : > { %3825 = vmatprep.mubr.msk.bf16.mxu0 %vm597_vm3, %v6013_v52 }
 0x104   : > { %3674 = vmatmul.mubr.msk.bf16.gmra.mrb[12].mxu1 %vm597_vm3, %v3286_v57 }
 0x105   : > { %3677 = vmatprep.mubr.msk.bf16.mxu1 %vm597_vm3, %v3287_v39 }
 0x106   : > { %3826 = vmatmul.mubr.msk.bf16.gmra.mrb[28].mxu0 %vm597_vm3, %v2481_v0 }
 0x107   : > { %3831 = vmatprep.mubr.msk.bf16.mxu0 %vm597_vm3, %v5986_v23 }
 0x10c   : > { %3678 = vmatmul.mubr.msk.bf16.gmra.mrb[16].mxu1 %vm597_vm3, %v3288_v58 }
 0x10d   : > { %3681 = vmatprep.mubr.msk.bf16.mxu1 %vm597_vm3, %v3289_v31 }
 0x10e   : > { %3832 = vmatmul.mubr.msk.bf16.vlgmr.msra.gmra.mrb[0].mxu0 %vm597_vm3, %v5125_v44  ;;  %v6022_v44 = vpack.c.bf16 %v6020_v27, %v6021_v50 }
 0x10f   : > { %3835 = vmatprep.mubr.msk.bf16.mxu0 %vm597_vm3, %v5988_v30  ;;  %v6029_v30 = vld [vmem:[#allocation51_spill] sm:$0xff] }
 0x114   : > { %3682 = vmatmul.mubr.msk.bf16.gmra.mrb[20].mxu1 %vm597_vm3, %v3290_v4 }
 0x115   : > { %3685 = vmatprep.mubr.msk.bf16.mxu1 %vm597_vm3, %v3291_v24 }
 0x116   : > { %3836 = vmatmul.mubr.msk.bf16.gmra.mrb[4].mxu0 %vm597_vm3, %v2708_v33 }
 0x117   : > { %3839 = vmatprep.mubr.msk.bf16.mxu0 %vm597_vm3, %v5141_v25  ;;  %v1711_v25 = vpack.c.bf16 %v5207_v62, %v6023_v34  ;;  %v6030_v62 = vld [vmem:[#allocation53_spill] sm:$0xff] }
 0x118   : > { %v1714_v18 = vpack.c.bf16 %v6030_v62, %v6029_v30 }
 0x11c   : > { %3686 = vmatmul.mubr.msk.bf16.gmra.mrb[24].mxu1 %vm597_vm3, %v3292_v1 }
 0x11d   : > { %3689 = vmatprep.mubr.msk.bf16.mxu1 %vm597_vm3, %v3293_v11 }
 0x11e   : > { %3840 = vmatmul.mubr.msk.bf16.gmra.mrb[8].mxu0 %vm597_vm3, %v5145_v42  ;;  %v6024_v42 = vld [vmem:[#allocation56_spill] sm:$0xff] }
 0x11f   : > { %3843 = vmatprep.mubr.msk.bf16.mxu0 %vm597_vm3, %v5149_v60  ;;  %v2710_v60 = vpack.c.bf16 %v5329_v8, %v6024_v42  ;;  %v6031_v8 = vld [vmem:[#allocation54_spill] sm:$0xff] }
 0x120   : > { %v1715_v48 = vpack.c.bf16 %v5214_v19, %v6031_v8 }
 0x124   : > { %3690 = vmatmul.mubr.msk.bf16.gmra.mrb[28].mxu1 %vm597_vm3, %v3294_v43 }
 0x125   : > { %3711 = vmatprep.mubr.msk.bf16.mxu1 %vm597_vm3, %v1708_v15 }
 0x126   : > { %3844 = vmatmul.mubr.msk.bf16.gmra.mrb[12].mxu0 %vm597_vm3, %v6017_v17 }
 0x127   : > { %3847 = vmatprep.mubr.msk.bf16.mxu0 %vm597_vm3, %v5160_v40  ;;  %v6025_v40 = vld [vmem:[#allocation42_spill] sm:$0xff] }
 0x128   : > { %v1712_v2 = vpack.c.bf16 %v6026_v28, %v6025_v40 }
 0x12c   : > { %3712 = vmatmul.mubr.msk.bf16.vlgmr.msra.gmra.mrb[16].mxu1 %vm597_vm3, %v6022_v44 }
 0x12d   : > { %3715 = vmatprep.mubr.msk.bf16.mxu1 %vm597_vm3, %v1710_v61 }
 0x12e   : > { %3848 = vmatmul.mubr.msk.bf16.gmra.mrb[16].mxu0 %vm597_vm3, %v5164_v29  ;;  %v6027_v29 = vld [vmem:[#allocation46_spill] sm:$0xff] }
 0x12f   : > { %3851 = vmatprep.mubr.msk.bf16.mxu0 %vm597_vm3, %v5173_v46  ;;  %v6028_v46 = vld [vmem:[#allocation50_spill] sm:$0xff] }
 0x130   : > { %v1713_v23 = vpack.c.bf16 %v6028_v46, %v6027_v29 }
 0x134   : > { %3716 = vmatmul.mubr.msk.bf16.gmra.mrb[20].mxu1 %vm597_vm3, %v1711_v25 }
 0x135   : > { %3719 = vmatprep.mubr.msk.bf16.mxu1 %vm597_vm3, %v1712_v2 }
 0x136   : > { %3852 = vmatmul.mubr.msk.bf16.gmra.mrb[20].mxu0 %vm597_vm3, %v2710_v60 }
 0x137   : > { %3855 = vmatprep.mubr.msk.bf16.mxu0 %vm597_vm3, %v5183_v32  ;;  %v2711_v32 = vpack.c.bf16 %v5357_v16, %v5170_v54 }
 0x13c   : > { %3720 = vmatmul.mubr.msk.bf16.gmra.mrb[24].mxu1 %vm597_vm3, %v1713_v23 }
 0x13d   : > { %3723 = vmatprep.mubr.msk.bf16.mxu1 %vm597_vm3, %v1714_v18 }
 0x13e   : > { %3856 = vmatmul.mubr.msk.bf16.gmra.mrb[24].mxu0 %vm597_vm3, %v5185_v22 }
 0x13f   : > { %3859 = vmatprep.mubr.msk.bf16.mxu0 %vm597_vm3, %v5187_v12 }
 0x144   : > { %3724 = vmatmul.mubr.msk.bf16.gmra.mrb[28].mxu1 %vm597_vm3, %v1715_v48 }
 0x146   : > { %3860 = vmatmul.mubr.msk.bf16.gmra.mrb[28].mxu0 %vm597_vm3, %v2711_v32 }
 0x1bf   : > { %v3663_v5 = vpop.f32.mrb[0].mxu1 }
 0x1c0   : > { %v1517_v45 = vpop.f32.mrb[1].mxu1 }
 0x1c1   : > { %v3664_v56 = vpop.f32.mrb[2].mxu1 }
 0x1c2   : > { %v1520_v35 = vpop.f32.mrb[3].mxu1 }
 0x1c7   : > { %v3667_v22 = vpop.f32.mrb[4].mxu1 }
 0x1c8   : > { %v1533_v9 = vpop.f32.mrb[5].mxu1 }
 0x1c9   : > { %v3668_v51 = vpop.f32.mrb[6].mxu1 }
 0x1ca   : > { %v1536_v6 = vpop.f32.mrb[7].mxu1 }
 0x1cf   : > { %v5546_v12 = vpop.f32.mrb[8].mxu1 }
 0x1d0   : > { %v5548_v10 = vpop.f32.mrb[9].mxu1 }
 0x1d1   : > { %v5550_v19 = vpop.f32.mrb[10].mxu1 }
 0x1d2   : > { %v5552_v54 = vpop.f32.mrb[11].mxu1 }
 0x1d7   : > { %v5554_v16 = vpop.f32.mrb[12].mxu1 }
 0x1d8   : > { %v5556_v55 = vpop.f32.mrb[13].mxu1 }
 0x1d9   : > { %v5558_v14 = vpop.f32.mrb[14].mxu1 }
 0x1da   : > { %v5560_v13 = vpop.f32.mrb[15].mxu1 }
 0x1e1   : > { %v3833_v41 = vpop.f32.mrb[0].mxu0 }
 0x1e2   : > { %v3865_v3 = vadd.f32 %v3833_v41, %v3663_v5  ;;  %v2763_v63 = vpop.f32.mrb[1].mxu0 }
 0x1e3   : > { %v3866_v49 = vadd.f32 %v2763_v63, %v1517_v45  ;;  %v3834_v26 = vpop.f32.mrb[2].mxu0 }
 0x1e4   : > { %2925 = vst.msk [vmem:[%s4233_s22 + $0x10] sm:$0xff] %vm2922_vm5, %v3865_v3  ;;  %v3867_v38 = vadd.f32 %v3834_v26, %v3664_v56  ;;  %v2766_v7 = vpop.f32.mrb[3].mxu0  ;;  %v3031_v20 = vmul.f32 %v3865_v3, %v3865_v3  ;;  %v2959_v4 = vsel %vm2922_vm5, %v3865_v3, 0.0 }
 0x1e5   : > { %2923 = vst.msk [vmem:[%s4233_s22] sm:$0xff] %vm2922_vm5, %v3866_v49  ;;  %v3029_v59 = vmul.f32 %v3866_v49, %v3866_v49  ;;  %v3868_v52 = vadd.f32 %v2766_v7, %v1520_v35  ;;  %v2956_v57 = vsel %vm2922_vm5, %v3866_v49, 0.0 }
 0x1e6   : > { %2926 = vst.msk [vmem:[%s4233_s22 + $0x18] sm:$0xff] %vm2922_vm5, %v3867_v38  ;;  %v3032_v58 = vmul.f32 %v3867_v38, %v3867_v38  ;;  %v3064_v21 = vsel %vm2922_vm5, %v3031_v20, 0.0  ;;  %v2961_v15 = vsel %vm2922_vm5, %v3867_v38, 0.0 }
 0x1e7   : > { %2924 = vst.msk [vmem:[%s4233_s22 + $0x8] sm:$0xff] %vm2922_vm5, %v3868_v52  ;;  %v2957_v0 = vsel %vm2922_vm5, %v3868_v52, 0.0  ;;  %v3030_v39 = vmul.f32 %v3868_v52, %v3868_v52  ;;  %v3061_v37 = vsel %vm2922_vm5, %v3029_v59, 0.0 }
 0x1e8   : > { %v2958_v31 = vadd.f32 %v2957_v0, %v2956_v57  ;;  %v3066_v47 = vsel %vm2922_vm5, %v3032_v58, 0.0 }
 0x1e9   : > { %v3062_v33 = vsel %vm2922_vm5, %v3030_v39, 0.0  ;;  %v3837_v24 = vpop.f32.mrb[4].mxu0 }
 0x1ea   : > { %v2960_v1 = vadd.f32 %v2959_v4, %v2958_v31  ;;  %v3063_v11 = vadd.f32 %v3062_v33, %v3061_v37  ;;  %v3869_v43 = vadd.f32 %v3837_v24, %v3667_v22  ;;  %v2779_v53 = vpop.f32.mrb[5].mxu0 }
 0x1eb   : > { %v3870_v17 = vadd.f32 %v2779_v53, %v1533_v9  ;;  %v3838_v36 = vpop.f32.mrb[6].mxu0 }
 0x1ec   : > { %v3065_v61 = vadd.f32 %v3064_v21, %v3063_v11  ;;  %2929 = vst.msk [vmem:[%s4233_s22 + $0x30] sm:$0xff] %vm2922_vm5, %v3869_v43  ;;  %v2962_v27 = vadd.f32 %v2961_v15, %v2960_v1  ;;  %v2782_v50 = vpop.f32.mrb[7].mxu0  ;;  %v3871_v25 = vadd.f32 %v3838_v36, %v3668_v51  ;;  %v3035_v29 = vmul.f32 %v3869_v43, %v3869_v43 }
 0x1ed   : > { %2927 = vst.msk [vmem:[%s4233_s22 + $0x20] sm:$0xff] %vm2922_vm5, %v3870_v17  ;;  %v2963_v44 = vsel %vm2922_vm5, %v3870_v17, 0.0  ;;  %v3033_v34 = vmul.f32 %v3870_v17, %v3870_v17  ;;  %v3872_v42 = vadd.f32 %v2782_v50, %v1536_v6  ;;  %v2967_v62 = vsel %vm2922_vm5, %v3869_v43, 0.0 }
 0x1ee   : > { %v2964_v60 = vadd.f32 %v2963_v44, %v2962_v27  ;;  %v3067_v40 = vadd.f32 %v3066_v47, %v3065_v61  ;;  %2930 = vst.msk [vmem:[%s4233_s22 + $0x38] sm:$0xff] %vm2922_vm5, %v3871_v25  ;;  %v3036_v8 = vmul.f32 %v3871_v25, %v3871_v25  ;;  %v2969_v56 = vsel %vm2922_vm5, %v3871_v25, 0.0 }
 0x1ef   : > { %v3068_v28 = vsel %vm2922_vm5, %v3033_v34, 0.0  ;;  %2928 = vst.msk [vmem:[%s4233_s22 + $0x28] sm:$0xff] %vm2922_vm5, %v3872_v42  ;;  %v2965_v2 = vsel %vm2922_vm5, %v3872_v42, 0.0  ;;  %v3034_v30 = vmul.f32 %v3872_v42, %v3872_v42  ;;  %v3072_v51 = vsel %vm2922_vm5, %v3035_v29, 0.0 }
 0x1f0   : > { %v3069_v46 = vadd.f32 %v3068_v28, %v3067_v40  ;;  %v2966_v23 = vadd.f32 %v2965_v2, %v2964_v60 }
 0x1f1   : > { %v3841_v18 = vpop.f32.mrb[8].mxu0  ;;  %v3070_v32 = vsel %vm2922_vm5, %v3034_v30, 0.0 }
 0x1f2   : > { %v2968_v48 = vadd.f32 %v2967_v62, %v2966_v23  ;;  %v3873_v5 = vadd.f32 %v3841_v18, %v5546_v12  ;;  %v2795_v45 = vpop.f32.mrb[9].mxu0  ;;  %v3071_v35 = vadd.f32 %v3070_v32, %v3069_v46 }
 0x1f3   : > { %v3874_v22 = vadd.f32 %v2795_v45, %v5548_v10  ;;  %v3842_v9 = vpop.f32.mrb[10].mxu0  ;;  %v3074_v10 = vsel %vm2922_vm5, %v3036_v8, 0.0 }
 0x1f4   : > { %2933 = vst.msk [vmem:[%s4233_s22 + $0x50] sm:$0xff] %vm2922_vm5, %v3873_v5  ;;  %v2970_v6 = vadd.f32 %v2969_v56, %v2968_v48  ;;  %v3875_v41 = vadd.f32 %v3842_v9, %v5550_v19  ;;  %v2798_v3 = vpop.f32.mrb[11].mxu0  ;;  %v3073_v63 = vadd.f32 %v3072_v51, %v3071_v35  ;;  %v3039_v20 = vmul.f32 %v3873_v5, %v3873_v5 }
 0x1f5   : > { %2931 = vst.msk [vmem:[%s4233_s22 + $0x40] sm:$0xff] %vm2922_vm5, %v3874_v22  ;;  %v2971_v12 = vsel %vm2922_vm5, %v3874_v22, 0.0  ;;  %v3037_v49 = vmul.f32 %v3874_v22, %v3874_v22  ;;  %v3876_v26 = vadd.f32 %v2798_v3, %v5552_v54  ;;  %v2975_v0 = vsel %vm2922_vm5, %v3873_v5, 0.0 }
 0x1f6   : > { %v2972_v38 = vadd.f32 %v2971_v12, %v2970_v6  ;;  %2934 = vst.msk [vmem:[%s4233_s22 + $0x58] sm:$0xff] %vm2922_vm5, %v3875_v41  ;;  %v3075_v7 = vadd.f32 %v3074_v10, %v3073_v63  ;;  %v3040_v31 = vmul.f32 %v3875_v41, %v3875_v41  ;;  %v2977_v24 = vsel %vm2922_vm5, %v3875_v41, 0.0 }
 0x1f7   : > { %v3076_v59 = vsel %vm2922_vm5, %v3037_v49, 0.0  ;;  %2932 = vst.msk [vmem:[%s4233_s22 + $0x48] sm:$0xff] %vm2922_vm5, %v3876_v26  ;;  %v2973_v19 = vsel %vm2922_vm5, %v3876_v26, 0.0  ;;  %v3038_v52 = vmul.f32 %v3876_v26, %v3876_v26  ;;  %v3080_v53 = vsel %vm2922_vm5, %v3039_v20, 0.0 }
 0x1f8   : > { %v2974_v57 = vadd.f32 %v2973_v19, %v2972_v38  ;;  %v3077_v39 = vadd.f32 %v3076_v59, %v3075_v7 }
 0x1f9   : > { %v3078_v54 = vsel %vm2922_vm5, %v3038_v52, 0.0  ;;  %v3845_v58 = vpop.f32.mrb[12].mxu0 }
 0x1fa   : > { %v2976_v4 = vadd.f32 %v2975_v0, %v2974_v57  ;;  %v3877_v37 = vadd.f32 %v3845_v58, %v5554_v16  ;;  %v2811_v33 = vpop.f32.mrb[13].mxu0  ;;  %v3079_v1 = vadd.f32 %v3078_v54, %v3077_v39 }
 0x1fb   : > { %v3878_v11 = vadd.f32 %v2811_v33, %v5556_v55  ;;  %v3846_v43 = vpop.f32.mrb[14].mxu0  ;;  %v3082_v55 = vsel %vm2922_vm5, %v3040_v31, 0.0 }
 0x1fc   : > { %2937 = vst.msk [vmem:[%s4233_s22 + $0x70] sm:$0xff] %vm2922_vm5, %v3877_v37  ;;  %v2978_v21 = vadd.f32 %v2977_v24, %v2976_v4  ;;  %v3879_v15 = vadd.f32 %v3846_v43, %v5558_v14  ;;  %v2814_v17 = vpop.f32.mrb[15].mxu0  ;;  %v3081_v36 = vadd.f32 %v3080_v53, %v3079_v1  ;;  %v3043_v25 = vmul.f32 %v3877_v37, %v3877_v37 }
 0x1fd   : > { %2935 = vst.msk [vmem:[%s4233_s22 + $0x60] sm:$0xff] %vm2922_vm5, %v3878_v11  ;;  %v2979_v16 = vsel %vm2922_vm5, %v3878_v11, 0.0  ;;  %v3041_v47 = vmul.f32 %v3878_v11, %v3878_v11  ;;  %v3880_v61 = vadd.f32 %v2814_v17, %v5560_v13  ;;  %v2983_v40 = vsel %vm2922_vm5, %v3877_v37, 0.0 }
 0x1fe   : > { %v2980_v27 = vadd.f32 %v2979_v16, %v2978_v21  ;;  %2938 = vst.msk [vmem:[%s4233_s22 + $0x78] sm:$0xff] %vm2922_vm5, %v3879_v15  ;;  %v3083_v50 = vadd.f32 %v3082_v55, %v3081_v36  ;;  %v3044_v46 = vmul.f32 %v3879_v15, %v3879_v15  ;;  %v2985_v8 = vsel %vm2922_vm5, %v3879_v15, 0.0 }
 0x1ff   : > { %v3084_v44 = vsel %vm2922_vm5, %v3041_v47, 0.0  ;;  %2936 = vst.msk [vmem:[%s4233_s22 + $0x68] sm:$0xff] %vm2922_vm5, %v3880_v61  ;;  %v2981_v14 = vsel %vm2922_vm5, %v3880_v61, 0.0  ;;  %v3042_v34 = vmul.f32 %v3880_v61, %v3880_v61  ;;  %v3713_v60 = vpop.f32.mrb[16].mxu1  ;;  %v3088_v56 = vsel %vm2922_vm5, %v3043_v25, 0.0 }
 0x200   : > { %v2982_v42 = vadd.f32 %v2981_v14, %v2980_v27  ;;  %v3085_v13 = vadd.f32 %v3084_v44, %v3083_v50  ;;  %v1867_v29 = vpop.f32.mrb[17].mxu1  ;;  %v3090_v63 = vsel %vm2922_vm5, %v3044_v46, 0.0 }
 0x201   : > { %v3086_v28 = vsel %vm2922_vm5, %v3042_v34, 0.0  ;;  %v3849_v2 = vpop.f32.mrb[16].mxu0  ;;  %v3714_v18 = vpop.f32.mrb[18].mxu1 }
 0x202   : > { %v2984_v23 = vadd.f32 %v2983_v40, %v2982_v42  ;;  %v3881_v30 = vadd.f32 %v3849_v2, %v3713_v60  ;;  %v2827_v62 = vpop.f32.mrb[17].mxu0  ;;  %v3087_v48 = vadd.f32 %v3086_v28, %v3085_v13  ;;  %v1870_v45 = vpop.f32.mrb[19].mxu1 }
 0x203   : > { %v3882_v32 = vadd.f32 %v2827_v62, %v1867_v29  ;;  %v3850_v5 = vpop.f32.mrb[18].mxu0 }
 0x204   : > { %2941 = vst.msk [vmem:[%s4233_s22 + $0x90] sm:$0xff] %vm2922_vm5, %v3881_v30  ;;  %v2986_v35 = vadd.f32 %v2985_v8, %v2984_v23  ;;  %v3883_v22 = vadd.f32 %v3850_v5, %v3714_v18  ;;  %v2830_v9 = vpop.f32.mrb[19].mxu0  ;;  %v3089_v51 = vadd.f32 %v3088_v56, %v3087_v48  ;;  %v3047_v7 = vmul.f32 %v3881_v30, %v3881_v30 }
 0x205   : > { %2939 = vst.msk [vmem:[%s4233_s22 + $0x80] sm:$0xff] %vm2922_vm5, %v3882_v32  ;;  %v2987_v6 = vsel %vm2922_vm5, %v3882_v32, 0.0  ;;  %v3045_v41 = vmul.f32 %v3882_v32, %v3882_v32  ;;  %v3884_v3 = vadd.f32 %v2830_v9, %v1870_v45  ;;  %v2991_v52 = vsel %vm2922_vm5, %v3881_v30, 0.0 }
 0x206   : > { %v2988_v12 = vadd.f32 %v2987_v6, %v2986_v35  ;;  %2942 = vst.msk [vmem:[%s4233_s22 + $0x98] sm:$0xff] %vm2922_vm5, %v3883_v22  ;;  %v3091_v49 = vadd.f32 %v3090_v63, %v3089_v51  ;;  %v3048_v54 = vmul.f32 %v3883_v22, %v3883_v22  ;;  %v2993_v33 = vsel %vm2922_vm5, %v3883_v22, 0.0 }
 0x207   : > { %v3092_v26 = vsel %vm2922_vm5, %v3045_v41, 0.0  ;;  %2940 = vst.msk [vmem:[%s4233_s22 + $0x88] sm:$0xff] %vm2922_vm5, %v3884_v3  ;;  %v2989_v10 = vsel %vm2922_vm5, %v3884_v3, 0.0  ;;  %v3046_v38 = vmul.f32 %v3884_v3, %v3884_v3  ;;  %v3717_v19 = vpop.f32.mrb[20].mxu1  ;;  %v3096_v53 = vsel %vm2922_vm5, %v3047_v7, 0.0 }
 0x208   : > { %v2990_v59 = vadd.f32 %v2989_v10, %v2988_v12  ;;  %v3093_v20 = vadd.f32 %v3092_v26, %v3091_v49  ;;  %v1883_v39 = vpop.f32.mrb[21].mxu1  ;;  %v3098_v55 = vsel %vm2922_vm5, %v3048_v54, 0.0 }
 0x209   : > { %v3094_v57 = vsel %vm2922_vm5, %v3046_v38, 0.0  ;;  %v3853_v0 = vpop.f32.mrb[20].mxu0  ;;  %v3718_v37 = vpop.f32.mrb[22].mxu1 }
 0x20a   : > { %v2992_v58 = vadd.f32 %v2991_v52, %v2990_v59  ;;  %v3885_v31 = vadd.f32 %v3853_v0, %v3717_v19  ;;  %v2843_v4 = vpop.f32.mrb[21].mxu0  ;;  %v3095_v24 = vadd.f32 %v3094_v57, %v3093_v20  ;;  %v1886_v43 = vpop.f32.mrb[23].mxu1 }
 0x20b   : > { %v3886_v1 = vadd.f32 %v2843_v4, %v1883_v39  ;;  %v3854_v11 = vpop.f32.mrb[22].mxu0 }
 0x20c   : > { %2945 = vst.msk [vmem:[%s4233_s22 + $0xb0] sm:$0xff] %vm2922_vm5, %v3885_v31  ;;  %v2994_v21 = vadd.f32 %v2993_v33, %v2992_v58  ;;  %v3887_v15 = vadd.f32 %v3854_v11, %v3718_v37  ;;  %v2846_v17 = vpop.f32.mrb[23].mxu0  ;;  %v3097_v36 = vadd.f32 %v3096_v53, %v3095_v24  ;;  %v3051_v25 = vmul.f32 %v3885_v31, %v3885_v31 }
 0x20d   : > { %2943 = vst.msk [vmem:[%s4233_s22 + $0xa0] sm:$0xff] %vm2922_vm5, %v3886_v1  ;;  %v2995_v16 = vsel %vm2922_vm5, %v3886_v1, 0.0  ;;  %v3049_v47 = vmul.f32 %v3886_v1, %v3886_v1  ;;  %v3888_v61 = vadd.f32 %v2846_v17, %v1886_v43  ;;  %v2999_v40 = vsel %vm2922_vm5, %v3885_v31, 0.0 }
 0x20e   : > { %v2996_v27 = vadd.f32 %v2995_v16, %v2994_v21  ;;  %2946 = vst.msk [vmem:[%s4233_s22 + $0xb8] sm:$0xff] %vm2922_vm5, %v3887_v15  ;;  %v3099_v50 = vadd.f32 %v3098_v55, %v3097_v36  ;;  %v3052_v46 = vmul.f32 %v3887_v15, %v3887_v15  ;;  %v3001_v8 = vsel %vm2922_vm5, %v3887_v15, 0.0 }
 0x20f   : > { %v3100_v44 = vsel %vm2922_vm5, %v3049_v47, 0.0  ;;  %2944 = vst.msk [vmem:[%s4233_s22 + $0xa8] sm:$0xff] %vm2922_vm5, %v3888_v61  ;;  %v2997_v14 = vsel %vm2922_vm5, %v3888_v61, 0.0  ;;  %v3050_v34 = vmul.f32 %v3888_v61, %v3888_v61  ;;  %v3721_v60 = vpop.f32.mrb[24].mxu1  ;;  %v3104_v56 = vsel %vm2922_vm5, %v3051_v25, 0.0 }
 0x210   : > { %v2998_v42 = vadd.f32 %v2997_v14, %v2996_v27  ;;  %v3101_v13 = vadd.f32 %v3100_v44, %v3099_v50  ;;  %v1899_v29 = vpop.f32.mrb[25].mxu1  ;;  %v3106_v63 = vsel %vm2922_vm5, %v3052_v46, 0.0 }
 0x211   : > { %v3102_v28 = vsel %vm2922_vm5, %v3050_v34, 0.0  ;;  %v3857_v2 = vpop.f32.mrb[24].mxu0  ;;  %v3722_v18 = vpop.f32.mrb[26].mxu1 }
 0x212   : > { %v3000_v23 = vadd.f32 %v2999_v40, %v2998_v42  ;;  %v3889_v30 = vadd.f32 %v3857_v2, %v3721_v60  ;;  %v2859_v62 = vpop.f32.mrb[25].mxu0  ;;  %v3103_v48 = vadd.f32 %v3102_v28, %v3101_v13  ;;  %v1902_v45 = vpop.f32.mrb[27].mxu1 }
 0x213   : > { %v3890_v32 = vadd.f32 %v2859_v62, %v1899_v29  ;;  %v3858_v5 = vpop.f32.mrb[26].mxu0 }
 0x214   : > { %2949 = vst.msk [vmem:[%s4233_s22 + $0xd0] sm:$0xff] %vm2922_vm5, %v3889_v30  ;;  %v3002_v35 = vadd.f32 %v3001_v8, %v3000_v23  ;;  %v3891_v22 = vadd.f32 %v3858_v5, %v3722_v18  ;;  %v2862_v9 = vpop.f32.mrb[27].mxu0  ;;  %v3105_v51 = vadd.f32 %v3104_v56, %v3103_v48  ;;  %v3055_v7 = vmul.f32 %v3889_v30, %v3889_v30 }
 0x215   : > { %2947 = vst.msk [vmem:[%s4233_s22 + $0xc0] sm:$0xff] %vm2922_vm5, %v3890_v32  ;;  %v3003_v6 = vsel %vm2922_vm5, %v3890_v32, 0.0  ;;  %v3053_v41 = vmul.f32 %v3890_v32, %v3890_v32  ;;  %v3892_v3 = vadd.f32 %v2862_v9, %v1902_v45  ;;  %v3007_v52 = vsel %vm2922_vm5, %v3889_v30, 0.0 }
 0x216   : > { %v3004_v12 = vadd.f32 %v3003_v6, %v3002_v35  ;;  %2950 = vst.msk [vmem:[%s4233_s22 + $0xd8] sm:$0xff] %vm2922_vm5, %v3891_v22  ;;  %v3107_v49 = vadd.f32 %v3106_v63, %v3105_v51  ;;  %v3056_v54 = vmul.f32 %v3891_v22, %v3891_v22  ;;  %v3009_v33 = vsel %vm2922_vm5, %v3891_v22, 0.0  ;;  %v2955_v51 = vld [vmem:[%s5716_s3] sm:$0x1] }
 0x217   : > { %v3108_v26 = vsel %vm2922_vm5, %v3053_v41, 0.0  ;;  %2948 = vst.msk [vmem:[%s4233_s22 + $0xc8] sm:$0xff] %vm2922_vm5, %v3892_v3  ;;  %v3005_v10 = vsel %vm2922_vm5, %v3892_v3, 0.0  ;;  %v3054_v38 = vmul.f32 %v3892_v3, %v3892_v3  ;;  %v3725_v19 = vpop.f32.mrb[28].mxu1  ;;  %v3112_v53 = vsel %vm2922_vm5, %v3055_v7, 0.0 }
 0x218   : > { %v3006_v59 = vadd.f32 %v3005_v10, %v3004_v12  ;;  %v3109_v20 = vadd.f32 %v3108_v26, %v3107_v49  ;;  %v1915_v39 = vpop.f32.mrb[29].mxu1  ;;  %v3114_v27 = vsel %vm2922_vm5, %v3056_v54, 0.0  ;;  %v3028_v12 = vld [vmem:[%s5717_s4] sm:$0x1] }
 0x219   : > { %v3110_v57 = vsel %vm2922_vm5, %v3054_v38, 0.0  ;;  %v3861_v0 = vpop.f32.mrb[28].mxu0  ;;  %v3726_v37 = vpop.f32.mrb[30].mxu1 }
 0x21a   : > { %v3008_v58 = vadd.f32 %v3007_v52, %v3006_v59  ;;  %v3893_v31 = vadd.f32 %v3861_v0, %v3725_v19  ;;  %v2875_v4 = vpop.f32.mrb[29].mxu0  ;;  %v3111_v24 = vadd.f32 %v3110_v57, %v3109_v20  ;;  %v1918_v43 = vpop.f32.mrb[31].mxu1 }
 0x21b   : > { %v3894_v1 = vadd.f32 %v2875_v4, %v1915_v39  ;;  %v3862_v11 = vpop.f32.mrb[30].mxu0 }
 0x21c   : > { %2953 = vst.msk [vmem:[%s4233_s22 + $0xf0] sm:$0xff] %vm2922_vm5, %v3893_v31  ;;  %v3059_v21 = vmul.f32 %v3893_v31, %v3893_v31  ;;  %v3010_v15 = vadd.f32 %v3009_v33, %v3008_v58  ;;  %v3895_v17 = vadd.f32 %v3862_v11, %v3726_v37  ;;  %v2878_v36 = vpop.f32.mrb[31].mxu0  ;;  %v3113_v16 = vadd.f32 %v3112_v53, %v3111_v24 }
 0x21d   : > { %2951 = vst.msk [vmem:[%s4233_s22 + $0xe0] sm:$0xff] %vm2922_vm5, %v3894_v1  ;;  %v3011_v47 = vsel %vm2922_vm5, %v3894_v1, 0.0  ;;  %v3057_v61 = vmul.f32 %v3894_v1, %v3894_v1  ;;  %v3896_v55 = vadd.f32 %v2878_v36, %v1918_v43  ;;  %v3015_v28 = vsel %vm2922_vm5, %v3893_v31, 0.0 }
 0x21e   : > { %v3120_v50 = vsel %vm2922_vm5, %v3059_v21, 0.0  ;;  %v3012_v44 = vadd.f32 %v3011_v47, %v3010_v15  ;;  %2954 = vst.msk [vmem:[%s4233_s22 + $0xf8] sm:$0xff] %vm2922_vm5, %v3895_v17  ;;  %v3060_v14 = vmul.f32 %v3895_v17, %v3895_v17  ;;  %v3115_v34 = vadd.f32 %v3114_v27, %v3113_v16 }
 0x21f   : > { %v3116_v25 = vsel %vm2922_vm5, %v3057_v61, 0.0  ;;  %2952 = vst.msk [vmem:[%s4233_s22 + $0xe8] sm:$0xff] %vm2922_vm5, %v3896_v55  ;;  %v3013_v42 = vsel %vm2922_vm5, %v3896_v55, 0.0  ;;  %v3058_v60 = vmul.f32 %v3896_v55, %v3896_v55  ;;  %v3017_v23 = vsel %vm2922_vm5, %v3895_v17, 0.0 }
 0x220   : > { %v3122_v40 = vsel %vm2922_vm5, %v3060_v14, 0.0  ;;  %v3014_v13 = vadd.f32 %v3013_v42, %v3012_v44  ;;  %v3117_v2 = vadd.f32 %v3116_v25, %v3115_v34 }
 0x221   : > { %v3118_v29 = vsel %vm2922_vm5, %v3058_v60, 0.0 }
 0x222   : > { %v3016_v46 = vadd.f32 %v3015_v28, %v3014_v13  ;;  %v3119_v30 = vadd.f32 %v3118_v29, %v3117_v2 }
 0x224   : > { %v3018_v62 = vadd.f32 %v3017_v23, %v3016_v46  ;;  %v3121_v18 = vadd.f32 %v3120_v50, %v3119_v30 }
 0x226   : > { %v3019_v8 = vrot.slane %v3018_v62, 4  ;;  %v3123_v48 = vadd.f32 %v3122_v40, %v3121_v18 }
 0x228   : > { %v3020_v32 = vadd.f32 %v3019_v8, %v3018_v62  ;;  %v3124_v5 = vrot.slane %v3123_v48, 4 }
 0x22a   : > { %v3021_v45 = vrot.slane %v3020_v32, 2  ;;  %v3125_v56 = vadd.f32 %v3124_v5, %v3123_v48 }
 0x22c   : > { %v3022_v35 = vadd.f32 %v3021_v45, %v3020_v32  ;;  %v3126_v22 = vrot.slane %v3125_v56, 2 }
 0x22e   : > { %v3023_v9 = vrot.slane %v3022_v35, 1  ;;  %v3127_v6 = vadd.f32 %v3126_v22, %v3125_v56 }
 0x230   : > { %v3024_v41 = vadd.f32 %v3023_v9, %v3022_v35  ;;  %v3128_v3 = vrot.slane %v3127_v6, 1 }
 0x232   : > { %v3025_v63 = vadd.f32 %v3024_v41, %v2955_v51  ;;  %v3129_v49 = vadd.f32 %v3128_v3, %v3127_v6 }
 0x234   : > { %3027 = vst.msk [vmem:[%s5716_s3] sm:$0x1] %vm3026_vm6, %v3025_v63  ;;  %v3130_v26 = vadd.f32 %v3129_v49, %v3028_v12 }
 0x236   : > { %3131 = vst.msk [vmem:[%s5717_s4] sm:$0x1] %vm3026_vm6, %v3130_v26 }
 0x237 PF: > { %s15_s15 = sadd.s32 1, %s4194_s15  }
 0x238   : > { %p12_p5 = scmp.ge.s32.totalorder %s15_s15, 4  }
 0x23a   :  { %14 = sbr.rel (!%p12_p5) target bundleno = 1 (0x1), region = 86 }

</bundles_post_ra>
